<compile_context>
chip_gen: v6e
topology: v6e:2x2x1
jax: 0.10.0
libtpu: 0.0.40
codegen_flags: <defaults>
</compile_context>

<pallas_src>
import functools

import jax
import jax.numpy as jnp
from jax.experimental import pallas as pl
from jax.experimental.pallas import tpu as pltpu

LANE = 128  # output-channel (lane) padding width


def _round_up(x, m):
    return (x + m - 1) // m * m


def _pick_tm(m):
    """Per-layer M tile: <=1024, multiple of 8, >=2 grid steps when possible."""
    if m <= 16:
        return m                                   # one block spanning the tiny M dim
    return min(1024, _round_up((m + 1) // 2, 8))


# ---------------------------------------------------------------------------
# Pallas kernel: (tm, K) @ (K, 128) on the MXU + shift [+ ReLU] [+ residual]
# ---------------------------------------------------------------------------
def _conv_matmul_kernel(*refs, relu, has_residual):
    if has_residual:
        a_ref, w_ref, shift_ref, r_ref, o_ref = refs
    else:
        a_ref, w_ref, shift_ref, o_ref = refs
    acc = jnp.dot(a_ref[...], w_ref[...], preferred_element_type=jnp.float32)
    y = acc + shift_ref[...]                       # BN scale already folded into W
    if relu:
        y = jnp.maximum(y, 0.0)
    if has_residual:
        # PyTorch order: x + ReLU(BN(conv(.))) -> residual added AFTER the ReLU.
        y = y + r_ref[...].astype(jnp.float32)
    o_ref[...] = y.astype(o_ref.dtype)


def matmul_bn_act(a, w, shift, *, relu=True, residual=None):
    """Pallas-tiled (M, K) @ (K, 128) with fused shift / ReLU / residual epilogue."""
    m, k = a.shape
    k2, n = w.shape
    assert k == k2 and n == LANE and k % LANE == 0
    tm = _pick_tm(m)
    grid_m = pl.cdiv(m, tm)

    in_specs = [
        pl.BlockSpec((tm, k), lambda i: (i, 0)),   # activation rows (bf16)
        pl.BlockSpec((k, n), lambda i: (0, 0)),    # scale-folded weights (bf16)
        pl.BlockSpec((1, n), lambda i: (0, 0)),    # folded BN shift (f32)
    ]
    args = [a, w, shift]
    if residual is not None:
        in_specs.append(pl.BlockSpec((tm, n), lambda i: (i, 0)))
        args.append(residual)

    return pl.pallas_call(
        functools.partial(_conv_matmul_kernel, relu=relu,
                          has_residual=residual is not None),
        out_shape=jax.ShapeDtypeStruct((m, n), jnp.bfloat16),
        grid_spec=pltpu.PrefetchScalarGridSpec(
            num_scalar_prefetch=0,
            grid=(grid_m,),
            in_specs=in_specs,
            out_specs=pl.BlockSpec((tm, n), lambda i: (i, 0)),
        ),
        compiler_params=pltpu.CompilerParams(
            dimension_semantics=("parallel",)),     # lets v7x split M over both TCs
    )(*args)


# ---------------------------------------------------------------------------
# Conv lowering (im2col glue) + pooling glue (all on 128-padded bf16 NHWC)
# ---------------------------------------------------------------------------
def im2col(x, kh, kw, stride, padding):
    """x: (N, H, W, C) -> (N*OH*OW, KH*KW*C); patch order (kh, kw, c)."""
    if padding:
        x = jnp.pad(x, ((0, 0), (padding, padding), (padding, padding), (0, 0)))
    n, h, w, c = x.shape
    oh = (h - kh) // stride + 1
    ow = (w - kw) // stride + 1
    cols = []
    for i in range(kh):
        for j in range(kw):
            cols.append(
                x[:, i:i + stride * (oh - 1) + 1:stride,
                     j:j + stride * (ow - 1) + 1:stride, :])
    patches = jnp.stack(cols, axis=3)               # (N, OH, OW, KH*KW, C)
    return patches.reshape(n * oh * ow, kh * kw * c), (n, oh, ow)


def conv_bn_act(x, w_mat, shift, *, kh, kw, stride=1, padding=0, relu=True,
                residual=None):
    """Conv2d + folded BatchNorm2d + ReLU (+ fused residual add) via Pallas matmul."""
    a, (n, oh, ow) = im2col(x, kh, kw, stride, padding)
    res_flat = None
    if residual is not None:
        res_flat = residual.reshape(n * oh * ow, LANE)
    y = matmul_bn_act(a, w_mat, shift, relu=relu, residual=res_flat)
    return y.reshape(n, oh, ow, LANE)


def maxpool2(x):
    """MaxPool2d(kernel=2, stride=2) with PyTorch floor semantics (NHWC)."""
    n, h, w, c = x.shape
    h2, w2 = h // 2, w // 2
    x = x[:, :h2 * 2, :w2 * 2, :]
    return x.reshape(n, h2, 2, w2, 2, c).max(axis=(2, 4))


# ---------------------------------------------------------------------------
# Deterministic raw parameters (Conv bias + BN folded to scale/shift)
# ---------------------------------------------------------------------------
def _fold_bn(conv_bias, gamma, beta, mean, var, eps=1e-5):
    s = gamma / jnp.sqrt(var + eps)
    return s, (conv_bias - mean) * s + beta


def init_conv_bn(key, cin, cout, k):
    k1, k2, k3, k4, k5, k6 = jax.random.split(key, 6)
    fan_in = cin * k * k
    w = jax.random.normal(k1, (k, k, cin, cout), jnp.float32) / jnp.sqrt(fan_in)
    b = 0.05 * jax.random.normal(k2, (cout,), jnp.float32)
    gamma = 1.0 + 0.1 * jax.random.normal(k3, (cout,), jnp.float32)
    beta = 0.1 * jax.random.normal(k4, (cout,), jnp.float32)
    mean = 0.1 * jax.random.normal(k5, (cout,), jnp.float32)
    var = 1.0 + 0.1 * jax.random.uniform(k6, (cout,), jnp.float32)
    scale, shift = _fold_bn(b, gamma, beta, mean, var)
    return w, scale, shift


def init_params(key):
    keys = jax.random.split(key, 12)
    params = {}
    params['conv1'] = init_conv_bn(keys[0], 3, 24, 8)        # ConvBlock(3,24,k=8,s=2)
    params['conv2'] = init_conv_bn(keys[1], 24, 32, 3)       # ConvBlock(24,32,k=3)
    params['res1'] = (init_conv_bn(keys[2], 32, 32, 3),      # ResNetDouble(32,32)
                      init_conv_bn(keys[3], 32, 32, 3))
    params['res2'] = (init_conv_bn(keys[4], 32, 32, 3),
                      init_conv_bn(keys[5], 32, 32, 3))
    params['conv3'] = init_conv_bn(keys[6], 32, 64, 1)       # ConvBlock(32,64,k=1)
    params['res3'] = (init_conv_bn(keys[7], 64, 64, 3),      # ResNetDouble(64,64)
                      init_conv_bn(keys[8], 64, 64, 3))
    params['res4'] = (init_conv_bn(keys[9], 64, 64, 3),
                      init_conv_bn(keys[10], 64, 64, 3))
    kf1, kf2 = jax.random.split(keys[11])
    wf = jax.random.normal(kf1, (64, 30), jnp.float32) / jnp.sqrt(64.0)
    bf = 0.05 * jax.random.normal(kf2, (30,), jnp.float32)
    params['fc1'] = (wf, bf)
    return params


# ---------------------------------------------------------------------------
# One-time parameter prep (outside jit): fold scale into W, pad to lanes, bf16
# ---------------------------------------------------------------------------
def _prep_conv(w_hwio, scale, shift, cin_pad):
    kh, kw, cin, cout = w_hwio.shape
    wf = w_hwio * scale[None, None, None, :]                 # fold BN scale into W
    w_pad = jnp.zeros((kh, kw, cin_pad, LANE), jnp.float32)
    w_pad = w_pad.at[:, :, :cin, :cout].set(wf)
    w_mat = w_pad.reshape(kh * kw * cin_pad, LANE).astype(jnp.bfloat16)
    sh = jnp.zeros((1, LANE), jnp.float32).at[0, :cout].set(shift)
    return w_mat, sh


def prepare_params(raw):
    p = {}
    p['conv1'] = _prep_conv(*raw['conv1'], cin_pad=4)        # image padded 3->4 channels
    p['conv2'] = _prep_conv(*raw['conv2'], cin_pad=LANE)
    p['conv3'] = _prep_conv(*raw['conv3'], cin_pad=LANE)
    for name in ('res1', 'res2', 'res3', 'res4'):
        p[name] = tuple(_prep_conv(*layer, cin_pad=LANE) for layer in raw[name])
    wf, bf = raw['fc1']
    wf_pad = jnp.zeros((LANE, wf.shape[1]), jnp.float32).at[:wf.shape[0]].set(wf)
    p['fc1'] = (wf_pad, bf)
    return p


# ---------------------------------------------------------------------------
# FeatureNet forward (NCHW in, like PyTorch)
# ---------------------------------------------------------------------------
def feature_net_forward(x_nchw, P):
    x = jnp.transpose(x_nchw, (0, 2, 3, 1)).astype(jnp.float32)   # NCHW -> NHWC
    x = jnp.pad(x, ((0, 0), (0, 0), (0, 0), (0, 1))).astype(jnp.bfloat16)  # 3->4 ch

    # ConvBlock(3, 24, k=8, s=2): conv + BN + ReLU (Pallas) + MaxPool2d(2)
    x = conv_bn_act(x, *P['conv1'], kh=8, kw=8, stride=2, padding=0)
    x = maxpool2(x)
    x = maxpool2(x)                                                # nn.MaxPool2d(2)
    # ConvBlock(24, 32, k=3) + MaxPool2d(2)
    x = conv_bn_act(x, *P['conv2'], kh=3, kw=3)
    x = maxpool2(x)
    x = maxpool2(x)                                                # nn.MaxPool2d(2)
    # ResNetDouble(32, 32, k=3, pad=1) x 2 — residual add fused into 2nd conv epilogue
    for name in ('res1', 'res2'):
        (w1, s1), (w2, s2) = P[name]
        y = conv_bn_act(x, w1, s1, kh=3, kw=3, padding=1)
        x = conv_bn_act(y, w2, s2, kh=3, kw=3, padding=1, residual=x)
    x = maxpool2(x)                                                # nn.MaxPool2d(2)
    # ConvBlock(32, 64, k=1) + MaxPool2d(2)
    x = conv_bn_act(x, *P['conv3'], kh=1, kw=1)
    x = maxpool2(x)
    # ResNetDouble(64, 64, k=3, pad=1) x 2
    for name in ('res3', 'res4'):
        (w1, s1), (w2, s2) = P[name]
        y = conv_bn_act(x, w1, s1, kh=3, kw=3, padding=1)
        x = conv_bn_act(y, w2, s2, kh=3, kw=3, padding=1, residual=x)
    # AdaptiveAvgPool2d((1, 1)) + flatten  (padded channels are exactly zero)
    feat = jnp.mean(x.astype(jnp.float32), axis=(1, 2))            # (N, 128)
    # fc1: Linear(64, 30) — plain dot (M=2 rows, Pallas would be all padding)
    wf, bf = P['fc1']
    return feat @ wf + bf                                           # (N, 30)


if __name__ == "__main__":
    key = jax.random.PRNGKey(0)
    k_param, k_input = jax.random.split(key)
    raw_params = init_params(k_param)
    P = prepare_params(raw_params)     # fold/pad/cast weights once, outside jit

    # Smallest spatial size the architecture supports is 150 (6 maxpools + valid convs).
    x = jax.random.normal(k_input, (2, 3, 150, 150), jnp.float32)  # NCHW like PyTorch

    fwd = jax.jit(feature_net_forward)
    out = jax.block_until_ready(fwd(x, P))
    assert out.shape == (2, 30), out.shape
    assert bool(jnp.all(jnp.isfinite(out)))
    print("KERNEL_OK")
</pallas_src>

<mosaic_0001>
module attributes {stable_mosaic.version = 11 : i64} {
  func.func @_conv_matmul_kernel(%arg0: i32, %arg1: memref<1024x256xbf16, #tpu.memory_space<vmem>>, %arg2: memref<256x128xbf16, #tpu.memory_space<vmem>>, %arg3: memref<1x128xf32, #tpu.memory_space<vmem>>, %arg4: memref<1024x128xbf16, #tpu.memory_space<vmem>>) attributes {dimension_semantics = [#tpu.dimension_semantics<parallel>], iteration_bounds = array<i64: 11>, scalar_prefetch = 0 : i64, scratch_operands = 0 : i64, tpu.core_type = #tpu.core_type<tc>, window_params = [{transform_indices = @transform_0, window_bounds = array<i64: 1024, 256>}, {pipeline_mode = #tpu.pipeline_mode<synchronous>, transform_indices = @transform_1, window_bounds = array<i64: 256, 128>}, {pipeline_mode = #tpu.pipeline_mode<synchronous>, transform_indices = @transform_2, window_bounds = array<i64: 1, 128>}, {transform_indices = @transform_3, window_bounds = array<i64: 1024, 128>}]} {
    %c0 = arith.constant 0 : index
    %c0_0 = arith.constant 0 : index
    %0 = vector.load %arg1[%c0, %c0_0] : memref<1024x256xbf16, #tpu.memory_space<vmem>>, vector<1024x256xbf16>
    %c0_1 = arith.constant 0 : index
    %c0_2 = arith.constant 0 : index
    %1 = vector.load %arg2[%c0_1, %c0_2] : memref<256x128xbf16, #tpu.memory_space<vmem>>, vector<256x128xbf16>
    %cst = arith.constant dense<0.000000e+00> : vector<1024x128xf32>
    %2 = tpu.matmul %0, %1, %cst {dimension_numbers = #tpu.dot_dimension_numbers<[1], [0], [0], [1], [0, 0, 1, 1], [], []>} : vector<1024x256xbf16>, vector<256x128xbf16>, vector<1024x128xf32> -> vector<1024x128xf32>
    %c0_3 = arith.constant 0 : index
    %c0_4 = arith.constant 0 : index
    %3 = vector.load %arg3[%c0_3, %c0_4] : memref<1x128xf32, #tpu.memory_space<vmem>>, vector<1x128xf32>
    %4 = vector.broadcast %3 : vector<1x128xf32> to vector<1024x128xf32>
    %5 = arith.addf %2, %4 : vector<1024x128xf32>
    %cst_5 = arith.constant 0.000000e+00 : f32
    %6 = vector.broadcast %cst_5 : f32 to vector<1024x128xf32>
    %7 = arith.maximumf %5, %6 : vector<1024x128xf32>
    %8 = arith.truncf %7 : vector<1024x128xf32> to vector<1024x128xbf16>
    %c0_6 = arith.constant 0 : index
    %c0_7 = arith.constant 0 : index
    %9 = vector.load %arg4[%c0_6, %c0_7] : memref<1024x128xbf16, #tpu.memory_space<vmem>>, vector<1024x128xbf16>
    tpu.vector_store %arg4[%c0_6, %c0_7], %8 {strides = array<i32>} : memref<1024x128xbf16, #tpu.memory_space<vmem>>, vector<1024x128xbf16>,
    return
  }
  func.func @transform_0(%arg0: i32) -> (i32, i32) {
    %c0_i32 = arith.constant 0 : i32
    %c0_i32_0 = arith.constant 0 : i32
    return %arg0, %c0_i32 : i32, i32
  }
  func.func @transform_1(%arg0: i32) -> (i32, i32) {
    %c0_i32 = arith.constant 0 : i32
    %c0_i32_0 = arith.constant 0 : i32
    %c0_i32_1 = arith.constant 0 : i32
    return %c0_i32, %c0_i32_0 : i32, i32
  }
  func.func @transform_2(%arg0: i32) -> (i32, i32) {
    %c0_i32 = arith.constant 0 : i32
    %c0_i32_0 = arith.constant 0 : i32
    %c0_i32_1 = arith.constant 0 : i32
    return %c0_i32, %c0_i32_0 : i32, i32
  }
  func.func @transform_3(%arg0: i32) -> (i32, i32) {
    %c0_i32 = arith.constant 0 : i32
    %c0_i32_0 = arith.constant 0 : i32
    return %arg0, %c0_i32 : i32, i32
  }
}

module attributes {stable_mosaic.version = 11 : i64} {
  func.func @_conv_matmul_kernel(%arg0: i32, %arg1: memref<256x1152xbf16, #tpu.memory_space<vmem>>, %arg2: memref<1152x128xbf16, #tpu.memory_space<vmem>>, %arg3: memref<1x128xf32, #tpu.memory_space<vmem>>, %arg4: memref<256x128xbf16, #tpu.memory_space<vmem>>) attributes {dimension_semantics = [#tpu.dimension_semantics<parallel>], iteration_bounds = array<i64: 2>, scalar_prefetch = 0 : i64, scratch_operands = 0 : i64, tpu.core_type = #tpu.core_type<tc>, window_params = [{transform_indices = @transform_0, window_bounds = array<i64: 256, 1152>}, {pipeline_mode = #tpu.pipeline_mode<synchronous>, transform_indices = @transform_1, window_bounds = array<i64: 1152, 128>}, {pipeline_mode = #tpu.pipeline_mode<synchronous>, transform_indices = @transform_2, window_bounds = array<i64: 1, 128>}, {transform_indices = @transform_3, window_bounds = array<i64: 256, 128>}]} {
    %c0 = arith.constant 0 : index
    %c0_0 = arith.constant 0 : index
    %0 = vector.load %arg1[%c0, %c0_0] : memref<256x1152xbf16, #tpu.memory_space<vmem>>, vector<256x1152xbf16>
    %c0_1 = arith.constant 0 : index
    %c0_2 = arith.constant 0 : index
    %1 = vector.load %arg2[%c0_1, %c0_2] : memref<1152x128xbf16, #tpu.memory_space<vmem>>, vector<1152x128xbf16>
    %cst = arith.constant dense<0.000000e+00> : vector<256x128xf32>
    %2 = tpu.matmul %0, %1, %cst {dimension_numbers = #tpu.dot_dimension_numbers<[1], [0], [0], [1], [0, 0, 1, 1], [], []>} : vector<256x1152xbf16>, vector<1152x128xbf16>, vector<256x128xf32> -> vector<256x128xf32>
    %c0_3 = arith.constant 0 : index
    %c0_4 = arith.constant 0 : index
    %3 = vector.load %arg3[%c0_3, %c0_4] : memref<1x128xf32, #tpu.memory_space<vmem>>, vector<1x128xf32>
    %4 = vector.broadcast %3 : vector<1x128xf32> to vector<256x128xf32>
    %5 = arith.addf %2, %4 : vector<256x128xf32>
    %cst_5 = arith.constant 0.000000e+00 : f32
    %6 = vector.broadcast %cst_5 : f32 to vector<256x128xf32>
    %7 = arith.maximumf %5, %6 : vector<256x128xf32>
    %8 = arith.truncf %7 : vector<256x128xf32> to vector<256x128xbf16>
    %c0_6 = arith.constant 0 : index
    %c0_7 = arith.constant 0 : index
    %9 = vector.load %arg4[%c0_6, %c0_7] : memref<256x128xbf16, #tpu.memory_space<vmem>>, vector<256x128xbf16>
    tpu.vector_store %arg4[%c0_6, %c0_7], %8 {strides = array<i32>} : memref<256x128xbf16, #tpu.memory_space<vmem>>, vector<256x128xbf16>,
    return
  }
  func.func @transform_0(%arg0: i32) -> (i32, i32) {
    %c0_i32 = arith.constant 0 : i32
    %c0_i32_0 = arith.constant 0 : i32
    return %arg0, %c0_i32 : i32, i32
  }
  func.func @transform_1(%arg0: i32) -> (i32, i32) {
    %c0_i32 = arith.constant 0 : i32
    %c0_i32_0 = arith.constant 0 : i32
    %c0_i32_1 = arith.constant 0 : i32
    return %c0_i32, %c0_i32_0 : i32, i32
  }
  func.func @transform_2(%arg0: i32) -> (i32, i32) {
    %c0_i32 = arith.constant 0 : i32
    %c0_i32_0 = arith.constant 0 : i32
    %c0_i32_1 = arith.constant 0 : i32
    return %c0_i32, %c0_i32_0 : i32, i32
  }
  func.func @transform_3(%arg0: i32) -> (i32, i32) {
    %c0_i32 = arith.constant 0 : i32
    %c0_i32_0 = arith.constant 0 : i32
    return %arg0, %c0_i32 : i32, i32
  }
}

module attributes {stable_mosaic.version = 11 : i64} {
  func.func @_conv_matmul_kernel(%arg0: i32, %arg1: memref<16x1152xbf16, #tpu.memory_space<vmem>>, %arg2: memref<1152x128xbf16, #tpu.memory_space<vmem>>, %arg3: memref<1x128xf32, #tpu.memory_space<vmem>>, %arg4: memref<16x128xbf16, #tpu.memory_space<vmem>>) attributes {dimension_semantics = [#tpu.dimension_semantics<parallel>], iteration_bounds = array<i64: 2>, scalar_prefetch = 0 : i64, scratch_operands = 0 : i64, tpu.core_type = #tpu.core_type<tc>, window_params = [{transform_indices = @transform_0, window_bounds = array<i64: 16, 1152>}, {pipeline_mode = #tpu.pipeline_mode<synchronous>, transform_indices = @transform_1, window_bounds = array<i64: 1152, 128>}, {pipeline_mode = #tpu.pipeline_mode<synchronous>, transform_indices = @transform_2, window_bounds = array<i64: 1, 128>}, {transform_indices = @transform_3, window_bounds = array<i64: 16, 128>}]} {
    %c0 = arith.constant 0 : index
    %c0_0 = arith.constant 0 : index
    %0 = vector.load %arg1[%c0, %c0_0] : memref<16x1152xbf16, #tpu.memory_space<vmem>>, vector<16x1152xbf16>
    %c0_1 = arith.constant 0 : index
    %c0_2 = arith.constant 0 : index
    %1 = vector.load %arg2[%c0_1, %c0_2] : memref<1152x128xbf16, #tpu.memory_space<vmem>>, vector<1152x128xbf16>
    %cst = arith.constant dense<0.000000e+00> : vector<16x128xf32>
    %2 = tpu.matmul %0, %1, %cst {dimension_numbers = #tpu.dot_dimension_numbers<[1], [0], [0], [1], [0, 0, 1, 1], [], []>} : vector<16x1152xbf16>, vector<1152x128xbf16>, vector<16x128xf32> -> vector<16x128xf32>
    %c0_3 = arith.constant 0 : index
    %c0_4 = arith.constant 0 : index
    %3 = vector.load %arg3[%c0_3, %c0_4] : memref<1x128xf32, #tpu.memory_space<vmem>>, vector<1x128xf32>
    %4 = vector.broadcast %3 : vector<1x128xf32> to vector<16x128xf32>
    %5 = arith.addf %2, %4 : vector<16x128xf32>
    %cst_5 = arith.constant 0.000000e+00 : f32
    %6 = vector.broadcast %cst_5 : f32 to vector<16x128xf32>
    %7 = arith.maximumf %5, %6 : vector<16x128xf32>
    %8 = arith.truncf %7 : vector<16x128xf32> to vector<16x128xbf16>
    %c0_6 = arith.constant 0 : index
    %c0_7 = arith.constant 0 : index
    %9 = vector.load %arg4[%c0_6, %c0_7] : memref<16x128xbf16, #tpu.memory_space<vmem>>, vector<16x128xbf16>
    tpu.vector_store %arg4[%c0_6, %c0_7], %8 {strides = array<i32>} : memref<16x128xbf16, #tpu.memory_space<vmem>>, vector<16x128xbf16>,
    return
  }
  func.func @transform_0(%arg0: i32) -> (i32, i32) {
    %c0_i32 = arith.constant 0 : i32
    %c0_i32_0 = arith.constant 0 : i32
    return %arg0, %c0_i32 : i32, i32
  }
  func.func @transform_1(%arg0: i32) -> (i32, i32) {
    %c0_i32 = arith.constant 0 : i32
    %c0_i32_0 = arith.constant 0 : i32
    %c0_i32_1 = arith.constant 0 : i32
    return %c0_i32, %c0_i32_0 : i32, i32
  }
  func.func @transform_2(%arg0: i32) -> (i32, i32) {
    %c0_i32 = arith.constant 0 : i32
    %c0_i32_0 = arith.constant 0 : i32
    %c0_i32_1 = arith.constant 0 : i32
    return %c0_i32, %c0_i32_0 : i32, i32
  }
  func.func @transform_3(%arg0: i32) -> (i32, i32) {
    %c0_i32 = arith.constant 0 : i32
    %c0_i32_0 = arith.constant 0 : i32
    return %arg0, %c0_i32 : i32, i32
  }
}

module attributes {stable_mosaic.version = 11 : i64} {
  func.func @_conv_matmul_kernel(%arg0: i32, %arg1: memref<16x1152xbf16, #tpu.memory_space<vmem>>, %arg2: memref<1152x128xbf16, #tpu.memory_space<vmem>>, %arg3: memref<1x128xf32, #tpu.memory_space<vmem>>, %arg4: memref<16x128xbf16, #tpu.memory_space<vmem>>, %arg5: memref<16x128xbf16, #tpu.memory_space<vmem>>) attributes {dimension_semantics = [#tpu.dimension_semantics<parallel>], iteration_bounds = array<i64: 2>, scalar_prefetch = 0 : i64, scratch_operands = 0 : i64, tpu.core_type = #tpu.core_type<tc>, window_params = [{transform_indices = @transform_0, window_bounds = array<i64: 16, 1152>}, {pipeline_mode = #tpu.pipeline_mode<synchronous>, transform_indices = @transform_1, window_bounds = array<i64: 1152, 128>}, {pipeline_mode = #tpu.pipeline_mode<synchronous>, transform_indices = @transform_2, window_bounds = array<i64: 1, 128>}, {transform_indices = @transform_3, window_bounds = array<i64: 16, 128>}, {transform_indices = @transform_4, window_bounds = array<i64: 16, 128>}]} {
    %c0 = arith.constant 0 : index
    %c0_0 = arith.constant 0 : index
    %0 = vector.load %arg1[%c0, %c0_0] : memref<16x1152xbf16, #tpu.memory_space<vmem>>, vector<16x1152xbf16>
    %c0_1 = arith.constant 0 : index
    %c0_2 = arith.constant 0 : index
    %1 = vector.load %arg2[%c0_1, %c0_2] : memref<1152x128xbf16, #tpu.memory_space<vmem>>, vector<1152x128xbf16>
    %cst = arith.constant dense<0.000000e+00> : vector<16x128xf32>
    %2 = tpu.matmul %0, %1, %cst {dimension_numbers = #tpu.dot_dimension_numbers<[1], [0], [0], [1], [0, 0, 1, 1], [], []>} : vector<16x1152xbf16>, vector<1152x128xbf16>, vector<16x128xf32> -> vector<16x128xf32>
    %c0_3 = arith.constant 0 : index
    %c0_4 = arith.constant 0 : index
    %3 = vector.load %arg3[%c0_3, %c0_4] : memref<1x128xf32, #tpu.memory_space<vmem>>, vector<1x128xf32>
    %4 = vector.broadcast %3 : vector<1x128xf32> to vector<16x128xf32>
    %5 = arith.addf %2, %4 : vector<16x128xf32>
    %cst_5 = arith.constant 0.000000e+00 : f32
    %6 = vector.broadcast %cst_5 : f32 to vector<16x128xf32>
    %7 = arith.maximumf %5, %6 : vector<16x128xf32>
    %c0_6 = arith.constant 0 : index
    %c0_7 = arith.constant 0 : index
    %8 = vector.load %arg4[%c0_6, %c0_7] : memref<16x128xbf16, #tpu.memory_space<vmem>>, vector<16x128xbf16>
    %9 = arith.extf %8 : vector<16x128xbf16> to vector<16x128xf32>
    %10 = arith.addf %7, %9 : vector<16x128xf32>
    %11 = arith.truncf %10 : vector<16x128xf32> to vector<16x128xbf16>
    %c0_8 = arith.constant 0 : index
    %c0_9 = arith.constant 0 : index
    %12 = vector.load %arg5[%c0_8, %c0_9] : memref<16x128xbf16, #tpu.memory_space<vmem>>, vector<16x128xbf16>
    tpu.vector_store %arg5[%c0_8, %c0_9], %11 {strides = array<i32>} : memref<16x128xbf16, #tpu.memory_space<vmem>>, vector<16x128xbf16>,
    return
  }
  func.func @transform_0(%arg0: i32) -> (i32, i32) {
    %c0_i32 = arith.constant 0 : i32
    %c0_i32_0 = arith.constant 0 : i32
    return %arg0, %c0_i32 : i32, i32
  }
  func.func @transform_1(%arg0: i32) -> (i32, i32) {
    %c0_i32 = arith.constant 0 : i32
    %c0_i32_0 = arith.constant 0 : i32
    %c0_i32_1 = arith.constant 0 : i32
    return %c0_i32, %c0_i32_0 : i32, i32
  }
  func.func @transform_2(%arg0: i32) -> (i32, i32) {
    %c0_i32 = arith.constant 0 : i32
    %c0_i32_0 = arith.constant 0 : i32
    %c0_i32_1 = arith.constant 0 : i32
    return %c0_i32, %c0_i32_0 : i32, i32
  }
  func.func @transform_3(%arg0: i32) -> (i32, i32) {
    %c0_i32 = arith.constant 0 : i32
    %c0_i32_0 = arith.constant 0 : i32
    return %arg0, %c0_i32 : i32, i32
  }
  func.func @transform_4(%arg0: i32) -> (i32, i32) {
    %c0_i32 = arith.constant 0 : i32
    %c0_i32_0 = arith.constant 0 : i32
    return %arg0, %c0_i32 : i32, i32
  }
}

module attributes {stable_mosaic.version = 11 : i64} {
  func.func @_conv_matmul_kernel(%arg0: i32, %arg1: memref<8x128xbf16, #tpu.memory_space<vmem>>, %arg2: memref<128x128xbf16, #tpu.memory_space<vmem>>, %arg3: memref<1x128xf32, #tpu.memory_space<vmem>>, %arg4: memref<8x128xbf16, #tpu.memory_space<vmem>>) attributes {dimension_semantics = [#tpu.dimension_semantics<parallel>], iteration_bounds = array<i64: 1>, scalar_prefetch = 0 : i64, scratch_operands = 0 : i64, tpu.core_type = #tpu.core_type<tc>, window_params = [{transform_indices = @transform_0, window_bounds = array<i64: 8, 128>}, {pipeline_mode = #tpu.pipeline_mode<synchronous>, transform_indices = @transform_1, window_bounds = array<i64: 128, 128>}, {pipeline_mode = #tpu.pipeline_mode<synchronous>, transform_indices = @transform_2, window_bounds = array<i64: 1, 128>}, {transform_indices = @transform_3, window_bounds = array<i64: 8, 128>}]} {
    %c0 = arith.constant 0 : index
    %c0_0 = arith.constant 0 : index
    %0 = vector.load %arg1[%c0, %c0_0] : memref<8x128xbf16, #tpu.memory_space<vmem>>, vector<8x128xbf16>
    %c0_1 = arith.constant 0 : index
    %c0_2 = arith.constant 0 : index
    %1 = vector.load %arg2[%c0_1, %c0_2] : memref<128x128xbf16, #tpu.memory_space<vmem>>, vector<128x128xbf16>
    %cst = arith.constant dense<0.000000e+00> : vector<8x128xf32>
    %2 = tpu.matmul %0, %1, %cst {dimension_numbers = #tpu.dot_dimension_numbers<[1], [0], [0], [1], [0, 0, 1, 1], [], []>} : vector<8x128xbf16>, vector<128x128xbf16>, vector<8x128xf32> -> vector<8x128xf32>
    %c0_3 = arith.constant 0 : index
    %c0_4 = arith.constant 0 : index
    %3 = vector.load %arg3[%c0_3, %c0_4] : memref<1x128xf32, #tpu.memory_space<vmem>>, vector<1x128xf32>
    %4 = vector.broadcast %3 : vector<1x128xf32> to vector<8x128xf32>
    %5 = arith.addf %2, %4 : vector<8x128xf32>
    %cst_5 = arith.constant 0.000000e+00 : f32
    %6 = vector.broadcast %cst_5 : f32 to vector<8x128xf32>
    %7 = arith.maximumf %5, %6 : vector<8x128xf32>
    %8 = arith.truncf %7 : vector<8x128xf32> to vector<8x128xbf16>
    %c0_6 = arith.constant 0 : index
    %c0_7 = arith.constant 0 : index
    %9 = vector.load %arg4[%c0_6, %c0_7] : memref<8x128xbf16, #tpu.memory_space<vmem>>, vector<8x128xbf16>
    tpu.vector_store %arg4[%c0_6, %c0_7], %8 {strides = array<i32>} : memref<8x128xbf16, #tpu.memory_space<vmem>>, vector<8x128xbf16>,
    return
  }
  func.func @transform_0(%arg0: i32) -> (i32, i32) {
    %c0_i32 = arith.constant 0 : i32
    %c0_i32_0 = arith.constant 0 : i32
    return %arg0, %c0_i32 : i32, i32
  }
  func.func @transform_1(%arg0: i32) -> (i32, i32) {
    %c0_i32 = arith.constant 0 : i32
    %c0_i32_0 = arith.constant 0 : i32
    %c0_i32_1 = arith.constant 0 : i32
    return %c0_i32, %c0_i32_0 : i32, i32
  }
  func.func @transform_2(%arg0: i32) -> (i32, i32) {
    %c0_i32 = arith.constant 0 : i32
    %c0_i32_0 = arith.constant 0 : i32
    %c0_i32_1 = arith.constant 0 : i32
    return %c0_i32, %c0_i32_0 : i32, i32
  }
  func.func @transform_3(%arg0: i32) -> (i32, i32) {
    %c0_i32 = arith.constant 0 : i32
    %c0_i32_0 = arith.constant 0 : i32
    return %arg0, %c0_i32 : i32, i32
  }
}

module attributes {stable_mosaic.version = 11 : i64} {
  func.func @_conv_matmul_kernel(%arg0: i32, %arg1: memref<2x1152xbf16, #tpu.memory_space<vmem>>, %arg2: memref<1152x128xbf16, #tpu.memory_space<vmem>>, %arg3: memref<1x128xf32, #tpu.memory_space<vmem>>, %arg4: memref<2x128xbf16, #tpu.memory_space<vmem>>) attributes {dimension_semantics = [#tpu.dimension_semantics<parallel>], iteration_bounds = array<i64: 1>, scalar_prefetch = 0 : i64, scratch_operands = 0 : i64, tpu.core_type = #tpu.core_type<tc>, window_params = [{transform_indices = @transform_0, window_bounds = array<i64: 2, 1152>}, {pipeline_mode = #tpu.pipeline_mode<synchronous>, transform_indices = @transform_1, window_bounds = array<i64: 1152, 128>}, {pipeline_mode = #tpu.pipeline_mode<synchronous>, transform_indices = @transform_2, window_bounds = array<i64: 1, 128>}, {transform_indices = @transform_3, window_bounds = array<i64: 2, 128>}]} {
    %c0 = arith.constant 0 : index
    %c0_0 = arith.constant 0 : index
    %0 = vector.load %arg1[%c0, %c0_0] : memref<2x1152xbf16, #tpu.memory_space<vmem>>, vector<2x1152xbf16>
    %c0_1 = arith.constant 0 : index
    %c0_2 = arith.constant 0 : index
    %1 = vector.load %arg2[%c0_1, %c0_2] : memref<1152x128xbf16, #tpu.memory_space<vmem>>, vector<1152x128xbf16>
    %cst = arith.constant dense<0.000000e+00> : vector<2x128xf32>
    %2 = tpu.matmul %0, %1, %cst {dimension_numbers = #tpu.dot_dimension_numbers<[1], [0], [0], [1], [0, 0, 1, 1], [], []>} : vector<2x1152xbf16>, vector<1152x128xbf16>, vector<2x128xf32> -> vector<2x128xf32>
    %c0_3 = arith.constant 0 : index
    %c0_4 = arith.constant 0 : index
    %3 = vector.load %arg3[%c0_3, %c0_4] : memref<1x128xf32, #tpu.memory_space<vmem>>, vector<1x128xf32>
    %4 = vector.broadcast %3 : vector<1x128xf32> to vector<2x128xf32>
    %5 = arith.addf %2, %4 : vector<2x128xf32>
    %cst_5 = arith.constant 0.000000e+00 : f32
    %6 = vector.broadcast %cst_5 : f32 to vector<2x128xf32>
    %7 = arith.maximumf %5, %6 : vector<2x128xf32>
    %8 = arith.truncf %7 : vector<2x128xf32> to vector<2x128xbf16>
    %c0_6 = arith.constant 0 : index
    %c0_7 = arith.constant 0 : index
    %9 = vector.load %arg4[%c0_6, %c0_7] : memref<2x128xbf16, #tpu.memory_space<vmem>>, vector<2x128xbf16>
    tpu.vector_store %arg4[%c0_6, %c0_7], %8 {strides = array<i32>} : memref<2x128xbf16, #tpu.memory_space<vmem>>, vector<2x128xbf16>,
    return
  }
  func.func @transform_0(%arg0: i32) -> (i32, i32) {
    %c0_i32 = arith.constant 0 : i32
    %c0_i32_0 = arith.constant 0 : i32
    return %arg0, %c0_i32 : i32, i32
  }
  func.func @transform_1(%arg0: i32) -> (i32, i32) {
    %c0_i32 = arith.constant 0 : i32
    %c0_i32_0 = arith.constant 0 : i32
    %c0_i32_1 = arith.constant 0 : i32
    return %c0_i32, %c0_i32_0 : i32, i32
  }
  func.func @transform_2(%arg0: i32) -> (i32, i32) {
    %c0_i32 = arith.constant 0 : i32
    %c0_i32_0 = arith.constant 0 : i32
    %c0_i32_1 = arith.constant 0 : i32
    return %c0_i32, %c0_i32_0 : i32, i32
  }
  func.func @transform_3(%arg0: i32) -> (i32, i32) {
    %c0_i32 = arith.constant 0 : i32
    %c0_i32_0 = arith.constant 0 : i32
    return %arg0, %c0_i32 : i32, i32
  }
}

module attributes {stable_mosaic.version = 11 : i64} {
  func.func @_conv_matmul_kernel(%arg0: i32, %arg1: memref<2x1152xbf16, #tpu.memory_space<vmem>>, %arg2: memref<1152x128xbf16, #tpu.memory_space<vmem>>, %arg3: memref<1x128xf32, #tpu.memory_space<vmem>>, %arg4: memref<2x128xbf16, #tpu.memory_space<vmem>>, %arg5: memref<2x128xbf16, #tpu.memory_space<vmem>>) attributes {dimension_semantics = [#tpu.dimension_semantics<parallel>], iteration_bounds = array<i64: 1>, scalar_prefetch = 0 : i64, scratch_operands = 0 : i64, tpu.core_type = #tpu.core_type<tc>, window_params = [{transform_indices = @transform_0, window_bounds = array<i64: 2, 1152>}, {pipeline_mode = #tpu.pipeline_mode<synchronous>, transform_indices = @transform_1, window_bounds = array<i64: 1152, 128>}, {pipeline_mode = #tpu.pipeline_mode<synchronous>, transform_indices = @transform_2, window_bounds = array<i64: 1, 128>}, {transform_indices = @transform_3, window_bounds = array<i64: 2, 128>}, {transform_indices = @transform_4, window_bounds = array<i64: 2, 128>}]} {
    %c0 = arith.constant 0 : index
    %c0_0 = arith.constant 0 : index
    %0 = vector.load %arg1[%c0, %c0_0] : memref<2x1152xbf16, #tpu.memory_space<vmem>>, vector<2x1152xbf16>
    %c0_1 = arith.constant 0 : index
    %c0_2 = arith.constant 0 : index
    %1 = vector.load %arg2[%c0_1, %c0_2] : memref<1152x128xbf16, #tpu.memory_space<vmem>>, vector<1152x128xbf16>
    %cst = arith.constant dense<0.000000e+00> : vector<2x128xf32>
    %2 = tpu.matmul %0, %1, %cst {dimension_numbers = #tpu.dot_dimension_numbers<[1], [0], [0], [1], [0, 0, 1, 1], [], []>} : vector<2x1152xbf16>, vector<1152x128xbf16>, vector<2x128xf32> -> vector<2x128xf32>
    %c0_3 = arith.constant 0 : index
    %c0_4 = arith.constant 0 : index
    %3 = vector.load %arg3[%c0_3, %c0_4] : memref<1x128xf32, #tpu.memory_space<vmem>>, vector<1x128xf32>
    %4 = vector.broadcast %3 : vector<1x128xf32> to vector<2x128xf32>
    %5 = arith.addf %2, %4 : vector<2x128xf32>
    %cst_5 = arith.constant 0.000000e+00 : f32
    %6 = vector.broadcast %cst_5 : f32 to vector<2x128xf32>
    %7 = arith.maximumf %5, %6 : vector<2x128xf32>
    %c0_6 = arith.constant 0 : index
    %c0_7 = arith.constant 0 : index
    %8 = vector.load %arg4[%c0_6, %c0_7] : memref<2x128xbf16, #tpu.memory_space<vmem>>, vector<2x128xbf16>
    %9 = arith.extf %8 : vector<2x128xbf16> to vector<2x128xf32>
    %10 = arith.addf %7, %9 : vector<2x128xf32>
    %11 = arith.truncf %10 : vector<2x128xf32> to vector<2x128xbf16>
    %c0_8 = arith.constant 0 : index
    %c0_9 = arith.constant 0 : index
    %12 = vector.load %arg5[%c0_8, %c0_9] : memref<2x128xbf16, #tpu.memory_space<vmem>>, vector<2x128xbf16>
    tpu.vector_store %arg5[%c0_8, %c0_9], %11 {strides = array<i32>} : memref<2x128xbf16, #tpu.memory_space<vmem>>, vector<2x128xbf16>,
    return
  }
  func.func @transform_0(%arg0: i32) -> (i32, i32) {
    %c0_i32 = arith.constant 0 : i32
    %c0_i32_0 = arith.constant 0 : i32
    return %arg0, %c0_i32 : i32, i32
  }
  func.func @transform_1(%arg0: i32) -> (i32, i32) {
    %c0_i32 = arith.constant 0 : i32
    %c0_i32_0 = arith.constant 0 : i32
    %c0_i32_1 = arith.constant 0 : i32
    return %c0_i32, %c0_i32_0 : i32, i32
  }
  func.func @transform_2(%arg0: i32) -> (i32, i32) {
    %c0_i32 = arith.constant 0 : i32
    %c0_i32_0 = arith.constant 0 : i32
    %c0_i32_1 = arith.constant 0 : i32
    return %c0_i32, %c0_i32_0 : i32, i32
  }
  func.func @transform_3(%arg0: i32) -> (i32, i32) {
    %c0_i32 = arith.constant 0 : i32
    %c0_i32_0 = arith.constant 0 : i32
    return %arg0, %c0_i32 : i32, i32
  }
  func.func @transform_4(%arg0: i32) -> (i32, i32) {
    %c0_i32 = arith.constant 0 : i32
    %c0_i32_0 = arith.constant 0 : i32
    return %arg0, %c0_i32 : i32, i32
  }
}

</mosaic_0001>

<bundles_post_ra>
// kernel: feature_net_forward.13
= control target key start
LH: loop header
LB: loop body
LE: loop exit
PB: predicated region body
PF: predicated region fallthrough
CT: control target
= control target key end

     0   :  { %s4137_s12 = smov 0   ;;  %s4139_s13 = smov 0   ;;  %s4788_s0 = inlined_call_operand.vmem [shape: bf16[10368,256], index: 0, kind: input, shape index: {}]   ;;  %s4789_s1 = inlined_call_operand.vmem [shape: bf16[256,128], index: 1, kind: input, shape index: {}]   ;;  %s4790_s2 = inlined_call_operand.vmem [shape: f32[1,128], index: 2, kind: input, shape index: {}]   ;;  %s4791_s3 = inlined_call_operand.vmem [shape: bf16[10368,128], index: 3, kind: output, shape index: {}]  }
   0x1   :  { %s4141_s14 = smov 0  }
   0x2 LB: > { %s4150_s15 = sadd.s32 4294967295, %s4082_s14   ;;  %s4152_s16 = sadd.s32 1, %s4082_s14   ;;  %s4082_s14 = sphi %s4141_s14, %s4798_s14   ;;  %s4078_s13 = sphi %s4139_s13, %s4797_s13   ;;  %s4074_s12 = sphi %s4137_s12, %s4796_s12  }
   0x3   : > { %s85_s17 = ssub.s32 %s4082_s14, %s4152_s16  ;;  %s88_s18 = sadd.s32 1, %s4078_s13 }
   0x4   : > { %p86_p0 = scmp.eq.s32.totalorder %s85_s17, 0  ;;  %p98_p1 = scmp.ne.s32.totalorder %s4078_s13, %s4074_s12 }
   0x5   : > { %p99_p2 = scmp.eq.s32.totalorder %s4150_s15, 10  ;;  %p2888_p3 = scmp.ge.s32.totalorder %s4082_s14, 1 }
   0x6   : > { %s4160_s19 = scalar_select %p86_p0, %s4078_s13, %s88_s18  }
   0x7   : > { %p4162_p4 = por %p99_p2, %p98_p1  ;;  %p149_p5 = scmp.lt.s32.totalorder %s4082_s14, 12 }
   0x9   : > { %p150_p6 = pnand %p2888_p3, %p149_p5 }
   0xa   : > { %s4172_s23 = sshll.u32 (!%p150_p6), %s4150_s15, 7  ;;  %s175_s21 = sand.u32 (!%p150_p6), 1, %s4074_s12  }
   0xb   : > { %153 = sbr.rel (%p150_p6) target bundleno = 614 (0x266), region = 32  ;;  %p184_p7 = scmp.lt.s32.totalorder (!%p150_p6), %s4172_s23, 1295 }
   0xc   : > { %s2889_s22 = sshll.u32 (!%p150_p6), %s175_s21, 9 }
   0xd   : > { %s4372_s12 = scalar_lea.vmem (!%p150_p6), [#allocation2], %s2889_s22  }
  0x10   : > { %v3819_v0 = vld [vmem:[%s4789_s1 + $0x38] sm:$0xff]   ;;  %v4116_v1 = vmov 0   ;;  %v3820_v2 = vld [vmem:[%s4789_s1 + $0x30] sm:$0xff]   ;;  %v3821_v3 = vld [vmem:[%s4789_s1 + $0x28] sm:$0xff]   ;;  %s185_s28 = scalar_select %p184_p7, %s4172_s23, 1295 }
  0x11   : > { %1104 = vmatprep.subr.bf16.mxu0 %v4116_v1  ;;  %3698 = vmatprep.subr.bf16.mxu1 %v4116_v1  ;;  %v3822_v4 = vld [vmem:[%s4789_s1 + $0x20] sm:$0xff]   ;;  %v3823_v5 = vld [vmem:[%s4789_s1 + $0x18] sm:$0xff]   ;;  %v3824_v7 = vld [vmem:[%s4789_s1 + $0x10] sm:$0xff]   ;;  %s2425_s25 = ssub.s32 (%p4162_p4), 1296, %s4172_s23  ;;  %s3312_s26 = sshll.u32 (%p4162_p4), %s4150_s15, 9 }
  0x12   : > { %1105 = vmatpush1.bf16.msra.mxu0 %v3819_v0  ;;  %3714 = vmatpush1.bf16.msra.mxu1 %v3819_v0  ;;  %s3183_s4 = sshll.u32 %s185_s28, 3  ;;  %v3825_v9 = vld [vmem:[%s4789_s1 + $0x8] sm:$0xff]   ;;  %v3826_v10 = vld [vmem:[%s4789_s1] sm:$0xff]   ;;  %v3827_v11 = vld [vmem:[%s4789_s1 + $0x78] sm:$0xff]   ;;  %p2426_p8 = scmp.lt.s32.totalorder (%p4162_p4), %s2425_s25, 128 }
  0x13   : > { %1106 = vmatprep.subr.bf16.mxu0 %v4116_v1  ;;  %3699 = vmatprep.subr.bf16.mxu1 %v4116_v1  ;;  %s4197_s9 = scalar_lea.vmem %s4788_s0, %s3183_s4  ;;  %v3828_v12 = vld [vmem:[%s4789_s1 + $0x70] sm:$0xff]   ;;  %v3829_v13 = vld [vmem:[%s4789_s1 + $0x68] sm:$0xff]   ;;  %v3830_v14 = vld [vmem:[%s4789_s1 + $0x60] sm:$0xff]   ;;  %s4596_s29 = scalar_lea.vmem (%p4162_p4), %s4791_s3, %s3312_s26  }
  0x14   : > { %v3837_v6 = vld [vmem:[%s4197_s9 + $0x4] ss:$8 sps:$4 sm:$0xff]   ;;  %v3831_v15 = vld [vmem:[%s4789_s1 + $0x58] sm:$0xff]   ;;  %v3832_v16 = vld [vmem:[%s4789_s1 + $0x50] sm:$0xff]  }
  0x15   : > { %v3840_v8 = vld [vmem:[%s4197_s9 + $0x204] ss:$8 sps:$4 sm:$0xff]   ;;  %1136 = vmatprep.mubr.bf16.mxu0 %v3837_v6  ;;  %v3835_v19 = vld [vmem:[%s4197_s9] ss:$8 sps:$4 sm:$0xff]   ;;  %v3841_v21 = vld [vmem:[%s4197_s9 + $0x14] ss:$8 sps:$4 sm:$0xff]  }
  0x16   : > { %1107 = vmatpush1.bf16.msra.mxu0 %v3820_v2  ;;  %3715 = vmatpush1.bf16.msra.mxu1 %v3820_v2  ;;  %v3833_v17 = vld [vmem:[%s4789_s1 + $0x48] sm:$0xff]   ;;  %v3834_v18 = vld [vmem:[%s4789_s1 + $0x40] sm:$0xff]   ;;  %v3843_v22 = vld [vmem:[%s4197_s9 + $0x214] ss:$8 sps:$4 sm:$0xff]  }
  0x17   : > { %1108 = vmatprep.subr.bf16.mxu0 %v4116_v1  ;;  %3700 = vmatprep.subr.bf16.mxu1 %v4116_v1  ;;  %v3838_v20 = vld [vmem:[%s4197_s9 + $0x200] ss:$8 sps:$4 sm:$0xff]   ;;  %v3845_v23 = vld [vmem:[%s4197_s9 + $0x10] ss:$8 sps:$4 sm:$0xff]   ;;  %v3847_v25 = vld [vmem:[%s4197_s9 + $0x24] ss:$8 sps:$4 sm:$0xff]  }
  0x18   : > { %1392 = vmatprep.mubr.bf16.mxu1 %v3840_v8  ;;  %v3846_v24 = vld [vmem:[%s4197_s9 + $0x210] ss:$8 sps:$4 sm:$0xff]   ;;  %v3849_v26 = vld [vmem:[%s4197_s9 + $0x224] ss:$8 sps:$4 sm:$0xff]   ;;  %v3851_v27 = vld [vmem:[%s4197_s9 + $0x20] ss:$8 sps:$4 sm:$0xff]  }
  0x19   : > { %v3852_v28 = vld [vmem:[%s4197_s9 + $0x220] ss:$8 sps:$4 sm:$0xff]   ;;  %v3853_v29 = vld [vmem:[%s4197_s9 + $0x34] ss:$8 sps:$4 sm:$0xff]   ;;  %v3857_v31 = vld [vmem:[%s4197_s9 + $0x30] ss:$8 sps:$4 sm:$0xff]  }
  0x1a   : > { %1109 = vmatpush1.bf16.msra.mxu0 %v3821_v3  ;;  %3716 = vmatpush1.bf16.msra.mxu1 %v3821_v3  ;;  %v3855_v30 = vld [vmem:[%s4197_s9 + $0x234] ss:$8 sps:$4 sm:$0xff]   ;;  %v3858_v32 = vld [vmem:[%s4197_s9 + $0x230] ss:$8 sps:$4 sm:$0xff]   ;;  %v3859_v33 = vld [vmem:[%s4197_s9 + $0x44] ss:$8 sps:$4 sm:$0xff]  }
  0x1b   : > { %1110 = vmatprep.subr.bf16.mxu0 %v4116_v1  ;;  %3701 = vmatprep.subr.bf16.mxu1 %v4116_v1  ;;  %v3861_v34 = vld [vmem:[%s4197_s9 + $0x244] ss:$8 sps:$4 sm:$0xff]   ;;  %v3863_v35 = vld [vmem:[%s4197_s9 + $0x40] ss:$8 sps:$4 sm:$0xff]   ;;  %v3865_v37 = vld [vmem:[%s4197_s9 + $0x54] ss:$8 sps:$4 sm:$0xff]  }
  0x1c   : > { %v3864_v36 = vld [vmem:[%s4197_s9 + $0x240] ss:$8 sps:$4 sm:$0xff]   ;;  %v3867_v38 = vld [vmem:[%s4197_s9 + $0x254] ss:$8 sps:$4 sm:$0xff]   ;;  %v3869_v39 = vld [vmem:[%s4197_s9 + $0x50] ss:$8 sps:$4 sm:$0xff]  }
  0x1d   : > { %v3870_v40 = vld [vmem:[%s4197_s9 + $0x250] ss:$8 sps:$4 sm:$0xff]   ;;  %v3871_v41 = vld [vmem:[%s4197_s9 + $0x64] ss:$8 sps:$4 sm:$0xff]   ;;  %v3875_v43 = vld [vmem:[%s4197_s9 + $0x60] ss:$8 sps:$4 sm:$0xff]  }
  0x1e   : > { %1111 = vmatpush1.bf16.msra.mxu0 %v3822_v4  ;;  %3717 = vmatpush1.bf16.msra.mxu1 %v3822_v4  ;;  %v3873_v42 = vld [vmem:[%s4197_s9 + $0x264] ss:$8 sps:$4 sm:$0xff]   ;;  %v3876_v44 = vld [vmem:[%s4197_s9 + $0x260] ss:$8 sps:$4 sm:$0xff]   ;;  %v3877_v45 = vld [vmem:[%s4197_s9 + $0x74] ss:$8 sps:$4 sm:$0xff]  }
  0x1f   : > { %1112 = vmatprep.subr.bf16.mxu0 %v4116_v1  ;;  %3702 = vmatprep.subr.bf16.mxu1 %v4116_v1  ;;  %v3879_v46 = vld [vmem:[%s4197_s9 + $0x274] ss:$8 sps:$4 sm:$0xff]   ;;  %v3881_v47 = vld [vmem:[%s4197_s9 + $0x70] ss:$8 sps:$4 sm:$0xff]   ;;  %v3883_v49 = vld [vmem:[%s4197_s9 + $0x84] ss:$8 sps:$4 sm:$0xff]  }
  0x20   : > { %v3882_v48 = vld [vmem:[%s4197_s9 + $0x270] ss:$8 sps:$4 sm:$0xff]   ;;  %v3885_v50 = vld [vmem:[%s4197_s9 + $0x284] ss:$8 sps:$4 sm:$0xff]   ;;  %v3887_v51 = vld [vmem:[%s4197_s9 + $0x80] ss:$8 sps:$4 sm:$0xff]  }
  0x21   : > { %v3888_v52 = vld [vmem:[%s4197_s9 + $0x280] ss:$8 sps:$4 sm:$0xff]   ;;  %v3889_v53 = vld [vmem:[%s4197_s9 + $0x94] ss:$8 sps:$4 sm:$0xff]   ;;  %v3893_v55 = vld [vmem:[%s4197_s9 + $0x90] ss:$8 sps:$4 sm:$0xff]  }
  0x22   : > { %1113 = vmatpush1.bf16.msra.mxu0 %v3823_v5  ;;  %3718 = vmatpush1.bf16.msra.mxu1 %v3823_v5  ;;  %v3891_v54 = vld [vmem:[%s4197_s9 + $0x294] ss:$8 sps:$4 sm:$0xff]   ;;  %v3894_v56 = vld [vmem:[%s4197_s9 + $0x290] ss:$8 sps:$4 sm:$0xff]   ;;  %v3895_v57 = vld [vmem:[%s4197_s9 + $0xa4] ss:$8 sps:$4 sm:$0xff]  }
  0x23   : > { %1114 = vmatprep.subr.bf16.mxu0 %v4116_v1  ;;  %3703 = vmatprep.subr.bf16.mxu1 %v4116_v1  ;;  %v3897_v58 = vld [vmem:[%s4197_s9 + $0x2a4] ss:$8 sps:$4 sm:$0xff]   ;;  %v3899_v59 = vld [vmem:[%s4197_s9 + $0xa0] ss:$8 sps:$4 sm:$0xff]   ;;  %v3901_v61 = vld [vmem:[%s4197_s9 + $0xb4] ss:$8 sps:$4 sm:$0xff]  }
  0x24   : > { %v3900_v60 = vld [vmem:[%s4197_s9 + $0x2a0] ss:$8 sps:$4 sm:$0xff]   ;;  %v3903_v62 = vld [vmem:[%s4197_s9 + $0x2b4] ss:$8 sps:$4 sm:$0xff]   ;;  %v3905_v63 = vld [vmem:[%s4197_s9 + $0xb0] ss:$8 sps:$4 sm:$0xff]  }
  0x25   : > { %v3906_v0 = vld [vmem:[%s4197_s9 + $0x2b0] ss:$8 sps:$4 sm:$0xff]   ;;  %v3909_v2 = vld [vmem:[%s4197_s9 + $0x2c4] ss:$8 sps:$4 sm:$0xff]   ;;  %v3911_v3 = vld [vmem:[%s4197_s9 + $0xc0] ss:$8 sps:$4 sm:$0xff]  }
  0x26   : > { %1115 = vmatpush1.bf16.msra.mxu0 %v3824_v7  ;;  %3719 = vmatpush1.bf16.msra.mxu1 %v3824_v7  ;;  %v3912_v4 = vld [vmem:[%s4197_s9 + $0x2c0] ss:$8 sps:$4 sm:$0xff]   ;;  %v3913_v5 = vld [vmem:[%s4197_s9 + $0xd4] ss:$8 sps:$4 sm:$0xff]   ;;  %v3917_v7 = vld [vmem:[%s4197_s9 + $0xd0] ss:$8 sps:$4 sm:$0xff]  }
  0x27   : > { %1116 = vmatprep.subr.bf16.mxu0 %v4116_v1  ;;  %3704 = vmatprep.subr.bf16.mxu1 %v4116_v1  ;;  %v3915_v6 = vld [vmem:[%s4197_s9 + $0x2d4] ss:$8 sps:$4 sm:$0xff]   ;;  %v3918_v8 = vld [vmem:[%s4197_s9 + $0x2d0] ss:$8 sps:$4 sm:$0xff]  }
  0x2a   : > { %1117 = vmatpush1.bf16.msra.mxu0 %v3825_v9  ;;  %3720 = vmatpush1.bf16.msra.mxu1 %v3825_v9  ;;  %v3919_v9 = vld [vmem:[%s4197_s9 + $0xe4] ss:$8 sps:$4 sm:$0xff]  }
  0x2b   : > { %1118 = vmatprep.subr.bf16.mxu0 %v4116_v1  ;;  %3705 = vmatprep.subr.bf16.mxu1 %v4116_v1 }
  0x2e   : > { %1119 = vmatpush1.bf16.msra.mxu0 %v3826_v10  ;;  %3721 = vmatpush1.bf16.msra.mxu1 %v3826_v10  ;;  %v3921_v10 = vld [vmem:[%s4197_s9 + $0x2e4] ss:$8 sps:$4 sm:$0xff]  }
  0x2f   : > { %1120 = vmatprep.subr.bf16.mxu0 %v4116_v1  ;;  %3706 = vmatprep.subr.bf16.mxu1 %v4116_v1 }
  0x32   : > { %1121 = vmatpush2.bf16.msra.mxu0 %v3827_v11  ;;  %3722 = vmatpush2.bf16.msra.mxu1 %v3827_v11  ;;  %v3923_v11 = vld [vmem:[%s4197_s9 + $0xe0] ss:$8 sps:$4 sm:$0xff]  }
  0x33   : > { %1122 = vmatprep.subr.bf16.mxu0 %v4116_v1  ;;  %3707 = vmatprep.subr.bf16.mxu1 %v4116_v1 }
  0x36   : > { %1123 = vmatpush2.bf16.msra.mxu0 %v3828_v12  ;;  %3723 = vmatpush2.bf16.msra.mxu1 %v3828_v12  ;;  %v3924_v12 = vld [vmem:[%s4197_s9 + $0x2e0] ss:$8 sps:$4 sm:$0xff]  }
  0x37   : > { %1124 = vmatprep.subr.bf16.mxu0 %v4116_v1  ;;  %3708 = vmatprep.subr.bf16.mxu1 %v4116_v1 }
  0x3a   : > { %1125 = vmatpush2.bf16.msra.mxu0 %v3829_v13  ;;  %3724 = vmatpush2.bf16.msra.mxu1 %v3829_v13  ;;  %v3925_v13 = vld [vmem:[%s4197_s9 + $0xf4] ss:$8 sps:$4 sm:$0xff]  }
  0x3b   : > { %1126 = vmatprep.subr.bf16.mxu0 %v4116_v1  ;;  %3709 = vmatprep.subr.bf16.mxu1 %v4116_v1 }
  0x3e   : > { %1127 = vmatpush2.bf16.msra.mxu0 %v3830_v14  ;;  %3725 = vmatpush2.bf16.msra.mxu1 %v3830_v14  ;;  %v3927_v14 = vld [vmem:[%s4197_s9 + $0x2f4] ss:$8 sps:$4 sm:$0xff]  }
  0x3f   : > { %1128 = vmatprep.subr.bf16.mxu0 %v4116_v1  ;;  %3710 = vmatprep.subr.bf16.mxu1 %v4116_v1 }
  0x42   : > { %1129 = vmatpush2.bf16.msra.mxu0 %v3831_v15  ;;  %3726 = vmatpush2.bf16.msra.mxu1 %v3831_v15  ;;  %v3929_v15 = vld [vmem:[%s4197_s9 + $0xf0] ss:$8 sps:$4 sm:$0xff]  }
  0x43   : > { %1130 = vmatprep.subr.bf16.mxu0 %v4116_v1  ;;  %3711 = vmatprep.subr.bf16.mxu1 %v4116_v1 }
  0x46   : > { %1131 = vmatpush2.bf16.msra.mxu0 %v3832_v16  ;;  %3727 = vmatpush2.bf16.msra.mxu1 %v3832_v16  ;;  %v3930_v16 = vld [vmem:[%s4197_s9 + $0x2f0] ss:$8 sps:$4 sm:$0xff]  }
  0x47   : > { %1132 = vmatprep.subr.bf16.mxu0 %v4116_v1  ;;  %3712 = vmatprep.subr.bf16.mxu1 %v4116_v1 }
  0x4a   : > { %1133 = vmatpush2.bf16.msra.mxu0 %v3833_v17  ;;  %3728 = vmatpush2.bf16.msra.mxu1 %v3833_v17  ;;  %v3931_v17 = vld [vmem:[%s4197_s9 + $0x104] ss:$8 sps:$4 sm:$0xff]  }
  0x4b   : > { %1134 = vmatprep.subr.bf16.mxu0 %v4116_v1  ;;  %3713 = vmatprep.subr.bf16.mxu1 %v4116_v1  ;;  %v3907_v1 = vld [vmem:[%s4197_s9 + $0xc4] ss:$8 sps:$4 sm:$0xff]  }
  0x4e   : > { %1135 = vmatpush2.bf16.msra.mxu0 %v3834_v18  ;;  %3729 = vmatpush2.bf16.msra.mxu1 %v3834_v18  ;;  %v3933_v18 = vld [vmem:[%s4197_s9 + $0x304] ss:$8 sps:$4 sm:$0xff]  }
  0x51   : > { %1137 = vmatmul.mubr.bf16.vlgmr.msra.gmra.mxu0 %v3835_v19  ;;  %1393 = vmatmul.mubr.bf16.vlgmr.msra.gmra.mxu1 %v3838_v20  ;;  %v3935_v19 = vld [vmem:[%s4197_s9 + $0x100] ss:$8 sps:$4 sm:$0xff]  }
  0x52   : > { %1144 = vmatprep.mubr.bf16.mxu0 %v3841_v21  ;;  %1400 = vmatprep.mubr.bf16.mxu1 %v3843_v22  ;;  %v3936_v20 = vld [vmem:[%s4197_s9 + $0x300] ss:$8 sps:$4 sm:$0xff]   ;;  %v3937_v21 = vld [vmem:[%s4197_s9 + $0x114] ss:$8 sps:$4 sm:$0xff]  }
  0x53   : > { %v3939_v22 = vld [vmem:[%s4197_s9 + $0x314] ss:$8 sps:$4 sm:$0xff]  }
  0x59   : > { %1145 = vmatmul.mubr.bf16.gmra.mxu0 %v3845_v23  ;;  %1401 = vmatmul.mubr.bf16.gmra.mxu1 %v3846_v24  ;;  %v3941_v23 = vld [vmem:[%s4197_s9 + $0x110] ss:$8 sps:$4 sm:$0xff]  }
  0x5a   : > { %1152 = vmatprep.mubr.bf16.mxu0 %v3847_v25  ;;  %1408 = vmatprep.mubr.bf16.mxu1 %v3849_v26  ;;  %v3942_v24 = vld [vmem:[%s4197_s9 + $0x310] ss:$8 sps:$4 sm:$0xff]   ;;  %v3943_v25 = vld [vmem:[%s4197_s9 + $0x124] ss:$8 sps:$4 sm:$0xff]  }
  0x5b   : > { %v3945_v26 = vld [vmem:[%s4197_s9 + $0x324] ss:$8 sps:$4 sm:$0xff]  }
  0x61   : > { %1153 = vmatmul.mubr.bf16.gmra.mxu0 %v3851_v27  ;;  %1409 = vmatmul.mubr.bf16.gmra.mxu1 %v3852_v28  ;;  %v3947_v27 = vld [vmem:[%s4197_s9 + $0x120] ss:$8 sps:$4 sm:$0xff]  }
  0x62   : > { %1160 = vmatprep.mubr.bf16.mxu0 %v3853_v29  ;;  %1416 = vmatprep.mubr.bf16.mxu1 %v3855_v30  ;;  %v3948_v28 = vld [vmem:[%s4197_s9 + $0x320] ss:$8 sps:$4 sm:$0xff]   ;;  %v3949_v29 = vld [vmem:[%s4197_s9 + $0x134] ss:$8 sps:$4 sm:$0xff]  }
  0x63   : > { %v3951_v30 = vld [vmem:[%s4197_s9 + $0x334] ss:$8 sps:$4 sm:$0xff]  }
  0x69   : > { %1161 = vmatmul.mubr.bf16.gmra.mxu0 %v3857_v31  ;;  %1417 = vmatmul.mubr.bf16.gmra.mxu1 %v3858_v32  ;;  %v3953_v31 = vld [vmem:[%s4197_s9 + $0x130] ss:$8 sps:$4 sm:$0xff]  }
  0x6a   : > { %1168 = vmatprep.mubr.bf16.mxu0 %v3859_v33  ;;  %1424 = vmatprep.mubr.bf16.mxu1 %v3861_v34  ;;  %v3954_v32 = vld [vmem:[%s4197_s9 + $0x330] ss:$8 sps:$4 sm:$0xff]   ;;  %v3955_v33 = vld [vmem:[%s4197_s9 + $0x144] ss:$8 sps:$4 sm:$0xff]  }
  0x6b   : > { %v3957_v34 = vld [vmem:[%s4197_s9 + $0x344] ss:$8 sps:$4 sm:$0xff]  }
  0x71   : > { %1169 = vmatmul.mubr.bf16.gmra.mxu0 %v3863_v35  ;;  %1425 = vmatmul.mubr.bf16.gmra.mxu1 %v3864_v36  ;;  %v3959_v35 = vld [vmem:[%s4197_s9 + $0x140] ss:$8 sps:$4 sm:$0xff]  }
  0x72   : > { %1176 = vmatprep.mubr.bf16.mxu0 %v3865_v37  ;;  %1432 = vmatprep.mubr.bf16.mxu1 %v3867_v38  ;;  %v3960_v36 = vld [vmem:[%s4197_s9 + $0x340] ss:$8 sps:$4 sm:$0xff]   ;;  %v3961_v37 = vld [vmem:[%s4197_s9 + $0x154] ss:$8 sps:$4 sm:$0xff]  }
  0x73   : > { %v3963_v38 = vld [vmem:[%s4197_s9 + $0x354] ss:$8 sps:$4 sm:$0xff]  }
  0x79   : > { %1177 = vmatmul.mubr.bf16.gmra.mxu0 %v3869_v39  ;;  %1433 = vmatmul.mubr.bf16.gmra.mxu1 %v3870_v40  ;;  %v3965_v39 = vld [vmem:[%s4197_s9 + $0x150] ss:$8 sps:$4 sm:$0xff]  }
  0x7a   : > { %1184 = vmatprep.mubr.bf16.mxu0 %v3871_v41  ;;  %1440 = vmatprep.mubr.bf16.mxu1 %v3873_v42  ;;  %v3966_v40 = vld [vmem:[%s4197_s9 + $0x350] ss:$8 sps:$4 sm:$0xff]   ;;  %v3967_v41 = vld [vmem:[%s4197_s9 + $0x164] ss:$8 sps:$4 sm:$0xff]  }
  0x7b   : > { %v3969_v42 = vld [vmem:[%s4197_s9 + $0x364] ss:$8 sps:$4 sm:$0xff]  }
  0x81   : > { %1185 = vmatmul.mubr.bf16.gmra.mxu0 %v3875_v43  ;;  %1441 = vmatmul.mubr.bf16.gmra.mxu1 %v3876_v44  ;;  %v3971_v43 = vld [vmem:[%s4197_s9 + $0x160] ss:$8 sps:$4 sm:$0xff]  }
  0x82   : > { %1192 = vmatprep.mubr.bf16.mxu0 %v3877_v45  ;;  %1448 = vmatprep.mubr.bf16.mxu1 %v3879_v46  ;;  %v3972_v44 = vld [vmem:[%s4197_s9 + $0x360] ss:$8 sps:$4 sm:$0xff]   ;;  %v3973_v45 = vld [vmem:[%s4197_s9 + $0x174] ss:$8 sps:$4 sm:$0xff]  }
  0x83   : > { %v3975_v46 = vld [vmem:[%s4197_s9 + $0x374] ss:$8 sps:$4 sm:$0xff]  }
  0x89   : > { %1193 = vmatmul.mubr.bf16.gmra.mxu0 %v3881_v47  ;;  %1449 = vmatmul.mubr.bf16.gmra.mxu1 %v3882_v48  ;;  %v3977_v47 = vld [vmem:[%s4197_s9 + $0x170] ss:$8 sps:$4 sm:$0xff]  }
  0x8a   : > { %1200 = vmatprep.mubr.bf16.mxu0 %v3883_v49  ;;  %1456 = vmatprep.mubr.bf16.mxu1 %v3885_v50  ;;  %v3978_v48 = vld [vmem:[%s4197_s9 + $0x370] ss:$8 sps:$4 sm:$0xff]   ;;  %v3979_v49 = vld [vmem:[%s4197_s9 + $0x184] ss:$8 sps:$4 sm:$0xff]  }
  0x8b   : > { %v3981_v50 = vld [vmem:[%s4197_s9 + $0x384] ss:$8 sps:$4 sm:$0xff]  }
  0x91   : > { %1201 = vmatmul.mubr.bf16.gmra.mxu0 %v3887_v51  ;;  %1457 = vmatmul.mubr.bf16.gmra.mxu1 %v3888_v52  ;;  %v3983_v51 = vld [vmem:[%s4197_s9 + $0x180] ss:$8 sps:$4 sm:$0xff]  }
  0x92   : > { %1208 = vmatprep.mubr.bf16.mxu0 %v3889_v53  ;;  %1464 = vmatprep.mubr.bf16.mxu1 %v3891_v54  ;;  %v3984_v52 = vld [vmem:[%s4197_s9 + $0x380] ss:$8 sps:$4 sm:$0xff]   ;;  %v3985_v53 = vld [vmem:[%s4197_s9 + $0x194] ss:$8 sps:$4 sm:$0xff]  }
  0x93   : > { %v3987_v54 = vld [vmem:[%s4197_s9 + $0x394] ss:$8 sps:$4 sm:$0xff]  }
  0x99   : > { %1209 = vmatmul.mubr.bf16.gmra.mxu0 %v3893_v55  ;;  %1465 = vmatmul.mubr.bf16.gmra.mxu1 %v3894_v56  ;;  %v4361_v55 = vld [vmem:[%s4790_s2] ss:$0 sm:$0xff] }
  0x9a   : > { %1216 = vmatprep.mubr.bf16.mxu0 %v3895_v57  ;;  %1472 = vmatprep.mubr.bf16.mxu1 %v3897_v58 }
  0xa1   : > { %1217 = vmatmul.mubr.bf16.gmra.mxu0 %v3899_v59  ;;  %1473 = vmatmul.mubr.bf16.gmra.mxu1 %v3900_v60 }
  0xa2   : > { %1224 = vmatprep.mubr.bf16.mxu0 %v3901_v61  ;;  %1480 = vmatprep.mubr.bf16.mxu1 %v3903_v62 }
  0xa9   : > { %1225 = vmatmul.mubr.bf16.gmra.mxu0 %v3905_v63  ;;  %1481 = vmatmul.mubr.bf16.gmra.mxu1 %v3906_v0  ;;  %v3989_v0 = vld [vmem:[%s4197_s9 + $0x190] ss:$8 sps:$4 sm:$0xff]  }
  0xaa   : > { %1232 = vmatprep.mubr.bf16.mxu0 %v3907_v1  ;;  %1488 = vmatprep.mubr.bf16.mxu1 %v3909_v2  ;;  %v3990_v1 = vld [vmem:[%s4197_s9 + $0x390] ss:$8 sps:$4 sm:$0xff]  }
  0xb1   : > { %1233 = vmatmul.mubr.bf16.gmra.mxu0 %v3911_v3  ;;  %1489 = vmatmul.mubr.bf16.gmra.mxu1 %v3912_v4  ;;  %v3991_v4 = vld [vmem:[%s4197_s9 + $0x1a4] ss:$8 sps:$4 sm:$0xff]  }
  0xb2   : > { %1240 = vmatprep.mubr.bf16.mxu0 %v3913_v5  ;;  %1496 = vmatprep.mubr.bf16.mxu1 %v3915_v6 }
  0xb9   : > { %1241 = vmatmul.mubr.bf16.gmra.mxu0 %v3917_v7  ;;  %1497 = vmatmul.mubr.bf16.gmra.mxu1 %v3918_v8  ;;  %v3993_v7 = vld [vmem:[%s4197_s9 + $0x3a4] ss:$8 sps:$4 sm:$0xff]  }
  0xba   : > { %1248 = vmatprep.mubr.bf16.mxu0 %v3919_v9  ;;  %1504 = vmatprep.mubr.bf16.mxu1 %v3921_v10 }
  0xc1   : > { %1249 = vmatmul.mubr.bf16.gmra.mxu0 %v3923_v11  ;;  %1505 = vmatmul.mubr.bf16.gmra.mxu1 %v3924_v12 }
  0xc2   : > { %1256 = vmatprep.mubr.bf16.mxu0 %v3925_v13  ;;  %1512 = vmatprep.mubr.bf16.mxu1 %v3927_v14 }
  0xc9   : > { %1257 = vmatmul.mubr.bf16.gmra.mxu0 %v3929_v15  ;;  %1513 = vmatmul.mubr.bf16.gmra.mxu1 %v3930_v16 }
  0xca   : > { %1264 = vmatprep.mubr.bf16.mxu0 %v3931_v17  ;;  %1520 = vmatprep.mubr.bf16.mxu1 %v3933_v18 }
  0xd1   : > { %1265 = vmatmul.mubr.bf16.gmra.mxu0 %v3935_v19  ;;  %1521 = vmatmul.mubr.bf16.gmra.mxu1 %v3936_v20 }
  0xd2   : > { %1272 = vmatprep.mubr.bf16.mxu0 %v3937_v21  ;;  %1528 = vmatprep.mubr.bf16.mxu1 %v3939_v22  ;;  %v3995_v22 = vld [vmem:[%s4197_s9 + $0x1a0] ss:$8 sps:$4 sm:$0xff]  }
  0xd9   : > { %1273 = vmatmul.mubr.bf16.gmra.mxu0 %v3941_v23  ;;  %1529 = vmatmul.mubr.bf16.gmra.mxu1 %v3942_v24  ;;  %v3996_v23 = vld [vmem:[%s4197_s9 + $0x3a0] ss:$8 sps:$4 sm:$0xff]  }
  0xda   : > { %1280 = vmatprep.mubr.bf16.mxu0 %v3943_v25  ;;  %1536 = vmatprep.mubr.bf16.mxu1 %v3945_v26  ;;  %v3997_v26 = vld [vmem:[%s4197_s9 + $0x1b4] ss:$8 sps:$4 sm:$0xff]  }
  0xe1   : > { %1281 = vmatmul.mubr.bf16.gmra.mxu0 %v3947_v27  ;;  %1537 = vmatmul.mubr.bf16.gmra.mxu1 %v3948_v28 }
  0xe2   : > { %1288 = vmatprep.mubr.bf16.mxu0 %v3949_v29  ;;  %1544 = vmatprep.mubr.bf16.mxu1 %v3951_v30  ;;  %v3999_v29 = vld [vmem:[%s4197_s9 + $0x3b4] ss:$8 sps:$4 sm:$0xff]  }
  0xe9   : > { %1289 = vmatmul.mubr.bf16.gmra.mxu0 %v3953_v31  ;;  %1545 = vmatmul.mubr.bf16.gmra.mxu1 %v3954_v32 }
  0xea   : > { %1296 = vmatprep.mubr.bf16.mxu0 %v3955_v33  ;;  %1552 = vmatprep.mubr.bf16.mxu1 %v3957_v34 }
  0xf1   : > { %1297 = vmatmul.mubr.bf16.gmra.mxu0 %v3959_v35  ;;  %1553 = vmatmul.mubr.bf16.gmra.mxu1 %v3960_v36 }
  0xf2   : > { %1304 = vmatprep.mubr.bf16.mxu0 %v3961_v37  ;;  %1560 = vmatprep.mubr.bf16.mxu1 %v3963_v38 }
  0xf9   : > { %1305 = vmatmul.mubr.bf16.gmra.mxu0 %v3965_v39  ;;  %1561 = vmatmul.mubr.bf16.gmra.mxu1 %v3966_v40 }
  0xfa   : > { %1312 = vmatprep.mubr.bf16.mxu0 %v3967_v41  ;;  %1568 = vmatprep.mubr.bf16.mxu1 %v3969_v42 }
 0x101   : > { %1313 = vmatmul.mubr.bf16.gmra.mxu0 %v3971_v43  ;;  %1569 = vmatmul.mubr.bf16.gmra.mxu1 %v3972_v44  ;;  %v4001_v44 = vld [vmem:[%s4197_s9 + $0x1b0] ss:$8 sps:$4 sm:$0xff]  }
 0x102   : > { %1320 = vmatprep.mubr.bf16.mxu0 %v3973_v45  ;;  %1576 = vmatprep.mubr.bf16.mxu1 %v3975_v46  ;;  %v4002_v45 = vld [vmem:[%s4197_s9 + $0x3b0] ss:$8 sps:$4 sm:$0xff]  }
 0x109   : > { %1321 = vmatmul.mubr.bf16.gmra.mxu0 %v3977_v47  ;;  %1577 = vmatmul.mubr.bf16.gmra.mxu1 %v3978_v48  ;;  %v4005_v48 = vld [vmem:[%s4197_s9 + $0x1c4] ss:$8 sps:$4 sm:$0xff]  }
 0x10a   : > { %1328 = vmatprep.mubr.bf16.mxu0 %v3979_v49  ;;  %1584 = vmatprep.mubr.bf16.mxu1 %v3981_v50 }
 0x111   : > { %v1138_v56 = vpop.f32.mrf.mxu0  ;;  %1329 = vmatmul.mubr.bf16.gmra.mxu0 %v3983_v51  ;;  %v1394_v57 = vpop.f32.mrf.mxu1  ;;  %1585 = vmatmul.mubr.bf16.gmra.mxu1 %v3984_v52  ;;  %v4008_v51 = vld [vmem:[%s4197_s9 + $0x3c4] ss:$8 sps:$4 sm:$0xff]  }
 0x112   : > { %1336 = vmatprep.mubr.bf16.mxu0 %v3985_v53  ;;  %1592 = vmatprep.mubr.bf16.mxu1 %v3987_v54  ;;  %v1139_v60 = vadd.f32 %v4361_v55, %v1138_v56  ;;  %v1395_v61 = vadd.f32 %v4361_v55, %v1394_v57 }
 0x113   : > { %v1140_v58 = vpop.f32.mrf.mxu0  ;;  %v1396_v59 = vpop.f32.mrf.mxu1 }
 0x114   : > { %v1649_v8 = vmax.f32 %v1139_v60, 0.0  ;;  %v1713_v9 = vmax.f32 %v1395_v61, 0.0 }
 0x115   : > { %v1141_v62 = vpop.f32.mrf.mxu0  ;;  %v1397_v63 = vpop.f32.mrf.mxu1 }
 0x116   : > { %v1142_v2 = vadd.f32 %v4361_v55, %v1141_v62  ;;  %v1398_v3 = vadd.f32 %v4361_v55, %v1397_v63 }
 0x117   : > { %v1143_v5 = vpop.f32.mrf.mxu0  ;;  %v1399_v6 = vpop.f32.mrf.mxu1 }
 0x118   : > { %v1650_v10 = vmax.f32 %v1142_v2, 0.0  ;;  %v1714_v11 = vmax.f32 %v1398_v3, 0.0  ;;  %v4003_v3 = vld [vmem:[%s4197_s9 + $0x1c0] ss:$8 sps:$4 sm:$0xff]  }
 0x119   : > { %v1146_v12 = vpop.f32.mrf.mxu0  ;;  %1337 = vmatmul.mubr.bf16.gmra.mxu0 %v3989_v0  ;;  %v1402_v13 = vpop.f32.mrf.mxu1  ;;  %1593 = vmatmul.mubr.bf16.gmra.mxu1 %v3990_v1 }
 0x11a   : > { %v3318_v14 = vpack.c.bf16 %v1650_v10, %v1649_v8  ;;  %v3478_v15 = vpack.c.bf16 %v1714_v11, %v1713_v9  ;;  %1344 = vmatprep.mubr.bf16.mxu0 %v3991_v4  ;;  %1600 = vmatprep.mubr.bf16.mxu1 %v3993_v7  ;;  %v1147_v18 = vadd.f32 %v4361_v55, %v1146_v12  ;;  %v4006_v4 = vld [vmem:[%s4197_s9 + $0x3c0] ss:$8 sps:$4 sm:$0xff]   ;;  %v4011_v7 = vld [vmem:[%s4197_s9 + $0x1d4] ss:$8 sps:$4 sm:$0xff]  }
 0x11b   : > { %v1148_v16 = vpop.f32.mrf.mxu0  ;;  %v1404_v17 = vpop.f32.mrf.mxu1  ;;  %v1403_v19 = vadd.f32 %v4361_v55, %v1402_v13  ;;  %v4014_v10 = vld [vmem:[%s4197_s9 + $0x3d4] ss:$8 sps:$4 sm:$0xff]  }
 0x11c   : > { %3319 = vst [vmem:[%s4372_s12] sm:$0xff] %v3318_v14   ;;  %3666 = vst [vmem:[%s4372_s12 + $0x100] sm:$0xff] %v3478_v15   ;;  %v1651_v30 = vmax.f32 %v1147_v18, 0.0 }
 0x11d   : > { %v1149_v20 = vpop.f32.mrf.mxu0  ;;  %v1405_v21 = vpop.f32.mrf.mxu1  ;;  %v1715_v31 = vmax.f32 %v1403_v19, 0.0 }
 0x11e   : > { %v1150_v24 = vadd.f32 %v4361_v55, %v1149_v20  ;;  %v1406_v25 = vadd.f32 %v4361_v55, %v1405_v21 }
 0x11f   : > { %v1151_v27 = vpop.f32.mrf.mxu0  ;;  %v1407_v28 = vpop.f32.mrf.mxu1 }
 0x120   : > { %v1652_v32 = vmax.f32 %v1150_v24, 0.0  ;;  %v1716_v33 = vmax.f32 %v1406_v25, 0.0  ;;  %v4009_v25 = vld [vmem:[%s4197_s9 + $0x1d0] ss:$8 sps:$4 sm:$0xff]  }
 0x121   : > { %v1154_v34 = vpop.f32.mrf.mxu0  ;;  %1345 = vmatmul.mubr.bf16.gmra.mxu0 %v3995_v22  ;;  %v1410_v35 = vpop.f32.mrf.mxu1  ;;  %1601 = vmatmul.mubr.bf16.gmra.mxu1 %v3996_v23 }
 0x122   : > { %v3323_v36 = vpack.c.bf16 %v1652_v32, %v1651_v30  ;;  %v3483_v37 = vpack.c.bf16 %v1716_v33, %v1715_v31  ;;  %1352 = vmatprep.mubr.bf16.mxu0 %v3997_v26  ;;  %1608 = vmatprep.mubr.bf16.mxu1 %v3999_v29  ;;  %v1155_v40 = vadd.f32 %v4361_v55, %v1154_v34  ;;  %v4012_v26 = vld [vmem:[%s4197_s9 + $0x3d0] ss:$8 sps:$4 sm:$0xff]   ;;  %v4017_v29 = vld [vmem:[%s4197_s9 + $0x1e4] ss:$8 sps:$4 sm:$0xff]  }
 0x123   : > { %v1156_v38 = vpop.f32.mrf.mxu0  ;;  %v1412_v39 = vpop.f32.mrf.mxu1  ;;  %v1411_v41 = vadd.f32 %v4361_v55, %v1410_v35  ;;  %v4020_v32 = vld [vmem:[%s4197_s9 + $0x3e4] ss:$8 sps:$4 sm:$0xff]  }
 0x124   : > { %3635 = vst [vmem:[%s4372_s12 + $0x8] sm:$0xff] %v3323_v36   ;;  %3667 = vst [vmem:[%s4372_s12 + $0x108] sm:$0xff] %v3483_v37   ;;  %v1653_v52 = vmax.f32 %v1155_v40, 0.0 }
 0x125   : > { %v1157_v42 = vpop.f32.mrf.mxu0  ;;  %v1413_v43 = vpop.f32.mrf.mxu1  ;;  %v1717_v53 = vmax.f32 %v1411_v41, 0.0 }
 0x126   : > { %v1158_v46 = vadd.f32 %v4361_v55, %v1157_v42  ;;  %v1414_v47 = vadd.f32 %v4361_v55, %v1413_v43 }
 0x127   : > { %v1159_v49 = vpop.f32.mrf.mxu0  ;;  %v1415_v50 = vpop.f32.mrf.mxu1 }
 0x128   : > { %v1654_v54 = vmax.f32 %v1158_v46, 0.0  ;;  %v1718_v56 = vmax.f32 %v1414_v47, 0.0  ;;  %v4015_v47 = vld [vmem:[%s4197_s9 + $0x1e0] ss:$8 sps:$4 sm:$0xff]  }
 0x129   : > { %v1162_v57 = vpop.f32.mrf.mxu0  ;;  %1353 = vmatmul.mubr.bf16.gmra.mxu0 %v4001_v44  ;;  %v1418_v58 = vpop.f32.mrf.mxu1  ;;  %1609 = vmatmul.mubr.bf16.gmra.mxu1 %v4002_v45 }
 0x12a   : > { %v3328_v59 = vpack.c.bf16 %v1654_v54, %v1653_v52  ;;  %v3488_v60 = vpack.c.bf16 %v1718_v56, %v1717_v53  ;;  %1360 = vmatprep.mubr.bf16.mxu0 %v4005_v48  ;;  %1616 = vmatprep.mubr.bf16.mxu1 %v4008_v51  ;;  %v1163_v63 = vadd.f32 %v4361_v55, %v1162_v57  ;;  %v4018_v48 = vld [vmem:[%s4197_s9 + $0x3e0] ss:$8 sps:$4 sm:$0xff]   ;;  %v4023_v51 = vld [vmem:[%s4197_s9 + $0x1f4] ss:$8 sps:$4 sm:$0xff]  }
 0x12b   : > { %v1164_v61 = vpop.f32.mrf.mxu0  ;;  %v1420_v62 = vpop.f32.mrf.mxu1  ;;  %v1419_v0 = vadd.f32 %v4361_v55, %v1418_v58  ;;  %v4026_v54 = vld [vmem:[%s4197_s9 + $0x3f4] ss:$8 sps:$4 sm:$0xff]  }
 0x12c   : > { %3636 = vst [vmem:[%s4372_s12 + $0x10] sm:$0xff] %v3328_v59   ;;  %3668 = vst [vmem:[%s4372_s12 + $0x110] sm:$0xff] %v3488_v60   ;;  %v1655_v11 = vmax.f32 %v1163_v63, 0.0 }
 0x12d   : > { %v1165_v1 = vpop.f32.mrf.mxu0  ;;  %v1421_v2 = vpop.f32.mrf.mxu1  ;;  %v1719_v12 = vmax.f32 %v1419_v0, 0.0 }
 0x12e   : > { %v1166_v5 = vadd.f32 %v4361_v55, %v1165_v1  ;;  %v1422_v6 = vadd.f32 %v4361_v55, %v1421_v2 }
 0x12f   : > { %v1167_v8 = vpop.f32.mrf.mxu0  ;;  %v1423_v9 = vpop.f32.mrf.mxu1 }
 0x130   : > { %v1656_v13 = vmax.f32 %v1166_v5, 0.0  ;;  %v1720_v14 = vmax.f32 %v1422_v6, 0.0  ;;  %v4021_v6 = vld [vmem:[%s4197_s9 + $0x1f0] ss:$8 sps:$4 sm:$0xff]  }
 0x131   : > { %v1170_v15 = vpop.f32.mrf.mxu0  ;;  %1361 = vmatmul.mubr.bf16.gmra.mxu0 %v4003_v3  ;;  %v1426_v16 = vpop.f32.mrf.mxu1  ;;  %1617 = vmatmul.mubr.bf16.gmra.mxu1 %v4006_v4 }
 0x132   : > { %v3333_v17 = vpack.c.bf16 %v1656_v13, %v1655_v11  ;;  %v3493_v18 = vpack.c.bf16 %v1720_v14, %v1719_v12  ;;  %1368 = vmatprep.mubr.bf16.mxu0 %v4011_v7  ;;  %1624 = vmatprep.mubr.bf16.mxu1 %v4014_v10  ;;  %v1171_v21 = vadd.f32 %v4361_v55, %v1170_v15  ;;  %v4024_v7 = vld [vmem:[%s4197_s9 + $0x3f0] ss:$8 sps:$4 sm:$0xff]  }
 0x133   : > { %v1172_v19 = vpop.f32.mrf.mxu0  ;;  %v1428_v20 = vpop.f32.mrf.mxu1  ;;  %v1427_v22 = vadd.f32 %v4361_v55, %v1426_v16 }
 0x134   : > { %3637 = vst [vmem:[%s4372_s12 + $0x18] sm:$0xff] %v3333_v17   ;;  %3669 = vst [vmem:[%s4372_s12 + $0x118] sm:$0xff] %v3493_v18   ;;  %v1657_v33 = vmax.f32 %v1171_v21, 0.0 }
 0x135   : > { %v1173_v23 = vpop.f32.mrf.mxu0  ;;  %v1429_v24 = vpop.f32.mrf.mxu1  ;;  %v1721_v34 = vmax.f32 %v1427_v22, 0.0 }
 0x136   : > { %v1174_v27 = vadd.f32 %v4361_v55, %v1173_v23  ;;  %v1430_v28 = vadd.f32 %v4361_v55, %v1429_v24 }
 0x137   : > { %v1175_v30 = vpop.f32.mrf.mxu0  ;;  %v1431_v31 = vpop.f32.mrf.mxu1 }
 0x138   : > { %v1658_v35 = vmax.f32 %v1174_v27, 0.0  ;;  %v1722_v36 = vmax.f32 %v1430_v28, 0.0 }
 0x139   : > { %v1178_v37 = vpop.f32.mrf.mxu0  ;;  %1369 = vmatmul.mubr.bf16.gmra.mxu0 %v4009_v25  ;;  %v1434_v38 = vpop.f32.mrf.mxu1  ;;  %1625 = vmatmul.mubr.bf16.gmra.mxu1 %v4012_v26 }
 0x13a   : > { %v3338_v39 = vpack.c.bf16 %v1658_v35, %v1657_v33  ;;  %v3498_v40 = vpack.c.bf16 %v1722_v36, %v1721_v34  ;;  %1376 = vmatprep.mubr.bf16.mxu0 %v4017_v29  ;;  %1632 = vmatprep.mubr.bf16.mxu1 %v4020_v32  ;;  %v1179_v43 = vadd.f32 %v4361_v55, %v1178_v37 }
 0x13b   : > { %v1180_v41 = vpop.f32.mrf.mxu0  ;;  %v1436_v42 = vpop.f32.mrf.mxu1  ;;  %v1435_v44 = vadd.f32 %v4361_v55, %v1434_v38 }
 0x13c   : > { %3638 = vst [vmem:[%s4372_s12 + $0x20] sm:$0xff] %v3338_v39   ;;  %3670 = vst [vmem:[%s4372_s12 + $0x120] sm:$0xff] %v3498_v40   ;;  %v1659_v56 = vmax.f32 %v1179_v43, 0.0 }
 0x13d   : > { %v1181_v45 = vpop.f32.mrf.mxu0  ;;  %v1437_v46 = vpop.f32.mrf.mxu1  ;;  %v1723_v57 = vmax.f32 %v1435_v44, 0.0 }
 0x13e   : > { %v1182_v49 = vadd.f32 %v4361_v55, %v1181_v45  ;;  %v1438_v50 = vadd.f32 %v4361_v55, %v1437_v46 }
 0x13f   : > { %v1183_v52 = vpop.f32.mrf.mxu0  ;;  %v1439_v53 = vpop.f32.mrf.mxu1 }
 0x140   : > { %v1660_v58 = vmax.f32 %v1182_v49, 0.0  ;;  %v1724_v59 = vmax.f32 %v1438_v50, 0.0 }
 0x141   : > { %v1186_v60 = vpop.f32.mrf.mxu0  ;;  %1377 = vmatmul.mubr.bf16.gmra.mxu0 %v4015_v47  ;;  %v1442_v61 = vpop.f32.mrf.mxu1  ;;  %1633 = vmatmul.mubr.bf16.gmra.mxu1 %v4018_v48 }
 0x142   : > { %v3343_v62 = vpack.c.bf16 %v1660_v58, %v1659_v56  ;;  %v3503_v63 = vpack.c.bf16 %v1724_v59, %v1723_v57  ;;  %1384 = vmatprep.mubr.bf16.mxu0 %v4023_v51  ;;  %1640 = vmatprep.mubr.bf16.mxu1 %v4026_v54  ;;  %v1187_v2 = vadd.f32 %v4361_v55, %v1186_v60 }
 0x143   : > { %v1188_v0 = vpop.f32.mrf.mxu0  ;;  %v1444_v1 = vpop.f32.mrf.mxu1  ;;  %v1443_v3 = vadd.f32 %v4361_v55, %v1442_v61 }
 0x144   : > { %3639 = vst [vmem:[%s4372_s12 + $0x28] sm:$0xff] %v3343_v62   ;;  %3671 = vst [vmem:[%s4372_s12 + $0x128] sm:$0xff] %v3503_v63   ;;  %v1661_v12 = vmax.f32 %v1187_v2, 0.0 }
 0x145   : > { %v1189_v4 = vpop.f32.mrf.mxu0  ;;  %v1445_v5 = vpop.f32.mrf.mxu1  ;;  %v1725_v13 = vmax.f32 %v1443_v3, 0.0 }
 0x146   : > { %v1190_v8 = vadd.f32 %v4361_v55, %v1189_v4  ;;  %v1446_v9 = vadd.f32 %v4361_v55, %v1445_v5 }
 0x147   : > { %v1191_v10 = vpop.f32.mrf.mxu0  ;;  %v1447_v11 = vpop.f32.mrf.mxu1 }
 0x148   : > { %v1662_v14 = vmax.f32 %v1190_v8, 0.0  ;;  %v1726_v15 = vmax.f32 %v1446_v9, 0.0 }
 0x149   : > { %v1194_v16 = vpop.f32.mrf.mxu0  ;;  %1385 = vmatmul.mubr.bf16.gmra.mxu0 %v4021_v6  ;;  %v1450_v17 = vpop.f32.mrf.mxu1  ;;  %1641 = vmatmul.mubr.bf16.gmra.mxu1 %v4024_v7 }
 0x14a   : > { %v3348_v18 = vpack.c.bf16 %v1662_v14, %v1661_v12  ;;  %v3508_v19 = vpack.c.bf16 %v1726_v15, %v1725_v13  ;;  %v1195_v22 = vadd.f32 %v4361_v55, %v1194_v16  ;;  %v1451_v23 = vadd.f32 %v4361_v55, %v1450_v17 }
 0x14b   : > { %v1196_v20 = vpop.f32.mrf.mxu0  ;;  %v1452_v21 = vpop.f32.mrf.mxu1 }
 0x14c   : > { %3640 = vst [vmem:[%s4372_s12 + $0x30] sm:$0xff] %v3348_v18   ;;  %3672 = vst [vmem:[%s4372_s12 + $0x130] sm:$0xff] %v3508_v19   ;;  %v1663_v30 = vmax.f32 %v1195_v22, 0.0  ;;  %v1727_v31 = vmax.f32 %v1451_v23, 0.0 }
 0x14d   : > { %v1197_v24 = vpop.f32.mrf.mxu0  ;;  %v1453_v25 = vpop.f32.mrf.mxu1 }
 0x14e   : > { %v1198_v26 = vadd.f32 %v4361_v55, %v1197_v24  ;;  %v1454_v27 = vadd.f32 %v4361_v55, %v1453_v25 }
 0x14f   : > { %v1199_v28 = vpop.f32.mrf.mxu0  ;;  %v1455_v29 = vpop.f32.mrf.mxu1 }
 0x150   : > { %v1664_v32 = vmax.f32 %v1198_v26, 0.0  ;;  %v1728_v33 = vmax.f32 %v1454_v27, 0.0 }
 0x151   : > { %v1202_v34 = vpop.f32.mrf.mxu0  ;;  %v1458_v35 = vpop.f32.mrf.mxu1 }
 0x152   : > { %v3353_v36 = vpack.c.bf16 %v1664_v32, %v1663_v30  ;;  %v3513_v37 = vpack.c.bf16 %v1728_v33, %v1727_v31  ;;  %v1203_v40 = vadd.f32 %v4361_v55, %v1202_v34  ;;  %v1459_v41 = vadd.f32 %v4361_v55, %v1458_v35 }
 0x153   : > { %v1204_v38 = vpop.f32.mrf.mxu0  ;;  %v1460_v39 = vpop.f32.mrf.mxu1 }
 0x154   : > { %3641 = vst [vmem:[%s4372_s12 + $0x38] sm:$0xff] %v3353_v36   ;;  %3673 = vst [vmem:[%s4372_s12 + $0x138] sm:$0xff] %v3513_v37   ;;  %v1665_v48 = vmax.f32 %v1203_v40, 0.0  ;;  %v1729_v49 = vmax.f32 %v1459_v41, 0.0 }
 0x155   : > { %v1205_v42 = vpop.f32.mrf.mxu0  ;;  %v1461_v43 = vpop.f32.mrf.mxu1 }
 0x156   : > { %v1206_v44 = vadd.f32 %v4361_v55, %v1205_v42  ;;  %v1462_v45 = vadd.f32 %v4361_v55, %v1461_v43 }
 0x157   : > { %v1207_v46 = vpop.f32.mrf.mxu0  ;;  %v1463_v47 = vpop.f32.mrf.mxu1 }
 0x158   : > { %v1666_v50 = vmax.f32 %v1206_v44, 0.0  ;;  %v1730_v51 = vmax.f32 %v1462_v45, 0.0 }
 0x159   : > { %v1210_v52 = vpop.f32.mrf.mxu0  ;;  %v1466_v53 = vpop.f32.mrf.mxu1 }
 0x15a   : > { %v3358_v54 = vpack.c.bf16 %v1666_v50, %v1665_v48  ;;  %v3518_v56 = vpack.c.bf16 %v1730_v51, %v1729_v49  ;;  %v1211_v59 = vadd.f32 %v4361_v55, %v1210_v52  ;;  %v1467_v60 = vadd.f32 %v4361_v55, %v1466_v53 }
 0x15b   : > { %v1212_v57 = vpop.f32.mrf.mxu0  ;;  %v1468_v58 = vpop.f32.mrf.mxu1 }
 0x15c   : > { %3642 = vst [vmem:[%s4372_s12 + $0x40] sm:$0xff] %v3358_v54   ;;  %3674 = vst [vmem:[%s4372_s12 + $0x140] sm:$0xff] %v3518_v56   ;;  %v1667_v3 = vmax.f32 %v1211_v59, 0.0  ;;  %v1731_v4 = vmax.f32 %v1467_v60, 0.0 }
 0x15d   : > { %v1213_v61 = vpop.f32.mrf.mxu0  ;;  %v1469_v62 = vpop.f32.mrf.mxu1 }
 0x15e   : > { %v1214_v63 = vadd.f32 %v4361_v55, %v1213_v61  ;;  %v1470_v0 = vadd.f32 %v4361_v55, %v1469_v62 }
 0x15f   : > { %v1215_v1 = vpop.f32.mrf.mxu0  ;;  %v1471_v2 = vpop.f32.mrf.mxu1 }
 0x160   : > { %v1668_v5 = vmax.f32 %v1214_v63, 0.0  ;;  %v1732_v6 = vmax.f32 %v1470_v0, 0.0 }
 0x161   : > { %v1218_v7 = vpop.f32.mrf.mxu0  ;;  %v1474_v8 = vpop.f32.mrf.mxu1 }
 0x162   : > { %v3363_v9 = vpack.c.bf16 %v1668_v5, %v1667_v3  ;;  %v3523_v10 = vpack.c.bf16 %v1732_v6, %v1731_v4  ;;  %v1219_v13 = vadd.f32 %v4361_v55, %v1218_v7  ;;  %v1475_v14 = vadd.f32 %v4361_v55, %v1474_v8 }
 0x163   : > { %v1220_v11 = vpop.f32.mrf.mxu0  ;;  %v1476_v12 = vpop.f32.mrf.mxu1 }
 0x164   : > { %3643 = vst [vmem:[%s4372_s12 + $0x48] sm:$0xff] %v3363_v9   ;;  %3675 = vst [vmem:[%s4372_s12 + $0x148] sm:$0xff] %v3523_v10   ;;  %v1669_v21 = vmax.f32 %v1219_v13, 0.0  ;;  %v1733_v22 = vmax.f32 %v1475_v14, 0.0 }
 0x165   : > { %v1221_v15 = vpop.f32.mrf.mxu0  ;;  %v1477_v16 = vpop.f32.mrf.mxu1 }
 0x166   : > { %v1222_v17 = vadd.f32 %v4361_v55, %v1221_v15  ;;  %v1478_v18 = vadd.f32 %v4361_v55, %v1477_v16 }
 0x167   : > { %v1223_v19 = vpop.f32.mrf.mxu0  ;;  %v1479_v20 = vpop.f32.mrf.mxu1 }
 0x168   : > { %v1670_v23 = vmax.f32 %v1222_v17, 0.0  ;;  %v1734_v24 = vmax.f32 %v1478_v18, 0.0 }
 0x169   : > { %v1226_v25 = vpop.f32.mrf.mxu0  ;;  %v1482_v26 = vpop.f32.mrf.mxu1 }
 0x16a   : > { %v3368_v27 = vpack.c.bf16 %v1670_v23, %v1669_v21  ;;  %v3528_v28 = vpack.c.bf16 %v1734_v24, %v1733_v22  ;;  %v1227_v31 = vadd.f32 %v4361_v55, %v1226_v25  ;;  %v1483_v32 = vadd.f32 %v4361_v55, %v1482_v26 }
 0x16b   : > { %v1228_v29 = vpop.f32.mrf.mxu0  ;;  %v1484_v30 = vpop.f32.mrf.mxu1 }
 0x16c   : > { %3644 = vst [vmem:[%s4372_s12 + $0x50] sm:$0xff] %v3368_v27   ;;  %3676 = vst [vmem:[%s4372_s12 + $0x150] sm:$0xff] %v3528_v28   ;;  %v1671_v39 = vmax.f32 %v1227_v31, 0.0  ;;  %v1735_v40 = vmax.f32 %v1483_v32, 0.0 }
 0x16d   : > { %v1229_v33 = vpop.f32.mrf.mxu0  ;;  %v1485_v34 = vpop.f32.mrf.mxu1 }
 0x16e   : > { %v1230_v35 = vadd.f32 %v4361_v55, %v1229_v33  ;;  %v1486_v36 = vadd.f32 %v4361_v55, %v1485_v34 }
 0x16f   : > { %v1231_v37 = vpop.f32.mrf.mxu0  ;;  %v1487_v38 = vpop.f32.mrf.mxu1 }
 0x170   : > { %v1672_v41 = vmax.f32 %v1230_v35, 0.0  ;;  %v1736_v42 = vmax.f32 %v1486_v36, 0.0 }
 0x171   : > { %v1234_v43 = vpop.f32.mrf.mxu0  ;;  %v1490_v44 = vpop.f32.mrf.mxu1 }
 0x172   : > { %v3373_v45 = vpack.c.bf16 %v1672_v41, %v1671_v39  ;;  %v3533_v46 = vpack.c.bf16 %v1736_v42, %v1735_v40  ;;  %v1235_v49 = vadd.f32 %v4361_v55, %v1234_v43  ;;  %v1491_v50 = vadd.f32 %v4361_v55, %v1490_v44 }
 0x173   : > { %v1236_v47 = vpop.f32.mrf.mxu0  ;;  %v1492_v48 = vpop.f32.mrf.mxu1 }
 0x174   : > { %3645 = vst [vmem:[%s4372_s12 + $0x58] sm:$0xff] %v3373_v45   ;;  %3677 = vst [vmem:[%s4372_s12 + $0x158] sm:$0xff] %v3533_v46   ;;  %v1673_v58 = vmax.f32 %v1235_v49, 0.0  ;;  %v1737_v59 = vmax.f32 %v1491_v50, 0.0 }
 0x175   : > { %v1237_v51 = vpop.f32.mrf.mxu0  ;;  %v1493_v52 = vpop.f32.mrf.mxu1 }
 0x176   : > { %v1238_v53 = vadd.f32 %v4361_v55, %v1237_v51  ;;  %v1494_v54 = vadd.f32 %v4361_v55, %v1493_v52 }
 0x177   : > { %v1239_v56 = vpop.f32.mrf.mxu0  ;;  %v1495_v57 = vpop.f32.mrf.mxu1 }
 0x178   : > { %v1674_v60 = vmax.f32 %v1238_v53, 0.0  ;;  %v1738_v61 = vmax.f32 %v1494_v54, 0.0 }
 0x179   : > { %v1242_v62 = vpop.f32.mrf.mxu0  ;;  %v1498_v63 = vpop.f32.mrf.mxu1 }
 0x17a   : > { %v3378_v0 = vpack.c.bf16 %v1674_v60, %v1673_v58  ;;  %v3538_v1 = vpack.c.bf16 %v1738_v61, %v1737_v59  ;;  %v1243_v4 = vadd.f32 %v4361_v55, %v1242_v62  ;;  %v1499_v5 = vadd.f32 %v4361_v55, %v1498_v63 }
 0x17b   : > { %v1244_v2 = vpop.f32.mrf.mxu0  ;;  %v1500_v3 = vpop.f32.mrf.mxu1 }
 0x17c   : > { %3646 = vst [vmem:[%s4372_s12 + $0x60] sm:$0xff] %v3378_v0   ;;  %3678 = vst [vmem:[%s4372_s12 + $0x160] sm:$0xff] %v3538_v1   ;;  %v1675_v12 = vmax.f32 %v1243_v4, 0.0  ;;  %v1739_v13 = vmax.f32 %v1499_v5, 0.0 }
 0x17d   : > { %v1245_v6 = vpop.f32.mrf.mxu0  ;;  %v1501_v7 = vpop.f32.mrf.mxu1 }
 0x17e   : > { %v1246_v8 = vadd.f32 %v4361_v55, %v1245_v6  ;;  %v1502_v9 = vadd.f32 %v4361_v55, %v1501_v7 }
 0x17f   : > { %v1247_v10 = vpop.f32.mrf.mxu0  ;;  %v1503_v11 = vpop.f32.mrf.mxu1 }
 0x180   : > { %v1676_v14 = vmax.f32 %v1246_v8, 0.0  ;;  %v1740_v15 = vmax.f32 %v1502_v9, 0.0 }
 0x181   : > { %v1250_v16 = vpop.f32.mrf.mxu0  ;;  %v1506_v17 = vpop.f32.mrf.mxu1 }
 0x182   : > { %v3383_v18 = vpack.c.bf16 %v1676_v14, %v1675_v12  ;;  %v3543_v19 = vpack.c.bf16 %v1740_v15, %v1739_v13  ;;  %v1251_v22 = vadd.f32 %v4361_v55, %v1250_v16  ;;  %v1507_v23 = vadd.f32 %v4361_v55, %v1506_v17 }
 0x183   : > { %v1252_v20 = vpop.f32.mrf.mxu0  ;;  %v1508_v21 = vpop.f32.mrf.mxu1 }
 0x184   : > { %3647 = vst [vmem:[%s4372_s12 + $0x68] sm:$0xff] %v3383_v18   ;;  %3679 = vst [vmem:[%s4372_s12 + $0x168] sm:$0xff] %v3543_v19   ;;  %v1677_v30 = vmax.f32 %v1251_v22, 0.0  ;;  %v1741_v31 = vmax.f32 %v1507_v23, 0.0 }
 0x185   : > { %v1253_v24 = vpop.f32.mrf.mxu0  ;;  %v1509_v25 = vpop.f32.mrf.mxu1 }
 0x186   : > { %v1254_v26 = vadd.f32 %v4361_v55, %v1253_v24  ;;  %v1510_v27 = vadd.f32 %v4361_v55, %v1509_v25 }
 0x187   : > { %v1255_v28 = vpop.f32.mrf.mxu0  ;;  %v1511_v29 = vpop.f32.mrf.mxu1 }
 0x188   : > { %v1678_v32 = vmax.f32 %v1254_v26, 0.0  ;;  %v1742_v33 = vmax.f32 %v1510_v27, 0.0 }
 0x189   : > { %v1258_v34 = vpop.f32.mrf.mxu0  ;;  %v1514_v35 = vpop.f32.mrf.mxu1 }
 0x18a   : > { %v3388_v36 = vpack.c.bf16 %v1678_v32, %v1677_v30  ;;  %v3548_v37 = vpack.c.bf16 %v1742_v33, %v1741_v31  ;;  %v1259_v40 = vadd.f32 %v4361_v55, %v1258_v34  ;;  %v1515_v41 = vadd.f32 %v4361_v55, %v1514_v35 }
 0x18b   : > { %v1260_v38 = vpop.f32.mrf.mxu0  ;;  %v1516_v39 = vpop.f32.mrf.mxu1 }
 0x18c   : > { %3648 = vst [vmem:[%s4372_s12 + $0x70] sm:$0xff] %v3388_v36   ;;  %3680 = vst [vmem:[%s4372_s12 + $0x170] sm:$0xff] %v3548_v37   ;;  %v1679_v48 = vmax.f32 %v1259_v40, 0.0  ;;  %v1743_v49 = vmax.f32 %v1515_v41, 0.0 }
 0x18d   : > { %v1261_v42 = vpop.f32.mrf.mxu0  ;;  %v1517_v43 = vpop.f32.mrf.mxu1 }
 0x18e   : > { %v1262_v44 = vadd.f32 %v4361_v55, %v1261_v42  ;;  %v1518_v45 = vadd.f32 %v4361_v55, %v1517_v43 }
 0x18f   : > { %v1263_v46 = vpop.f32.mrf.mxu0  ;;  %v1519_v47 = vpop.f32.mrf.mxu1 }
 0x190   : > { %v1680_v50 = vmax.f32 %v1262_v44, 0.0  ;;  %v1744_v51 = vmax.f32 %v1518_v45, 0.0 }
 0x191   : > { %v1266_v52 = vpop.f32.mrf.mxu0  ;;  %v1522_v53 = vpop.f32.mrf.mxu1 }
 0x192   : > { %v3393_v54 = vpack.c.bf16 %v1680_v50, %v1679_v48  ;;  %v3553_v56 = vpack.c.bf16 %v1744_v51, %v1743_v49  ;;  %v1267_v59 = vadd.f32 %v4361_v55, %v1266_v52  ;;  %v1523_v60 = vadd.f32 %v4361_v55, %v1522_v53 }
 0x193   : > { %v1268_v57 = vpop.f32.mrf.mxu0  ;;  %v1524_v58 = vpop.f32.mrf.mxu1 }
 0x194   : > { %3649 = vst [vmem:[%s4372_s12 + $0x78] sm:$0xff] %v3393_v54   ;;  %3681 = vst [vmem:[%s4372_s12 + $0x178] sm:$0xff] %v3553_v56   ;;  %v1681_v3 = vmax.f32 %v1267_v59, 0.0  ;;  %v1745_v4 = vmax.f32 %v1523_v60, 0.0 }
 0x195   : > { %v1269_v61 = vpop.f32.mrf.mxu0  ;;  %v1525_v62 = vpop.f32.mrf.mxu1 }
 0x196   : > { %v1270_v63 = vadd.f32 %v4361_v55, %v1269_v61  ;;  %v1526_v0 = vadd.f32 %v4361_v55, %v1525_v62 }
 0x197   : > { %v1271_v1 = vpop.f32.mrf.mxu0  ;;  %v1527_v2 = vpop.f32.mrf.mxu1 }
 0x198   : > { %v1682_v5 = vmax.f32 %v1270_v63, 0.0  ;;  %v1746_v6 = vmax.f32 %v1526_v0, 0.0 }
 0x199   : > { %v1274_v7 = vpop.f32.mrf.mxu0  ;;  %v1530_v8 = vpop.f32.mrf.mxu1 }
 0x19a   : > { %v3398_v9 = vpack.c.bf16 %v1682_v5, %v1681_v3  ;;  %v3558_v10 = vpack.c.bf16 %v1746_v6, %v1745_v4  ;;  %v1275_v13 = vadd.f32 %v4361_v55, %v1274_v7  ;;  %v1531_v14 = vadd.f32 %v4361_v55, %v1530_v8 }
 0x19b   : > { %v1276_v11 = vpop.f32.mrf.mxu0  ;;  %v1532_v12 = vpop.f32.mrf.mxu1 }
 0x19c   : > { %3650 = vst [vmem:[%s4372_s12 + $0x80] sm:$0xff] %v3398_v9   ;;  %3682 = vst [vmem:[%s4372_s12 + $0x180] sm:$0xff] %v3558_v10   ;;  %v1683_v21 = vmax.f32 %v1275_v13, 0.0  ;;  %v1747_v22 = vmax.f32 %v1531_v14, 0.0 }
 0x19d   : > { %v1277_v15 = vpop.f32.mrf.mxu0  ;;  %v1533_v16 = vpop.f32.mrf.mxu1 }
 0x19e   : > { %v1278_v17 = vadd.f32 %v4361_v55, %v1277_v15  ;;  %v1534_v18 = vadd.f32 %v4361_v55, %v1533_v16 }
 0x19f   : > { %v1279_v19 = vpop.f32.mrf.mxu0  ;;  %v1535_v20 = vpop.f32.mrf.mxu1 }
 0x1a0   : > { %v1684_v23 = vmax.f32 %v1278_v17, 0.0  ;;  %v1748_v24 = vmax.f32 %v1534_v18, 0.0 }
 0x1a1   : > { %v1282_v25 = vpop.f32.mrf.mxu0  ;;  %v1538_v26 = vpop.f32.mrf.mxu1 }
 0x1a2   : > { %v3403_v27 = vpack.c.bf16 %v1684_v23, %v1683_v21  ;;  %v3563_v28 = vpack.c.bf16 %v1748_v24, %v1747_v22  ;;  %v1283_v31 = vadd.f32 %v4361_v55, %v1282_v25  ;;  %v1539_v32 = vadd.f32 %v4361_v55, %v1538_v26 }
 0x1a3   : > { %v1284_v29 = vpop.f32.mrf.mxu0  ;;  %v1540_v30 = vpop.f32.mrf.mxu1 }
 0x1a4   : > { %3651 = vst [vmem:[%s4372_s12 + $0x88] sm:$0xff] %v3403_v27   ;;  %3683 = vst [vmem:[%s4372_s12 + $0x188] sm:$0xff] %v3563_v28   ;;  %v1685_v39 = vmax.f32 %v1283_v31, 0.0  ;;  %v1749_v40 = vmax.f32 %v1539_v32, 0.0 }
 0x1a5   : > { %v1285_v33 = vpop.f32.mrf.mxu0  ;;  %v1541_v34 = vpop.f32.mrf.mxu1 }
 0x1a6   : > { %v1286_v35 = vadd.f32 %v4361_v55, %v1285_v33  ;;  %v1542_v36 = vadd.f32 %v4361_v55, %v1541_v34 }
 0x1a7   : > { %v1287_v37 = vpop.f32.mrf.mxu0  ;;  %v1543_v38 = vpop.f32.mrf.mxu1 }
 0x1a8   : > { %v1686_v41 = vmax.f32 %v1286_v35, 0.0  ;;  %v1750_v42 = vmax.f32 %v1542_v36, 0.0 }
 0x1a9   : > { %v1290_v43 = vpop.f32.mrf.mxu0  ;;  %v1546_v44 = vpop.f32.mrf.mxu1 }
 0x1aa   : > { %v3408_v45 = vpack.c.bf16 %v1686_v41, %v1685_v39  ;;  %v3568_v46 = vpack.c.bf16 %v1750_v42, %v1749_v40  ;;  %v1291_v49 = vadd.f32 %v4361_v55, %v1290_v43  ;;  %v1547_v50 = vadd.f32 %v4361_v55, %v1546_v44 }
 0x1ab   : > { %v1292_v47 = vpop.f32.mrf.mxu0  ;;  %v1548_v48 = vpop.f32.mrf.mxu1 }
 0x1ac   : > { %3652 = vst [vmem:[%s4372_s12 + $0x90] sm:$0xff] %v3408_v45   ;;  %3684 = vst [vmem:[%s4372_s12 + $0x190] sm:$0xff] %v3568_v46   ;;  %v1687_v58 = vmax.f32 %v1291_v49, 0.0  ;;  %v1751_v59 = vmax.f32 %v1547_v50, 0.0 }
 0x1ad   : > { %v1293_v51 = vpop.f32.mrf.mxu0  ;;  %v1549_v52 = vpop.f32.mrf.mxu1 }
 0x1ae   : > { %v1294_v53 = vadd.f32 %v4361_v55, %v1293_v51  ;;  %v1550_v54 = vadd.f32 %v4361_v55, %v1549_v52 }
 0x1af   : > { %v1295_v56 = vpop.f32.mrf.mxu0  ;;  %v1551_v57 = vpop.f32.mrf.mxu1 }
 0x1b0   : > { %v1688_v60 = vmax.f32 %v1294_v53, 0.0  ;;  %v1752_v61 = vmax.f32 %v1550_v54, 0.0 }
 0x1b1   : > { %v1298_v62 = vpop.f32.mrf.mxu0  ;;  %v1554_v63 = vpop.f32.mrf.mxu1 }
 0x1b2   : > { %v3413_v0 = vpack.c.bf16 %v1688_v60, %v1687_v58  ;;  %v3573_v1 = vpack.c.bf16 %v1752_v61, %v1751_v59  ;;  %v1299_v4 = vadd.f32 %v4361_v55, %v1298_v62  ;;  %v1555_v5 = vadd.f32 %v4361_v55, %v1554_v63  ;;  %v4533_v59 = vld [vmem:[%s4790_s2] ss:$0 sm:$0xff] }
 0x1b3   : > { %v1300_v2 = vpop.f32.mrf.mxu0  ;;  %v1556_v3 = vpop.f32.mrf.mxu1 }
 0x1b4   : > { %3653 = vst [vmem:[%s4372_s12 + $0x98] sm:$0xff] %v3413_v0   ;;  %3685 = vst [vmem:[%s4372_s12 + $0x198] sm:$0xff] %v3573_v1   ;;  %v1689_v12 = vmax.f32 %v1299_v4, 0.0  ;;  %v1753_v13 = vmax.f32 %v1555_v5, 0.0 }
 0x1b5   : > { %v1301_v6 = vpop.f32.mrf.mxu0  ;;  %v1557_v7 = vpop.f32.mrf.mxu1 }
 0x1b6   : > { %v1302_v8 = vadd.f32 %v4361_v55, %v1301_v6  ;;  %v1558_v9 = vadd.f32 %v4361_v55, %v1557_v7 }
 0x1b7   : > { %v1303_v10 = vpop.f32.mrf.mxu0  ;;  %v1559_v11 = vpop.f32.mrf.mxu1 }
 0x1b8   : > { %v1690_v14 = vmax.f32 %v1302_v8, 0.0  ;;  %v1754_v15 = vmax.f32 %v1558_v9, 0.0 }
 0x1b9   : > { %v1306_v16 = vpop.f32.mrf.mxu0  ;;  %v1562_v17 = vpop.f32.mrf.mxu1 }
 0x1ba   : > { %v3418_v18 = vpack.c.bf16 %v1690_v14, %v1689_v12  ;;  %v3578_v19 = vpack.c.bf16 %v1754_v15, %v1753_v13  ;;  %v1307_v22 = vadd.f32 %v4361_v55, %v1306_v16  ;;  %v1563_v23 = vadd.f32 %v4361_v55, %v1562_v17 }
 0x1bb   : > { %v1308_v20 = vpop.f32.mrf.mxu0  ;;  %v1564_v21 = vpop.f32.mrf.mxu1 }
 0x1bc   : > { %3654 = vst [vmem:[%s4372_s12 + $0xa0] sm:$0xff] %v3418_v18   ;;  %3686 = vst [vmem:[%s4372_s12 + $0x1a0] sm:$0xff] %v3578_v19   ;;  %v1691_v30 = vmax.f32 %v1307_v22, 0.0  ;;  %v1755_v31 = vmax.f32 %v1563_v23, 0.0 }
 0x1bd   : > { %v1309_v24 = vpop.f32.mrf.mxu0  ;;  %v1565_v25 = vpop.f32.mrf.mxu1 }
 0x1be   : > { %v1310_v26 = vadd.f32 %v4361_v55, %v1309_v24  ;;  %v1566_v27 = vadd.f32 %v4361_v55, %v1565_v25 }
 0x1bf   : > { %v1311_v28 = vpop.f32.mrf.mxu0  ;;  %v1567_v29 = vpop.f32.mrf.mxu1 }
 0x1c0   : > { %v1692_v32 = vmax.f32 %v1310_v26, 0.0  ;;  %v1756_v33 = vmax.f32 %v1566_v27, 0.0 }
 0x1c1   : > { %v1314_v34 = vpop.f32.mrf.mxu0  ;;  %v1570_v35 = vpop.f32.mrf.mxu1 }
 0x1c2   : > { %v3423_v36 = vpack.c.bf16 %v1692_v32, %v1691_v30  ;;  %v3583_v37 = vpack.c.bf16 %v1756_v33, %v1755_v31  ;;  %v1315_v40 = vadd.f32 %v4361_v55, %v1314_v34  ;;  %v1571_v41 = vadd.f32 %v4361_v55, %v1570_v35 }
 0x1c3   : > { %v1316_v38 = vpop.f32.mrf.mxu0  ;;  %v1572_v39 = vpop.f32.mrf.mxu1 }
 0x1c4   : > { %3655 = vst [vmem:[%s4372_s12 + $0xa8] sm:$0xff] %v3423_v36   ;;  %3687 = vst [vmem:[%s4372_s12 + $0x1a8] sm:$0xff] %v3583_v37   ;;  %v1693_v48 = vmax.f32 %v1315_v40, 0.0  ;;  %v1757_v49 = vmax.f32 %v1571_v41, 0.0 }
 0x1c5   : > { %v1317_v42 = vpop.f32.mrf.mxu0  ;;  %v1573_v43 = vpop.f32.mrf.mxu1 }
 0x1c6   : > { %v1318_v44 = vadd.f32 %v4361_v55, %v1317_v42  ;;  %v1574_v45 = vadd.f32 %v4361_v55, %v1573_v43 }
 0x1c7   : > { %v1319_v46 = vpop.f32.mrf.mxu0  ;;  %v1575_v47 = vpop.f32.mrf.mxu1 }
 0x1c8   : > { %v1694_v50 = vmax.f32 %v1318_v44, 0.0  ;;  %v1758_v51 = vmax.f32 %v1574_v45, 0.0 }
 0x1c9   : > { %v1322_v52 = vpop.f32.mrf.mxu0  ;;  %v1578_v53 = vpop.f32.mrf.mxu1 }
 0x1ca   : > { %v3428_v54 = vpack.c.bf16 %v1694_v50, %v1693_v48  ;;  %v3588_v56 = vpack.c.bf16 %v1758_v51, %v1757_v49  ;;  %v1323_v55 = vadd.f32 %v4533_v59, %v1322_v52  ;;  %v1579_v60 = vadd.f32 %v4533_v59, %v1578_v53 }
 0x1cb   : > { %v1324_v57 = vpop.f32.mrf.mxu0  ;;  %v1580_v58 = vpop.f32.mrf.mxu1 }
 0x1cc   : > { %3656 = vst [vmem:[%s4372_s12 + $0xb0] sm:$0xff] %v3428_v54   ;;  %3688 = vst [vmem:[%s4372_s12 + $0x1b0] sm:$0xff] %v3588_v56   ;;  %v1695_v3 = vmax.f32 %v1323_v55, 0.0  ;;  %v1759_v4 = vmax.f32 %v1579_v60, 0.0 }
 0x1cd   : > { %v1325_v61 = vpop.f32.mrf.mxu0  ;;  %v1581_v62 = vpop.f32.mrf.mxu1 }
 0x1ce   : > { %v1326_v63 = vadd.f32 %v4533_v59, %v1325_v61  ;;  %v1582_v0 = vadd.f32 %v4533_v59, %v1581_v62 }
 0x1cf   : > { %v1327_v1 = vpop.f32.mrf.mxu0  ;;  %v1583_v2 = vpop.f32.mrf.mxu1 }
 0x1d0   : > { %v1696_v5 = vmax.f32 %v1326_v63, 0.0  ;;  %v1760_v6 = vmax.f32 %v1582_v0, 0.0 }
 0x1d1   : > { %v1330_v7 = vpop.f32.mrf.mxu0  ;;  %v1586_v8 = vpop.f32.mrf.mxu1 }
 0x1d2   : > { %v3433_v9 = vpack.c.bf16 %v1696_v5, %v1695_v3  ;;  %v3593_v10 = vpack.c.bf16 %v1760_v6, %v1759_v4  ;;  %v1331_v13 = vadd.f32 %v4533_v59, %v1330_v7  ;;  %v1587_v14 = vadd.f32 %v4533_v59, %v1586_v8 }
 0x1d3   : > { %v1332_v11 = vpop.f32.mrf.mxu0  ;;  %v1588_v12 = vpop.f32.mrf.mxu1 }
 0x1d4   : > { %3657 = vst [vmem:[%s4372_s12 + $0xb8] sm:$0xff] %v3433_v9   ;;  %3689 = vst [vmem:[%s4372_s12 + $0x1b8] sm:$0xff] %v3593_v10   ;;  %v1697_v21 = vmax.f32 %v1331_v13, 0.0  ;;  %v1761_v22 = vmax.f32 %v1587_v14, 0.0 }
 0x1d5   : > { %v1333_v15 = vpop.f32.mrf.mxu0  ;;  %v1589_v16 = vpop.f32.mrf.mxu1 }
 0x1d6   : > { %v1334_v17 = vadd.f32 %v4533_v59, %v1333_v15  ;;  %v1590_v18 = vadd.f32 %v4533_v59, %v1589_v16 }
 0x1d7   : > { %v1335_v19 = vpop.f32.mrf.mxu0  ;;  %v1591_v20 = vpop.f32.mrf.mxu1 }
 0x1d8   : > { %v1698_v23 = vmax.f32 %v1334_v17, 0.0  ;;  %v1762_v24 = vmax.f32 %v1590_v18, 0.0 }
 0x1d9   : > { %v1338_v25 = vpop.f32.mrf.mxu0  ;;  %v1594_v26 = vpop.f32.mrf.mxu1 }
 0x1da   : > { %v3438_v27 = vpack.c.bf16 %v1698_v23, %v1697_v21  ;;  %v3598_v28 = vpack.c.bf16 %v1762_v24, %v1761_v22  ;;  %v1339_v31 = vadd.f32 %v4533_v59, %v1338_v25  ;;  %v1595_v32 = vadd.f32 %v4533_v59, %v1594_v26 }
 0x1db   : > { %v1340_v29 = vpop.f32.mrf.mxu0  ;;  %v1596_v30 = vpop.f32.mrf.mxu1 }
 0x1dc   : > { %3658 = vst [vmem:[%s4372_s12 + $0xc0] sm:$0xff] %v3438_v27   ;;  %3690 = vst [vmem:[%s4372_s12 + $0x1c0] sm:$0xff] %v3598_v28   ;;  %v1699_v39 = vmax.f32 %v1339_v31, 0.0  ;;  %v1763_v40 = vmax.f32 %v1595_v32, 0.0 }
 0x1dd   : > { %v1341_v33 = vpop.f32.mrf.mxu0  ;;  %v1597_v34 = vpop.f32.mrf.mxu1 }
 0x1de   : > { %v1342_v35 = vadd.f32 %v4533_v59, %v1341_v33  ;;  %v1598_v36 = vadd.f32 %v4533_v59, %v1597_v34 }
 0x1df   : > { %v1343_v37 = vpop.f32.mrf.mxu0  ;;  %v1599_v38 = vpop.f32.mrf.mxu1 }
 0x1e0   : > { %v1700_v41 = vmax.f32 %v1342_v35, 0.0  ;;  %v1764_v42 = vmax.f32 %v1598_v36, 0.0 }
 0x1e1   : > { %v1346_v43 = vpop.f32.mrf.mxu0  ;;  %v1602_v44 = vpop.f32.mrf.mxu1 }
 0x1e2   : > { %v3443_v45 = vpack.c.bf16 %v1700_v41, %v1699_v39  ;;  %v3603_v46 = vpack.c.bf16 %v1764_v42, %v1763_v40  ;;  %v1347_v49 = vadd.f32 %v4533_v59, %v1346_v43  ;;  %v1603_v50 = vadd.f32 %v4533_v59, %v1602_v44 }
 0x1e3   : > { %v1348_v47 = vpop.f32.mrf.mxu0  ;;  %v1604_v48 = vpop.f32.mrf.mxu1 }
 0x1e4   : > { %3659 = vst [vmem:[%s4372_s12 + $0xc8] sm:$0xff] %v3443_v45   ;;  %3691 = vst [vmem:[%s4372_s12 + $0x1c8] sm:$0xff] %v3603_v46   ;;  %v1701_v58 = vmax.f32 %v1347_v49, 0.0  ;;  %v1765_v55 = vmax.f32 %v1603_v50, 0.0 }
 0x1e5   : > { %v1349_v51 = vpop.f32.mrf.mxu0  ;;  %v1605_v52 = vpop.f32.mrf.mxu1 }
 0x1e6   : > { %v1350_v53 = vadd.f32 %v4533_v59, %v1349_v51  ;;  %v1606_v54 = vadd.f32 %v4533_v59, %v1605_v52 }
 0x1e7   : > { %v1351_v56 = vpop.f32.mrf.mxu0  ;;  %v1607_v57 = vpop.f32.mrf.mxu1 }
 0x1e8   : > { %v1702_v60 = vmax.f32 %v1350_v53, 0.0  ;;  %v1766_v61 = vmax.f32 %v1606_v54, 0.0 }
 0x1e9   : > { %v1354_v62 = vpop.f32.mrf.mxu0  ;;  %v1610_v63 = vpop.f32.mrf.mxu1 }
 0x1ea   : > { %v3448_v0 = vpack.c.bf16 %v1702_v60, %v1701_v58  ;;  %v3608_v1 = vpack.c.bf16 %v1766_v61, %v1765_v55  ;;  %v1355_v4 = vadd.f32 %v4533_v59, %v1354_v62  ;;  %v1611_v5 = vadd.f32 %v4533_v59, %v1610_v63 }
 0x1eb   : > { %v1356_v2 = vpop.f32.mrf.mxu0  ;;  %v1612_v3 = vpop.f32.mrf.mxu1 }
 0x1ec   : > { %3660 = vst [vmem:[%s4372_s12 + $0xd0] sm:$0xff] %v3448_v0   ;;  %3692 = vst [vmem:[%s4372_s12 + $0x1d0] sm:$0xff] %v3608_v1   ;;  %v1703_v12 = vmax.f32 %v1355_v4, 0.0  ;;  %v1767_v13 = vmax.f32 %v1611_v5, 0.0 }
 0x1ed   : > { %v1357_v6 = vpop.f32.mrf.mxu0  ;;  %v1613_v7 = vpop.f32.mrf.mxu1 }
 0x1ee   : > { %v1358_v8 = vadd.f32 %v4533_v59, %v1357_v6  ;;  %v1614_v9 = vadd.f32 %v4533_v59, %v1613_v7 }
 0x1ef   : > { %v1359_v10 = vpop.f32.mrf.mxu0  ;;  %v1615_v11 = vpop.f32.mrf.mxu1 }
 0x1f0   : > { %v1704_v14 = vmax.f32 %v1358_v8, 0.0  ;;  %v1768_v15 = vmax.f32 %v1614_v9, 0.0 }
 0x1f1   : > { %v1362_v16 = vpop.f32.mrf.mxu0  ;;  %v1618_v17 = vpop.f32.mrf.mxu1 }
 0x1f2   : > { %v3453_v18 = vpack.c.bf16 %v1704_v14, %v1703_v12  ;;  %v3613_v19 = vpack.c.bf16 %v1768_v15, %v1767_v13  ;;  %v1363_v22 = vadd.f32 %v4533_v59, %v1362_v16  ;;  %v1619_v23 = vadd.f32 %v4533_v59, %v1618_v17 }
 0x1f3   : > { %v1364_v20 = vpop.f32.mrf.mxu0  ;;  %v1620_v21 = vpop.f32.mrf.mxu1 }
 0x1f4   : > { %3661 = vst [vmem:[%s4372_s12 + $0xd8] sm:$0xff] %v3453_v18   ;;  %3693 = vst [vmem:[%s4372_s12 + $0x1d8] sm:$0xff] %v3613_v19   ;;  %v1705_v30 = vmax.f32 %v1363_v22, 0.0  ;;  %v1769_v31 = vmax.f32 %v1619_v23, 0.0 }
 0x1f5   : > { %v1365_v24 = vpop.f32.mrf.mxu0  ;;  %v1621_v25 = vpop.f32.mrf.mxu1 }
 0x1f6   : > { %v1366_v26 = vadd.f32 %v4533_v59, %v1365_v24  ;;  %v1622_v27 = vadd.f32 %v4533_v59, %v1621_v25 }
 0x1f7   : > { %v1367_v28 = vpop.f32.mrf.mxu0  ;;  %v1623_v29 = vpop.f32.mrf.mxu1 }
 0x1f8   : > { %v1706_v32 = vmax.f32 %v1366_v26, 0.0  ;;  %v1770_v33 = vmax.f32 %v1622_v27, 0.0 }
 0x1f9   : > { %v1370_v34 = vpop.f32.mrf.mxu0  ;;  %v1626_v35 = vpop.f32.mrf.mxu1 }
 0x1fa   : > { %v3458_v36 = vpack.c.bf16 %v1706_v32, %v1705_v30  ;;  %v3618_v37 = vpack.c.bf16 %v1770_v33, %v1769_v31  ;;  %v1371_v40 = vadd.f32 %v4533_v59, %v1370_v34  ;;  %v1627_v41 = vadd.f32 %v4533_v59, %v1626_v35 }
 0x1fb   : > { %v1372_v38 = vpop.f32.mrf.mxu0  ;;  %v1628_v39 = vpop.f32.mrf.mxu1 }
 0x1fc   : > { %3662 = vst [vmem:[%s4372_s12 + $0xe0] sm:$0xff] %v3458_v36   ;;  %3694 = vst [vmem:[%s4372_s12 + $0x1e0] sm:$0xff] %v3618_v37   ;;  %v1707_v48 = vmax.f32 %v1371_v40, 0.0  ;;  %v1771_v49 = vmax.f32 %v1627_v41, 0.0 }
 0x1fd   : > { %v1373_v42 = vpop.f32.mrf.mxu0  ;;  %v1629_v43 = vpop.f32.mrf.mxu1 }
 0x1fe   : > { %v1374_v44 = vadd.f32 %v4533_v59, %v1373_v42  ;;  %v1630_v45 = vadd.f32 %v4533_v59, %v1629_v43 }
 0x1ff   : > { %v1375_v46 = vpop.f32.mrf.mxu0  ;;  %v1631_v47 = vpop.f32.mrf.mxu1 }
 0x200   : > { %v1708_v50 = vmax.f32 %v1374_v44, 0.0  ;;  %v1772_v51 = vmax.f32 %v1630_v45, 0.0 }
 0x201   : > { %v1378_v52 = vpop.f32.mrf.mxu0  ;;  %v1634_v53 = vpop.f32.mrf.mxu1 }
 0x202   : > { %v3463_v54 = vpack.c.bf16 %v1708_v50, %v1707_v48  ;;  %v3623_v56 = vpack.c.bf16 %v1772_v51, %v1771_v49  ;;  %v1379_v55 = vadd.f32 %v4533_v59, %v1378_v52  ;;  %v1635_v60 = vadd.f32 %v4533_v59, %v1634_v53 }
 0x203   : > { %v1380_v57 = vpop.f32.mrf.mxu0  ;;  %v1636_v58 = vpop.f32.mrf.mxu1 }
 0x204   : > { %3663 = vst [vmem:[%s4372_s12 + $0xe8] sm:$0xff] %v3463_v54   ;;  %3695 = vst [vmem:[%s4372_s12 + $0x1e8] sm:$0xff] %v3623_v56   ;;  %v1709_v3 = vmax.f32 %v1379_v55, 0.0  ;;  %v1773_v4 = vmax.f32 %v1635_v60, 0.0 }
 0x205   : > { %v1381_v61 = vpop.f32.mrf.mxu0  ;;  %v1637_v62 = vpop.f32.mrf.mxu1 }
 0x206   : > { %v1382_v63 = vadd.f32 %v4533_v59, %v1381_v61  ;;  %v1638_v0 = vadd.f32 %v4533_v59, %v1637_v62 }
 0x207   : > { %v1383_v1 = vpop.f32.mrf.mxu0  ;;  %v1639_v2 = vpop.f32.mrf.mxu1 }
 0x208   : > { %v1710_v5 = vmax.f32 %v1382_v63, 0.0  ;;  %v1774_v6 = vmax.f32 %v1638_v0, 0.0 }
 0x209   : > { %v1386_v7 = vpop.f32.mrf.mxu0  ;;  %v1642_v8 = vpop.f32.mrf.mxu1 }
 0x20a   : > { %v3468_v9 = vpack.c.bf16 %v1710_v5, %v1709_v3  ;;  %v3628_v10 = vpack.c.bf16 %v1774_v6, %v1773_v4  ;;  %v1387_v13 = vadd.f32 %v4533_v59, %v1386_v7  ;;  %v1643_v14 = vadd.f32 %v4533_v59, %v1642_v8 }
 0x20b   : > { %v1388_v11 = vpop.f32.mrf.mxu0  ;;  %v1644_v12 = vpop.f32.mrf.mxu1 }
 0x20c   : > { %3664 = vst [vmem:[%s4372_s12 + $0xf0] sm:$0xff] %v3468_v9   ;;  %3696 = vst [vmem:[%s4372_s12 + $0x1f0] sm:$0xff] %v3628_v10   ;;  %v1711_v21 = vmax.f32 %v1387_v13, 0.0  ;;  %v1775_v22 = vmax.f32 %v1643_v14, 0.0 }
 0x20d   : > { %v1389_v15 = vpop.f32.mrf.mxu0  ;;  %v1645_v16 = vpop.f32.mrf.mxu1 }
 0x20e   : > { %v1390_v17 = vadd.f32 %v4533_v59, %v1389_v15  ;;  %v1646_v18 = vadd.f32 %v4533_v59, %v1645_v16 }
 0x20f   : > { %v1391_v19 = vpop.f32.mrf.mxu0  ;;  %v1647_v20 = vpop.f32.mrf.mxu1 }
 0x210   : > { %v1712_v23 = vmax.f32 %v1390_v17, 0.0  ;;  %v1776_v24 = vmax.f32 %v1646_v18, 0.0  ;;  %2423 = sbr.rel (!%p4162_p4) target bundleno = 614 (0x266), region = 36 }
 0x212   : > { %v3473_v25 = vpack.c.bf16 %v1712_v23, %v1711_v21  ;;  %v3633_v26 = vpack.c.bf16 %v1776_v24, %v1775_v22 }
 0x214   : > { %3665 = vst [vmem:[%s4372_s12 + $0xf8] sm:$0xff] %v3473_v25   ;;  %3697 = vst [vmem:[%s4372_s12 + $0x1f8] sm:$0xff] %v3633_v26  }
 0x215   : > { %s4800_s25 = smov (!%p2426_p8, %s2425_s25), 128 }
 0x216   : > { %s3168_s30 = sshll.u32 %s4800_s25, 6 }
 0x217   : > { %p3171_p9 = scmp.eq.s32.totalorder %s3168_s30, 0 }
 0x218   : > { %s4602_s4 = sshrl.u32 (!%p3171_p9), %s4800_s25, 6 }
 0x219   : > { %2434 = sbr.rel (%p3171_p9) target bundleno = 614 (0x266), region = 40  ;;  %p3172_p10 = scmp.le.s32.totalorder (!%p3171_p9), %s4602_s4, 0 }
 0x21e   : > { %2841 = sbr.rel (%p3172_p10) target bundleno = 597 (0x255), region = 112  ;;  %s4793_s15 = smov (!%p3172_p10), %s4596_s29 }
 0x21f   : > { %s4794_s20 = smov (!%p3172_p10), %s4372_s12  ;;  %s4611_s23 = smov (!%p3172_p10), 0  }
 0x220   : > { %s4613_s5 = smov (!%p3172_p10), 0  }
 0x223 LB: >> { %v2451_v59 = vld [vmem:[%s4090_s20] sm:$0xf]  ;;  %v2453_v27 = vld [vmem:[%s4090_s20 + $0x4] sm:$0xf]  ;;  %v2455_v28 = vld [vmem:[%s4090_s20 + $0x8] sm:$0xf]  ;;  %s4098_s5 = sphi %s4613_s5, %s2445_s5   ;;  %s4094_s23 = sphi %s4611_s23, %s4795_s23   ;;  %s4090_s20 = sphi %s4794_s20, %s2584_s20   ;;  %s4086_s15 = sphi %s4793_s15, %s2585_s15  }
 0x224   : >> { %2452 = vst [vmem:[%s4086_s15] sm:$0xf] %v2451_v59  ;;  %2454 = vst [vmem:[%s4086_s15 + $0x4] sm:$0xf] %v2453_v27  ;;  %v2457_v29 = vld [vmem:[%s4090_s20 + $0xc] sm:$0xf]  ;;  %s2579_s6 = sadd.s32 1, %s4094_s23 }
 0x225   : >> { %2456 = vst [vmem:[%s4086_s15 + $0x8] sm:$0xf] %v2455_v28  ;;  %v2459_v30 = vld [vmem:[%s4090_s20 + $0x10] sm:$0xf]  ;;  %v2461_v31 = vld [vmem:[%s4090_s20 + $0x14] sm:$0xf]  ;;  %p2580_p11 = scmp.ge.s32.totalorder %s2579_s6, %s4602_s4 }
 0x226   : >> { %2458 = vst [vmem:[%s4086_s15 + $0xc] sm:$0xf] %v2457_v29  ;;  %2460 = vst [vmem:[%s4086_s15 + $0x10] sm:$0xf] %v2459_v30  ;;  %v2463_v32 = vld [vmem:[%s4090_s20 + $0x18] sm:$0xf] }
 0x227   : >> { %2462 = vst [vmem:[%s4086_s15 + $0x14] sm:$0xf] %v2461_v31  ;;  %v2465_v33 = vld [vmem:[%s4090_s20 + $0x1c] sm:$0xf]  ;;  %v2467_v34 = vld [vmem:[%s4090_s20 + $0x20] sm:$0xf] }
 0x228   : >> { %2464 = vst [vmem:[%s4086_s15 + $0x18] sm:$0xf] %v2463_v32  ;;  %2466 = vst [vmem:[%s4086_s15 + $0x1c] sm:$0xf] %v2465_v33  ;;  %v2469_v35 = vld [vmem:[%s4090_s20 + $0x24] sm:$0xf] }
 0x229   : >> { %2468 = vst [vmem:[%s4086_s15 + $0x20] sm:$0xf] %v2467_v34  ;;  %v2471_v36 = vld [vmem:[%s4090_s20 + $0x28] sm:$0xf]  ;;  %v2473_v37 = vld [vmem:[%s4090_s20 + $0x2c] sm:$0xf] }
 0x22a   : >> { %2470 = vst [vmem:[%s4086_s15 + $0x24] sm:$0xf] %v2469_v35  ;;  %2472 = vst [vmem:[%s4086_s15 + $0x28] sm:$0xf] %v2471_v36  ;;  %v2475_v38 = vld [vmem:[%s4090_s20 + $0x30] sm:$0xf] }
 0x22b   : >> { %2474 = vst [vmem:[%s4086_s15 + $0x2c] sm:$0xf] %v2473_v37  ;;  %v2477_v39 = vld [vmem:[%s4090_s20 + $0x34] sm:$0xf]  ;;  %v2479_v40 = vld [vmem:[%s4090_s20 + $0x38] sm:$0xf] }
 0x22c   : >> { %2476 = vst [vmem:[%s4086_s15 + $0x30] sm:$0xf] %v2475_v38  ;;  %2478 = vst [vmem:[%s4086_s15 + $0x34] sm:$0xf] %v2477_v39  ;;  %v2481_v41 = vld [vmem:[%s4090_s20 + $0x3c] sm:$0xf] }
 0x22d   : >> { %2480 = vst [vmem:[%s4086_s15 + $0x38] sm:$0xf] %v2479_v40  ;;  %v2483_v42 = vld [vmem:[%s4090_s20 + $0x40] sm:$0xf]  ;;  %v2485_v43 = vld [vmem:[%s4090_s20 + $0x44] sm:$0xf] }
 0x22e   : >> { %2482 = vst [vmem:[%s4086_s15 + $0x3c] sm:$0xf] %v2481_v41  ;;  %2484 = vst [vmem:[%s4086_s15 + $0x40] sm:$0xf] %v2483_v42  ;;  %v2487_v44 = vld [vmem:[%s4090_s20 + $0x48] sm:$0xf] }
 0x22f   : >> { %2486 = vst [vmem:[%s4086_s15 + $0x44] sm:$0xf] %v2485_v43  ;;  %v2489_v45 = vld [vmem:[%s4090_s20 + $0x4c] sm:$0xf]  ;;  %v2491_v46 = vld [vmem:[%s4090_s20 + $0x50] sm:$0xf] }
 0x230   : >> { %2488 = vst [vmem:[%s4086_s15 + $0x48] sm:$0xf] %v2487_v44  ;;  %2490 = vst [vmem:[%s4086_s15 + $0x4c] sm:$0xf] %v2489_v45  ;;  %v2493_v47 = vld [vmem:[%s4090_s20 + $0x54] sm:$0xf] }
 0x231   : >> { %2492 = vst [vmem:[%s4086_s15 + $0x50] sm:$0xf] %v2491_v46  ;;  %v2495_v48 = vld [vmem:[%s4090_s20 + $0x58] sm:$0xf]  ;;  %v2497_v49 = vld [vmem:[%s4090_s20 + $0x5c] sm:$0xf] }
 0x232   : >> { %2494 = vst [vmem:[%s4086_s15 + $0x54] sm:$0xf] %v2493_v47  ;;  %2496 = vst [vmem:[%s4086_s15 + $0x58] sm:$0xf] %v2495_v48  ;;  %v2499_v50 = vld [vmem:[%s4090_s20 + $0x60] sm:$0xf] }
 0x233   : >> { %2498 = vst [vmem:[%s4086_s15 + $0x5c] sm:$0xf] %v2497_v49  ;;  %v2501_v51 = vld [vmem:[%s4090_s20 + $0x64] sm:$0xf]  ;;  %v2503_v52 = vld [vmem:[%s4090_s20 + $0x68] sm:$0xf] }
 0x234   : >> { %2500 = vst [vmem:[%s4086_s15 + $0x60] sm:$0xf] %v2499_v50  ;;  %2502 = vst [vmem:[%s4086_s15 + $0x64] sm:$0xf] %v2501_v51  ;;  %v2505_v53 = vld [vmem:[%s4090_s20 + $0x6c] sm:$0xf] }
 0x235   : >> { %2504 = vst [vmem:[%s4086_s15 + $0x68] sm:$0xf] %v2503_v52  ;;  %v2507_v54 = vld [vmem:[%s4090_s20 + $0x70] sm:$0xf]  ;;  %v2509_v56 = vld [vmem:[%s4090_s20 + $0x74] sm:$0xf] }
 0x236   : >> { %2506 = vst [vmem:[%s4086_s15 + $0x6c] sm:$0xf] %v2505_v53  ;;  %2508 = vst [vmem:[%s4086_s15 + $0x70] sm:$0xf] %v2507_v54  ;;  %v2511_v57 = vld [vmem:[%s4090_s20 + $0x78] sm:$0xf] }
 0x237   : >> { %2510 = vst [vmem:[%s4086_s15 + $0x74] sm:$0xf] %v2509_v56  ;;  %v2513_v58 = vld [vmem:[%s4090_s20 + $0x7c] sm:$0xf]  ;;  %v2515_v55 = vld [vmem:[%s4090_s20 + $0x80] sm:$0xf] }
 0x238   : >> { %2512 = vst [vmem:[%s4086_s15 + $0x78] sm:$0xf] %v2511_v57  ;;  %2514 = vst [vmem:[%s4086_s15 + $0x7c] sm:$0xf] %v2513_v58  ;;  %v2517_v60 = vld [vmem:[%s4090_s20 + $0x84] sm:$0xf] }
 0x239   : >> { %2516 = vst [vmem:[%s4086_s15 + $0x80] sm:$0xf] %v2515_v55  ;;  %v2519_v61 = vld [vmem:[%s4090_s20 + $0x88] sm:$0xf]  ;;  %v2521_v62 = vld [vmem:[%s4090_s20 + $0x8c] sm:$0xf] }
 0x23a   : >> { %2518 = vst [vmem:[%s4086_s15 + $0x84] sm:$0xf] %v2517_v60  ;;  %2520 = vst [vmem:[%s4086_s15 + $0x88] sm:$0xf] %v2519_v61  ;;  %v2523_v63 = vld [vmem:[%s4090_s20 + $0x90] sm:$0xf] }
 0x23b   : >> { %2522 = vst [vmem:[%s4086_s15 + $0x8c] sm:$0xf] %v2521_v62  ;;  %v2525_v0 = vld [vmem:[%s4090_s20 + $0x94] sm:$0xf]  ;;  %v2527_v1 = vld [vmem:[%s4090_s20 + $0x98] sm:$0xf] }
 0x23c   : >> { %2524 = vst [vmem:[%s4086_s15 + $0x90] sm:$0xf] %v2523_v63  ;;  %2526 = vst [vmem:[%s4086_s15 + $0x94] sm:$0xf] %v2525_v0  ;;  %v2529_v2 = vld [vmem:[%s4090_s20 + $0x9c] sm:$0xf] }
 0x23d   : >> { %2528 = vst [vmem:[%s4086_s15 + $0x98] sm:$0xf] %v2527_v1  ;;  %v2531_v3 = vld [vmem:[%s4090_s20 + $0xa0] sm:$0xf]  ;;  %v2533_v4 = vld [vmem:[%s4090_s20 + $0xa4] sm:$0xf] }
 0x23e   : >> { %2530 = vst [vmem:[%s4086_s15 + $0x9c] sm:$0xf] %v2529_v2  ;;  %2532 = vst [vmem:[%s4086_s15 + $0xa0] sm:$0xf] %v2531_v3  ;;  %v2535_v5 = vld [vmem:[%s4090_s20 + $0xa8] sm:$0xf] }
 0x23f   : >> { %2534 = vst [vmem:[%s4086_s15 + $0xa4] sm:$0xf] %v2533_v4  ;;  %v2537_v6 = vld [vmem:[%s4090_s20 + $0xac] sm:$0xf]  ;;  %v2539_v7 = vld [vmem:[%s4090_s20 + $0xb0] sm:$0xf] }
 0x240   : >> { %2536 = vst [vmem:[%s4086_s15 + $0xa8] sm:$0xf] %v2535_v5  ;;  %2538 = vst [vmem:[%s4086_s15 + $0xac] sm:$0xf] %v2537_v6  ;;  %v2541_v8 = vld [vmem:[%s4090_s20 + $0xb4] sm:$0xf] }
 0x241   : >> { %2540 = vst [vmem:[%s4086_s15 + $0xb0] sm:$0xf] %v2539_v7  ;;  %v2543_v9 = vld [vmem:[%s4090_s20 + $0xb8] sm:$0xf]  ;;  %v2545_v10 = vld [vmem:[%s4090_s20 + $0xbc] sm:$0xf] }
 0x242   : >> { %2542 = vst [vmem:[%s4086_s15 + $0xb4] sm:$0xf] %v2541_v8  ;;  %2544 = vst [vmem:[%s4086_s15 + $0xb8] sm:$0xf] %v2543_v9  ;;  %v2547_v11 = vld [vmem:[%s4090_s20 + $0xc0] sm:$0xf] }
 0x243   : >> { %2546 = vst [vmem:[%s4086_s15 + $0xbc] sm:$0xf] %v2545_v10  ;;  %v2549_v12 = vld [vmem:[%s4090_s20 + $0xc4] sm:$0xf]  ;;  %v2551_v13 = vld [vmem:[%s4090_s20 + $0xc8] sm:$0xf] }
 0x244   : >> { %2548 = vst [vmem:[%s4086_s15 + $0xc0] sm:$0xf] %v2547_v11  ;;  %2550 = vst [vmem:[%s4086_s15 + $0xc4] sm:$0xf] %v2549_v12  ;;  %v2553_v14 = vld [vmem:[%s4090_s20 + $0xcc] sm:$0xf] }
 0x245   : >> { %2552 = vst [vmem:[%s4086_s15 + $0xc8] sm:$0xf] %v2551_v13  ;;  %v2555_v15 = vld [vmem:[%s4090_s20 + $0xd0] sm:$0xf]  ;;  %v2557_v16 = vld [vmem:[%s4090_s20 + $0xd4] sm:$0xf] }
 0x246   : >> { %2554 = vst [vmem:[%s4086_s15 + $0xcc] sm:$0xf] %v2553_v14  ;;  %2556 = vst [vmem:[%s4086_s15 + $0xd0] sm:$0xf] %v2555_v15  ;;  %v2559_v17 = vld [vmem:[%s4090_s20 + $0xd8] sm:$0xf] }
 0x247   : >> { %2558 = vst [vmem:[%s4086_s15 + $0xd4] sm:$0xf] %v2557_v16  ;;  %v2561_v18 = vld [vmem:[%s4090_s20 + $0xdc] sm:$0xf]  ;;  %v2563_v19 = vld [vmem:[%s4090_s20 + $0xe0] sm:$0xf] }
 0x248   : >> { %2560 = vst [vmem:[%s4086_s15 + $0xd8] sm:$0xf] %v2559_v17  ;;  %2562 = vst [vmem:[%s4086_s15 + $0xdc] sm:$0xf] %v2561_v18  ;;  %v2565_v20 = vld [vmem:[%s4090_s20 + $0xe4] sm:$0xf] }
 0x249   : >> { %2564 = vst [vmem:[%s4086_s15 + $0xe0] sm:$0xf] %v2563_v19  ;;  %v2567_v21 = vld [vmem:[%s4090_s20 + $0xe8] sm:$0xf]  ;;  %v2569_v22 = vld [vmem:[%s4090_s20 + $0xec] sm:$0xf] }
 0x24a   : >> { %2566 = vst [vmem:[%s4086_s15 + $0xe4] sm:$0xf] %v2565_v20  ;;  %2568 = vst [vmem:[%s4086_s15 + $0xe8] sm:$0xf] %v2567_v21  ;;  %v2571_v23 = vld [vmem:[%s4090_s20 + $0xf0] sm:$0xf] }
 0x24b   : >> { %2570 = vst [vmem:[%s4086_s15 + $0xec] sm:$0xf] %v2569_v22  ;;  %v2573_v24 = vld [vmem:[%s4090_s20 + $0xf4] sm:$0xf]  ;;  %v2575_v25 = vld [vmem:[%s4090_s20 + $0xf8] sm:$0xf] }
 0x24c   : >> { %2572 = vst [vmem:[%s4086_s15 + $0xf0] sm:$0xf] %v2571_v23  ;;  %2574 = vst [vmem:[%s4086_s15 + $0xf4] sm:$0xf] %v2573_v24  ;;  %v2577_v26 = vld [vmem:[%s4090_s20 + $0xfc] sm:$0xf] }
 0x24d   : >> { %2576 = vst [vmem:[%s4086_s15 + $0xf8] sm:$0xf] %v2575_v25  ;;  %2578 = vst [vmem:[%s4086_s15 + $0xfc] sm:$0xf] %v2577_v26  ;;  %s4802_s6 = smov (%p2580_p11, %s2579_s6), 0  ;;  %s2445_s5 = sadd.s32 1, %s4098_s5  }
 0x24e   : >> { %s3173_s7 = sshll.u32 %s4802_s6, 8  ;;  %p2444_p12 = scmp.ge.s32.totalorder %s2445_s5, %s4602_s4 }
 0x24f   : >> { %s2584_s20 = scalar_lea.vmem %s4372_s12, %s3173_s7 [#allocation2]   ;;  %s2585_s15 = scalar_lea.vmem %s4596_s29, %s3173_s7  }
 0x250   : >> { %s4795_s23 = smov %s4802_s6  ;;  %2447 = sbr.rel (!%p2444_p12) target bundleno = 547 (0x223), region = 118 }
 0x255 PF: > { %s4770_s8 = sand.u32 63, %s4800_s25   ;;  %s3313_s10 = sshll.u32 %s4602_s4, 8 }
 0x256   : > { %s2590_s11 = scalar_lea.vmem %s4372_s12, %s3313_s10 [#allocation2]   ;;  %s2592_s14 = scalar_lea.vmem %s4596_s29, %s3313_s10  }
 0x257   : > { %p3178_p13 = scmp.le.s32.totalorder %s4770_s8, 0 }
 0x258   : > { %s4100_s17 = smov (!%p3178_p13), %s2592_s14   ;;  %s4104_s18 = smov (!%p3178_p13), %s2590_s11  }
 0x259   : > { %2855 = sbr.rel (%p3178_p13) target bundleno = 614 (0x266), region = 123  ;;  %s4108_s21 = smov (!%p3178_p13), 0  }
 0x25a   : > { %s4112_s22 = smov (!%p3178_p13), 0  }
 0x25e LB: >> { %v2602_v59 = vld [vmem:[%s4106_s18] sm:$0xf]  ;;  %s2604_s9 = sadd.s32 1, %s4110_s21  ;;  %s2596_s22 = sadd.s32 1, %s4114_s22   ;;  %s4114_s22 = sphi %s4112_s22, %s2596_s22   ;;  %s4110_s21 = sphi %s4108_s21, %s4109_s21   ;;  %s4106_s18 = sphi %s4104_s18, %s2609_s18   ;;  %s4102_s17 = sphi %s4100_s17, %s2610_s17  }
 0x25f   : >> { %2603 = vst [vmem:[%s4102_s17] sm:$0xf] %v2602_v59  ;;  %p2605_p0 = scmp.ge.s32.totalorder %s2604_s9, %s4770_s8  ;;  %p2595_p1 = scmp.ge.s32.totalorder %s2596_s22, %s4770_s8 }
 0x261   : >> { %s4804_s9 = smov (%p2605_p0, %s2604_s9), 0  ;;  %2598 = sbr.rel (!%p2595_p1) target bundleno = 606 (0x25e), region = 129 }
 0x262   : >> { %s3179_s12 = sshll.u32 %s4804_s9, 2  ;;  %s4109_s21 = smov %s4804_s9  }
 0x263   : >> { %s2609_s18 = scalar_lea.vmem %s2590_s11, %s3179_s12 [#allocation2]   ;;  %s2610_s17 = scalar_lea.vmem %s2592_s14, %s3179_s12  }
 0x266 PF: > { %p10_p2 = scmp.ge.s32.totalorder %s4152_s16, 13   ;;  %s4796_s12 = smov %s4078_s13 }
 0x267   : > { %s4797_s13 = smov %s4160_s19  ;;  %s4798_s14 = smov %s4152_s16 }
 0x268   :  { %12 = sbr.rel (!%p10_p2) target bundleno = 2 (0x2), region = 140 }

// kernel: feature_net_forward.14
= control target key start
LH: loop header
LB: loop body
LE: loop exit
PB: predicated region body
PF: predicated region fallthrough
CT: control target
= control target key end

     0   :  { %s3950_s12 = smov 0   ;;  %s4799_s0 = inlined_call_operand.vmem [shape: bf16[512,1152], index: 0, kind: input, shape index: {}]   ;;  %s4800_s1 = inlined_call_operand.vmem [shape: bf16[1152,128], index: 1, kind: input, shape index: {}]   ;;  %s4801_s2 = inlined_call_operand.vmem [shape: f32[1,128], index: 2, kind: input, shape index: {}]   ;;  %s4802_s3 = inlined_call_operand.vmem [shape: bf16[512,128], index: 3, kind: output, shape index: {}]  }
   0x1 LB: > { %s2710_s13 = sadd.s32 4294967295, %s3928_s12   ;;  %p2714_p0 = scmp.ge.s32.totalorder %s3928_s12, 1  ;;  %s3928_s12 = sphi %s3950_s12, %s13_s12  }
   0x2   : > { %p139_p1 = scmp.lt.s32.totalorder %s3928_s12, 3 }
   0x4   : > { %p140_p2 = pnand %p2714_p0, %p139_p1 }
   0x6   : > { %143 = sbr.rel (%p140_p2) target bundleno = 534 (0x216), region = 32 }
   0xb   : > { %v3642_v0 = vld [vmem:[%s4800_s1 + $0x78] sm:$0xff]   ;;  %s2715_s16 = sshll.u32 %s2710_s13, 5  ;;  %v3644_v2 = vld [vmem:[%s4800_s1 + $0x70] sm:$0xff]   ;;  %v3646_v4 = vld [vmem:[%s4800_s1 + $0x68] sm:$0xff]  }
   0xc   : > { %v3643_v1 = vld [vmem:[%s4800_s1 + $0x38] sm:$0xff]   ;;  %3097 = vmatprep.subr.bf16.mxu0 %v3642_v0  ;;  %3617 = vmatprep.subr.bf16.mxu1 %v3642_v0  ;;  %p165_p3 = scmp.lt.s32.totalorder %s2715_s16, 63  ;;  %v3645_v3 = vld [vmem:[%s4800_s1 + $0x30] sm:$0xff]   ;;  %v3647_v5 = vld [vmem:[%s4800_s1 + $0x28] sm:$0xff]  }
   0xd   : > { %3098 = vmatpush3.bf16.msra.mxu0 %v3643_v1  ;;  %3625 = vmatpush3.bf16.msra.mxu1 %v3643_v1  ;;  %v3648_v6 = vld [vmem:[%s4800_s1 + $0x60] sm:$0xff]   ;;  %v3650_v8 = vld [vmem:[%s4800_s1 + $0x58] sm:$0xff]   ;;  %v3652_v10 = vld [vmem:[%s4800_s1 + $0x50] sm:$0xff]  }
   0xe   : > { %3099 = vmatprep.subr.bf16.mxu0 %v3644_v2  ;;  %3618 = vmatprep.subr.bf16.mxu1 %v3644_v2  ;;  %s4826_s16 = smov (!%p165_p3, %s2715_s16), 63  ;;  %v3649_v7 = vld [vmem:[%s4800_s1 + $0x20] sm:$0xff]   ;;  %v3651_v9 = vld [vmem:[%s4800_s1 + $0x18] sm:$0xff]   ;;  %v3653_v13 = vld [vmem:[%s4800_s1 + $0x10] sm:$0xff]  }
   0xf   : > { %s3633_s29 = smul.u32 36, %s4826_s16  ;;  %v3654_v14 = vld [vmem:[%s4800_s1 + $0x48] sm:$0xff]   ;;  %v3656_v16 = vld [vmem:[%s4800_s1 + $0x40] sm:$0xff]   ;;  %v3664_v18 = vld [vmem:[%s4800_s1 + $0xf8] sm:$0xff]  }
  0x10   : > { %v3655_v15 = vld [vmem:[%s4800_s1 + $0x8] sm:$0xff]   ;;  %v3657_v17 = vld [vmem:[%s4800_s1] sm:$0xff]   ;;  %v3667_v21 = vld [vmem:[%s4800_s1 + $0x178] sm:$0xff]  }
  0x11   : > { %3100 = vmatpush3.bf16.msra.mxu0 %v3645_v3  ;;  %3626 = vmatpush3.bf16.msra.mxu1 %v3645_v3  ;;  %s3991_s9 = scalar_lea.vmem %s4799_s0, %s3633_s29  ;;  %v3665_v22 = vld [vmem:[%s4800_s1 + $0xb8] sm:$0xff]   ;;  %v3666_v23 = vld [vmem:[%s4800_s1 + $0xf0] sm:$0xff]   ;;  %v3676_v31 = vld [vmem:[%s4800_s1 + $0xe8] sm:$0xff]  }
  0x12   : > { %3101 = vmatprep.subr.bf16.mxu0 %v3646_v4  ;;  %3619 = vmatprep.subr.bf16.mxu1 %v3646_v4  ;;  %v3660_v11 = vld [vmem:[%s3991_s9 + $0x4] ss:$36 sps:$4 sm:$0xff]   ;;  %v3669_v24 = vld [vmem:[%s4800_s1 + $0x138] sm:$0xff]   ;;  %v3670_v25 = vld [vmem:[%s3991_s9 + $0x4c] ss:$36 sps:$4 sm:$0xff]  }
  0x13   : > { %v3663_v12 = vld [vmem:[%s3991_s9 + $0x364] ss:$36 sps:$4 sm:$0xff]   ;;  %1689 = vmatprep.mubr.bf16.mxu0 %v3660_v11  ;;  %v3672_v26 = vld [vmem:[%s3991_s9 + $0x3ac] ss:$36 sps:$4 sm:$0xff]   ;;  %v3680_v35 = vld [vmem:[%s3991_s9 + $0x94] ss:$36 sps:$4 sm:$0xff]  }
  0x14   : > { %1785 = vmatprep.mubr.bf16.mxu1 %v3663_v12  ;;  %v3658_v19 = vld [vmem:[%s3991_s9] ss:$36 sps:$4 sm:$0xff]   ;;  %v3668_v27 = vld [vmem:[%s4800_s1 + $0xb0] sm:$0xff]   ;;  %v3674_v29 = vld [vmem:[%s3991_s9 + $0x48] ss:$36 sps:$4 sm:$0xff]  }
  0x15   : > { %3102 = vmatpush3.bf16.msra.mxu0 %v3647_v5  ;;  %3627 = vmatpush3.bf16.msra.mxu1 %v3647_v5  ;;  %v3661_v20 = vld [vmem:[%s3991_s9 + $0x360] ss:$36 sps:$4 sm:$0xff]   ;;  %v3687_v28 = vld [vmem:[%s4800_s1 + $0x170] sm:$0xff]   ;;  %v3675_v30 = vld [vmem:[%s3991_s9 + $0x3a8] ss:$36 sps:$4 sm:$0xff]  }
  0x16   : > { %3103 = vmatprep.subr.bf16.mxu0 %v3648_v6  ;;  %3620 = vmatprep.subr.bf16.mxu1 %v3648_v6  ;;  %v3677_v32 = vld [vmem:[%s4800_s1 + $0xa8] sm:$0xff]   ;;  %v3689_v33 = vld [vmem:[%s4800_s1 + $0x130] sm:$0xff]   ;;  %v3678_v34 = vld [vmem:[%s4800_s1 + $0xe0] sm:$0xff]  }
  0x17   : > { %v3682_v36 = vld [vmem:[%s3991_s9 + $0x3f4] ss:$36 sps:$4 sm:$0xff]   ;;  %v3679_v37 = vld [vmem:[%s4800_s1 + $0xa0] sm:$0xff]   ;;  %v3701_v43 = vld [vmem:[%s4800_s1 + $0x168] sm:$0xff]  }
  0x18   : > { %v3684_v38 = vld [vmem:[%s3991_s9 + $0x90] ss:$36 sps:$4 sm:$0xff]   ;;  %v3686_v40 = vld [vmem:[%s4800_s1 + $0xd8] sm:$0xff]   ;;  %v3703_v46 = vld [vmem:[%s4800_s1 + $0x128] sm:$0xff]  }
  0x19   : > { %3104 = vmatpush3.bf16.msra.mxu0 %v3649_v7  ;;  %3628 = vmatpush3.bf16.msra.mxu1 %v3649_v7  ;;  %v3685_v39 = vld [vmem:[%s3991_s9 + $0x3f0] ss:$36 sps:$4 sm:$0xff]   ;;  %v3688_v41 = vld [vmem:[%s4800_s1 + $0x98] sm:$0xff]   ;;  %v3698_v48 = vld [vmem:[%s4800_s1 + $0xc8] sm:$0xff]  }
  0x1a   : > { %3105 = vmatprep.subr.bf16.mxu0 %v3650_v8  ;;  %3621 = vmatprep.subr.bf16.mxu1 %v3650_v8  ;;  %v3690_v42 = vld [vmem:[%s4800_s1 + $0xd0] sm:$0xff]   ;;  %v3692_v44 = vld [vmem:[%s3991_s9 + $0xdc] ss:$36 sps:$4 sm:$0xff]   ;;  %v3699_v51 = vld [vmem:[%s4800_s1 + $0x88] sm:$0xff]  }
  0x1b   : > { %v3694_v45 = vld [vmem:[%s3991_s9 + $0x43c] ss:$36 sps:$4 sm:$0xff]   ;;  %v3691_v47 = vld [vmem:[%s4800_s1 + $0x90] sm:$0xff]   ;;  %v3704_v53 = vld [vmem:[%s3991_s9 + $0x124] ss:$36 sps:$4 sm:$0xff]  }
  0x1c   : > { %v3696_v49 = vld [vmem:[%s3991_s9 + $0xd8] ss:$36 sps:$4 sm:$0xff]   ;;  %v3700_v52 = vld [vmem:[%s4800_s1 + $0xc0] sm:$0xff]   ;;  %v3708_v54 = vld [vmem:[%s3991_s9 + $0xc] ss:$36 sps:$4 sm:$0xff]  }
  0x1d   : > { %3106 = vmatpush3.bf16.msra.mxu0 %v3651_v9  ;;  %3629 = vmatpush3.bf16.msra.mxu1 %v3651_v9  ;;  %v3697_v50 = vld [vmem:[%s3991_s9 + $0x438] ss:$36 sps:$4 sm:$0xff]   ;;  %v3718_v55 = vld [vmem:[%s4800_s1 + $0x160] sm:$0xff]   ;;  %v3706_v58 = vld [vmem:[%s3991_s9 + $0x8] ss:$36 sps:$4 sm:$0xff]  }
  0x1e   : > { %3107 = vmatprep.subr.bf16.mxu0 %v3652_v10  ;;  %3622 = vmatprep.subr.bf16.mxu1 %v3652_v10  ;;  %v3719_v56 = vld [vmem:[%s4800_s1 + $0x120] sm:$0xff]   ;;  %v3710_v60 = vld [vmem:[%s4800_s1 + $0x1f8] sm:$0xff]   ;;  %v3712_v62 = vld [vmem:[%s3991_s9 + $0x16c] ss:$36 sps:$4 sm:$0xff]  }
  0x1f   : > { %v3702_v57 = vld [vmem:[%s4800_s1 + $0x80] sm:$0xff]   ;;  %v3711_v61 = vld [vmem:[%s4800_s1 + $0x1b8] sm:$0xff]   ;;  %v3726_v1 = vld [vmem:[%s4800_s1 + $0x1f0] sm:$0xff]  }
  0x20   : > { %v3709_v59 = vld [vmem:[%s3991_s9 + $0x120] ss:$36 sps:$4 sm:$0xff]   ;;  %v3714_v63 = vld [vmem:[%s3991_s9 + $0x54] ss:$36 sps:$4 sm:$0xff]   ;;  %v3716_v4 = vld [vmem:[%s3991_s9 + $0x168] ss:$36 sps:$4 sm:$0xff]  }
  0x21   : > { %3108 = vmatpush3.bf16.msra.mxu0 %v3653_v13  ;;  %3630 = vmatpush3.bf16.msra.mxu1 %v3653_v13  ;;  %v3728_v0 = vld [vmem:[%s4800_s1 + $0x158] sm:$0xff]   ;;  %v3727_v3 = vld [vmem:[%s4800_s1 + $0x1b0] sm:$0xff]   ;;  %v3743_v9 = vld [vmem:[%s4800_s1 + $0x1e8] sm:$0xff]  }
  0x22   : > { %3109 = vmatprep.subr.bf16.mxu0 %v3654_v14  ;;  %3623 = vmatprep.subr.bf16.mxu1 %v3654_v14  ;;  %v3729_v2 = vld [vmem:[%s4800_s1 + $0x118] sm:$0xff]   ;;  %v3717_v5 = vld [vmem:[%s3991_s9 + $0x50] ss:$36 sps:$4 sm:$0xff]   ;;  %v3745_v11 = vld [vmem:[%s4800_s1 + $0x1a8] sm:$0xff]  }
  0x23   : > { %v3720_v6 = vld [vmem:[%s3991_s9 + $0x1b4] ss:$36 sps:$4 sm:$0xff]   ;;  %v3722_v7 = vld [vmem:[%s3991_s9 + $0x9c] ss:$36 sps:$4 sm:$0xff]  }
  0x24   : > { %v3742_v8 = vld [vmem:[%s4800_s1 + $0x150] sm:$0xff]   ;;  %v3725_v13 = vld [vmem:[%s3991_s9 + $0x98] ss:$36 sps:$4 sm:$0xff]  }
  0x25   : > { %3110 = vmatpush3.bf16.msra.mxu0 %v3655_v15  ;;  %3631 = vmatpush3.bf16.msra.mxu1 %v3655_v15  ;;  %v3744_v10 = vld [vmem:[%s4800_s1 + $0x110] sm:$0xff]   ;;  %v3730_v14 = vld [vmem:[%s3991_s9 + $0x1fc] ss:$36 sps:$4 sm:$0xff]   ;;  %v3752_v15 = vld [vmem:[%s4800_s1 + $0x148] sm:$0xff]  }
  0x26   : > { %3111 = vmatprep.subr.bf16.mxu0 %v3656_v16  ;;  %3624 = vmatprep.subr.bf16.mxu1 %v3656_v16  ;;  %v3724_v12 = vld [vmem:[%s3991_s9 + $0x1b0] ss:$36 sps:$4 sm:$0xff]   ;;  %v3753_v16 = vld [vmem:[%s4800_s1 + $0x108] sm:$0xff]  }
  0x29   : > { %3112 = vmatpush3.bf16.msra.mxu0 %v3657_v17  ;;  %3632 = vmatpush3.bf16.msra.mxu1 %v3657_v17  ;;  %v3732_v17 = vld [vmem:[%s3991_s9 + $0xe4] ss:$36 sps:$4 sm:$0xff]  }
  0x2a   : > { %3209 = vmatprep.subr.bf16.mxu1 %v3664_v18  ;;  %3321 = vmatprep.subr.bf16.mxu0 %v3667_v21  ;;  %v3760_v18 = vld [vmem:[%s4800_s1 + $0x1e0] sm:$0xff]  }
  0x2b   : > { %v3735_v21 = vld [vmem:[%s3991_s9 + $0xe0] ss:$36 sps:$4 sm:$0xff]  }
  0x2c   : > { %1690 = vmatmul.mubr.bf16.vlgmr.msra.gmra.mxu0 %v3658_v19  ;;  %1786 = vmatmul.mubr.bf16.vlgmr.msra.gmra.mxu1 %v3661_v20  ;;  %v3761_v19 = vld [vmem:[%s4800_s1 + $0x1a0] sm:$0xff]   ;;  %v3734_v20 = vld [vmem:[%s3991_s9 + $0x1f8] ss:$36 sps:$4 sm:$0xff]  }
  0x2d   : > { %3210 = vmatpush3.bf16.msra.mxu1 %v3665_v22  ;;  %3322 = vmatpush3.bf16.msra.mxu0 %v3669_v24  ;;  %v3736_v22 = vld [vmem:[%s3991_s9 + $0x244] ss:$36 sps:$4 sm:$0xff]  }
  0x2e   : > { %3211 = vmatprep.subr.bf16.mxu1 %v3666_v23  ;;  %1697 = vmatprep.mubr.bf16.mxu0 %v3670_v25  ;;  %v3738_v23 = vld [vmem:[%s3991_s9 + $0x12c] ss:$36 sps:$4 sm:$0xff]   ;;  %v3768_v24 = vld [vmem:[%s4800_s1 + $0x140] sm:$0xff]  }
  0x2f   : > { %1793 = vmatprep.mubr.bf16.mxu1 %v3672_v26  ;;  %3323 = vmatprep.subr.bf16.mxu0 %v3687_v28  ;;  %v3769_v25 = vld [vmem:[%s4800_s1 + $0x100] sm:$0xff]   ;;  %v3776_v26 = vld [vmem:[%s4800_s1 + $0x1d8] sm:$0xff]  }
  0x30   : > { %v3777_v28 = vld [vmem:[%s4800_s1 + $0x198] sm:$0xff]  }
  0x31   : > { %3212 = vmatpush3.bf16.msra.mxu1 %v3668_v27  ;;  %3324 = vmatpush3.bf16.msra.mxu0 %v3689_v33  ;;  %v3740_v27 = vld [vmem:[%s3991_s9 + $0x240] ss:$36 sps:$4 sm:$0xff]   ;;  %v3791_v33 = vld [vmem:[%s4800_s1 + $0x1d0] sm:$0xff]  }
  0x32   : > { %3213 = vmatprep.subr.bf16.mxu1 %v3676_v31  ;;  %3325 = vmatprep.subr.bf16.mxu0 %v3701_v43  ;;  %v3746_v31 = vld [vmem:[%s3991_s9 + $0x28c] ss:$36 sps:$4 sm:$0xff]   ;;  %v3762_v43 = vld [vmem:[%s3991_s9 + $0x31c] ss:$36 sps:$4 sm:$0xff]  }
  0x34   : > { %1698 = vmatmul.mubr.bf16.gmra.mxu0 %v3674_v29  ;;  %1794 = vmatmul.mubr.bf16.gmra.mxu1 %v3675_v30  ;;  %v3778_v29 = vld [vmem:[%s4800_s1 + $0x238] sm:$0xff]   ;;  %v3741_v30 = vld [vmem:[%s3991_s9 + $0x128] ss:$36 sps:$4 sm:$0xff]  }
  0x35   : > { %3214 = vmatpush3.bf16.msra.mxu1 %v3677_v32  ;;  %1705 = vmatprep.mubr.bf16.mxu0 %v3680_v35  ;;  %v3748_v32 = vld [vmem:[%s3991_s9 + $0x174] ss:$36 sps:$4 sm:$0xff]  }
  0x36   : > { %3215 = vmatprep.subr.bf16.mxu1 %v3678_v34  ;;  %1801 = vmatprep.mubr.bf16.mxu1 %v3682_v36  ;;  %v3750_v34 = vld [vmem:[%s3991_s9 + $0x288] ss:$36 sps:$4 sm:$0xff]   ;;  %v3792_v35 = vld [vmem:[%s4800_s1 + $0x190] sm:$0xff]  }
  0x37   : > { %3326 = vmatpush3.bf16.msra.mxu0 %v3703_v46  ;;  %v3751_v36 = vld [vmem:[%s3991_s9 + $0x170] ss:$36 sps:$4 sm:$0xff]   ;;  %v3767_v46 = vld [vmem:[%s3991_s9 + $0x200] ss:$36 sps:$4 sm:$0xff]  }
  0x38   : > { %3327 = vmatprep.subr.bf16.mxu0 %v3718_v55  ;;  %v3793_v55 = vld [vmem:[%s4800_s1 + $0x230] sm:$0xff]  }
  0x39   : > { %3216 = vmatpush3.bf16.msra.mxu1 %v3679_v37  ;;  %v3754_v37 = vld [vmem:[%s3991_s9 + $0x2d4] ss:$36 sps:$4 sm:$0xff]  }
  0x3a   : > { %3217 = vmatprep.subr.bf16.mxu1 %v3686_v40  ;;  %v3759_v40 = vld [vmem:[%s3991_s9 + $0x1b8] ss:$36 sps:$4 sm:$0xff]  }
  0x3b   : > { %3328 = vmatpush3.bf16.msra.mxu0 %v3719_v56  ;;  %v3808_v56 = vld [vmem:[%s4800_s1 + $0x228] sm:$0xff]  }
  0x3c   : > { %1706 = vmatmul.mubr.bf16.gmra.mxu0 %v3684_v38  ;;  %1802 = vmatmul.mubr.bf16.gmra.mxu1 %v3685_v39  ;;  %v3756_v38 = vld [vmem:[%s3991_s9 + $0x1bc] ss:$36 sps:$4 sm:$0xff]   ;;  %v3758_v39 = vld [vmem:[%s3991_s9 + $0x2d0] ss:$36 sps:$4 sm:$0xff]  }
  0x3d   : > { %3218 = vmatpush3.bf16.msra.mxu1 %v3688_v41  ;;  %1713 = vmatprep.mubr.bf16.mxu0 %v3692_v44  ;;  %v3806_v41 = vld [vmem:[%s4800_s1 + $0x1c8] sm:$0xff]  }
  0x3e   : > { %3219 = vmatprep.subr.bf16.mxu1 %v3690_v42  ;;  %1809 = vmatprep.mubr.bf16.mxu1 %v3694_v45  ;;  %v3807_v42 = vld [vmem:[%s4800_s1 + $0x188] sm:$0xff]   ;;  %v3766_v45 = vld [vmem:[%s3991_s9 + $0x318] ss:$36 sps:$4 sm:$0xff]  }
  0x3f   : > { %3329 = vmatprep.subr.bf16.mxu0 %v3728_v0  ;;  %v3764_v44 = vld [vmem:[%s3991_s9 + $0x204] ss:$36 sps:$4 sm:$0xff]  }
  0x40   : > { %3330 = vmatpush3.bf16.msra.mxu0 %v3729_v2  ;;  %v3790_v0 = vld [vmem:[%s3991_s9 + $0xa0] ss:$36 sps:$4 sm:$0xff]   ;;  %v3796_v2 = vld [vmem:[%s3991_s9 + $0xec] ss:$36 sps:$4 sm:$0xff]  }
  0x41   : > { %3220 = vmatpush3.bf16.msra.mxu1 %v3691_v47  ;;  %3331 = vmatprep.subr.bf16.mxu0 %v3742_v8  ;;  %v3821_v47 = vld [vmem:[%s4800_s1 + $0x1c0] sm:$0xff]   ;;  %v3802_v8 = vld [vmem:[%s3991_s9 + $0x134] ss:$36 sps:$4 sm:$0xff]  }
  0x42   : > { %3221 = vmatprep.subr.bf16.mxu1 %v3698_v48  ;;  %v3822_v48 = vld [vmem:[%s4800_s1 + $0x180] sm:$0xff]  }
  0x44   : > { %1714 = vmatmul.mubr.bf16.gmra.mxu0 %v3696_v49  ;;  %1810 = vmatmul.mubr.bf16.gmra.mxu1 %v3697_v50  ;;  %v3770_v49 = vld [vmem:[%s3991_s9 + $0x24c] ss:$36 sps:$4 sm:$0xff]   ;;  %v3774_v50 = vld [vmem:[%s3991_s9 + $0x14] ss:$36 sps:$4 sm:$0xff]  }
  0x45   : > { %3222 = vmatpush3.bf16.msra.mxu1 %v3699_v51  ;;  %1721 = vmatprep.mubr.bf16.mxu0 %v3704_v53  ;;  %v3772_v51 = vld [vmem:[%s3991_s9 + $0x10] ss:$36 sps:$4 sm:$0xff]  }
  0x46   : > { %3223 = vmatprep.subr.bf16.mxu1 %v3700_v52  ;;  %1850 = vmatprep.mubr.bf16.mxu1 %v3708_v54  ;;  %v3775_v52 = vld [vmem:[%s3991_s9 + $0x248] ss:$36 sps:$4 sm:$0xff]   ;;  %v3779_v53 = vld [vmem:[%s3991_s9 + $0x294] ss:$36 sps:$4 sm:$0xff]   ;;  %v3781_v54 = vld [vmem:[%s3991_s9 + $0x5c] ss:$36 sps:$4 sm:$0xff]  }
  0x47   : > { %3332 = vmatpush3.bf16.msra.mxu0 %v3744_v10  ;;  %v3804_v10 = vld [vmem:[%s3991_s9 + $0x368] ss:$36 sps:$4 sm:$0xff]  }
  0x48   : > { %3333 = vmatprep.subr.bf16.mxu0 %v3752_v15  ;;  %v3814_v15 = vld [vmem:[%s3991_s9 + $0x178] ss:$36 sps:$4 sm:$0xff]  }
  0x49   : > { %3224 = vmatpush3.bf16.msra.mxu1 %v3702_v57  ;;  %v3783_v57 = vld [vmem:[%s3991_s9 + $0x290] ss:$36 sps:$4 sm:$0xff]  }
  0x4a   : > { %3433 = vmatprep.subr.bf16.mxu1 %v3710_v60  ;;  %v3787_v60 = vld [vmem:[%s3991_s9 + $0xa4] ss:$36 sps:$4 sm:$0xff]  }
  0x4b   : > { %3334 = vmatpush3.bf16.msra.mxu0 %v3753_v16  ;;  %v3815_v16 = vld [vmem:[%s3991_s9 + $0x3fc] ss:$36 sps:$4 sm:$0xff]  }
  0x4c   : > { %1722 = vmatmul.mubr.bf16.gmra.mxu0 %v3709_v59  ;;  %1851 = vmatmul.mubr.bf16.vlgmr.msra.gmra.mxu1 %v3706_v58  ;;  %v3784_v58 = vld [vmem:[%s3991_s9 + $0x58] ss:$36 sps:$4 sm:$0xff]  }
  0x4d   : > { %3434 = vmatpush3.bf16.msra.mxu1 %v3711_v61  ;;  %1729 = vmatprep.mubr.bf16.mxu0 %v3712_v62  ;;  %v3785_v59 = vld [vmem:[%s3991_s9 + $0x2dc] ss:$36 sps:$4 sm:$0xff]  }
  0x4e   : > { %1858 = vmatprep.mubr.bf16.mxu1 %v3714_v63  ;;  %3435 = vmatprep.subr.bf16.mxu1 %v3726_v1  ;;  %v3823_v61 = vld [vmem:[%s4800_s1 + $0x220] sm:$0xff]   ;;  %v3789_v62 = vld [vmem:[%s3991_s9 + $0x2d8] ss:$36 sps:$4 sm:$0xff]  }
  0x4f   : > { %3335 = vmatprep.subr.bf16.mxu0 %v3768_v24  ;;  %v3836_v63 = vld [vmem:[%s4800_s1 + $0x218] sm:$0xff]   ;;  %v3794_v1 = vld [vmem:[%s3991_s9 + $0x324] ss:$36 sps:$4 sm:$0xff]  }
  0x50   : > { %3336 = vmatpush3.bf16.msra.mxu0 %v3769_v25  ;;  %v3830_v24 = vld [vmem:[%s3991_s9 + $0x254] ss:$36 sps:$4 sm:$0xff]   ;;  %v3834_v25 = vld [vmem:[%s3991_s9 + $0x1c] ss:$36 sps:$4 sm:$0xff]  }
  0x51   : > { %3436 = vmatpush3.bf16.msra.mxu1 %v3727_v3  ;;  %3569 = vmatprep.subr.bf16.mxu0 %v3778_v29  ;;  %v3849_v3 = vld [vmem:[%s4800_s1 + $0x210] sm:$0xff]  }
  0x52   : > { %3437 = vmatprep.subr.bf16.mxu1 %v3743_v9  ;;  %v3875_v9 = vld [vmem:[%s4800_s1 + $0x200] sm:$0xff]  }
  0x54   : > { %1730 = vmatmul.mubr.bf16.gmra.mxu0 %v3716_v4  ;;  %1859 = vmatmul.mubr.bf16.gmra.mxu1 %v3717_v5  ;;  %v3798_v4 = vld [vmem:[%s3991_s9 + $0x320] ss:$36 sps:$4 sm:$0xff]   ;;  %v3862_v5 = vld [vmem:[%s4800_s1 + $0x208] sm:$0xff]  }
  0x55   : > { %1737 = vmatprep.mubr.bf16.mxu0 %v3720_v6  ;;  %1866 = vmatprep.mubr.bf16.mxu1 %v3722_v7  ;;  %v3799_v6 = vld [vmem:[%s3991_s9 + $0xe8] ss:$36 sps:$4 sm:$0xff]  }
  0x56   : > { %3438 = vmatpush3.bf16.msra.mxu1 %v3745_v11  ;;  %v3800_v7 = vld [vmem:[%s3991_s9 + $0x36c] ss:$36 sps:$4 sm:$0xff]  }
  0x57   : > { %3439 = vmatprep.subr.bf16.mxu1 %v3760_v18  ;;  %v3805_v11 = vld [vmem:[%s3991_s9 + $0x130] ss:$36 sps:$4 sm:$0xff]   ;;  %v3819_v18 = vld [vmem:[%s3991_s9 + $0x3f8] ss:$36 sps:$4 sm:$0xff]  }
  0x5a   : > { %3440 = vmatpush3.bf16.msra.mxu1 %v3761_v19  ;;  %v3820_v19 = vld [vmem:[%s3991_s9 + $0x1c0] ss:$36 sps:$4 sm:$0xff]  }
  0x5b   : > { %3441 = vmatprep.subr.bf16.mxu1 %v3776_v26  ;;  %v3832_v26 = vld [vmem:[%s3991_s9 + $0x18] ss:$36 sps:$4 sm:$0xff]  }
  0x5c   : > { %1738 = vmatmul.mubr.bf16.gmra.mxu0 %v3724_v12  ;;  %1867 = vmatmul.mubr.bf16.gmra.mxu1 %v3725_v13  ;;  %v3809_v12 = vld [vmem:[%s3991_s9 + $0x3b4] ss:$36 sps:$4 sm:$0xff]   ;;  %v3811_v13 = vld [vmem:[%s3991_s9 + $0x17c] ss:$36 sps:$4 sm:$0xff]  }
  0x5d   : > { %1745 = vmatprep.mubr.bf16.mxu0 %v3730_v14  ;;  %1874 = vmatprep.mubr.bf16.mxu1 %v3732_v17  ;;  %v3813_v14 = vld [vmem:[%s3991_s9 + $0x3b0] ss:$36 sps:$4 sm:$0xff]   ;;  %v3817_v17 = vld [vmem:[%s3991_s9 + $0x1c4] ss:$36 sps:$4 sm:$0xff]  }
  0x5e   : > { %3442 = vmatpush3.bf16.msra.mxu1 %v3777_v28  ;;  %v3837_v28 = vld [vmem:[%s3991_s9 + $0x29c] ss:$36 sps:$4 sm:$0xff]  }
  0x5f   : > { %3443 = vmatprep.subr.bf16.mxu1 %v3791_v33  ;;  %v3845_v33 = vld [vmem:[%s3991_s9 + $0xac] ss:$36 sps:$4 sm:$0xff]  }
  0x62   : > { %3444 = vmatpush3.bf16.msra.mxu1 %v3792_v35  ;;  %v3848_v35 = vld [vmem:[%s3991_s9 + $0xa8] ss:$36 sps:$4 sm:$0xff]  }
  0x63   : > { %3445 = vmatprep.subr.bf16.mxu1 %v3806_v41  ;;  %v3858_v41 = vld [vmem:[%s3991_s9 + $0x13c] ss:$36 sps:$4 sm:$0xff]  }
  0x64   : > { %1746 = vmatmul.mubr.bf16.gmra.mxu0 %v3734_v20  ;;  %1875 = vmatmul.mubr.bf16.gmra.mxu1 %v3735_v21  ;;  %v3824_v20 = vld [vmem:[%s3991_s9 + $0x444] ss:$36 sps:$4 sm:$0xff]   ;;  %v3826_v21 = vld [vmem:[%s3991_s9 + $0x20c] ss:$36 sps:$4 sm:$0xff]  }
  0x65   : > { %1753 = vmatprep.mubr.bf16.mxu0 %v3736_v22  ;;  %1882 = vmatprep.mubr.bf16.mxu1 %v3738_v23  ;;  %v3828_v22 = vld [vmem:[%s3991_s9 + $0x440] ss:$36 sps:$4 sm:$0xff]   ;;  %v3829_v23 = vld [vmem:[%s3991_s9 + $0x208] ss:$36 sps:$4 sm:$0xff]  }
  0x66   : > { %3446 = vmatpush3.bf16.msra.mxu1 %v3807_v42  ;;  %v3860_v42 = vld [vmem:[%s3991_s9 + $0x370] ss:$36 sps:$4 sm:$0xff]  }
  0x67   : > { %3447 = vmatprep.subr.bf16.mxu1 %v3821_v47 }
  0x6a   : > { %3448 = vmatpush3.bf16.msra.mxu1 %v3822_v48 }
  0x6c   : > { %1754 = vmatmul.mubr.bf16.gmra.mxu0 %v3740_v27  ;;  %1883 = vmatmul.mubr.bf16.gmra.mxu1 %v3741_v30  ;;  %v3835_v27 = vld [vmem:[%s3991_s9 + $0x250] ss:$36 sps:$4 sm:$0xff]   ;;  %v3841_v30 = vld [vmem:[%s3991_s9 + $0x298] ss:$36 sps:$4 sm:$0xff]  }
  0x6d   : > { %1761 = vmatprep.mubr.bf16.mxu0 %v3746_v31  ;;  %1890 = vmatprep.mubr.bf16.mxu1 %v3748_v32  ;;  %v3842_v31 = vld [vmem:[%s3991_s9 + $0x60] ss:$36 sps:$4 sm:$0xff]  }
  0x6e   : > { %v3843_v32 = vld [vmem:[%s3991_s9 + $0x2e4] ss:$36 sps:$4 sm:$0xff]  }
  0x74   : > { %1762 = vmatmul.mubr.bf16.gmra.mxu0 %v3750_v34  ;;  %1891 = vmatmul.mubr.bf16.gmra.mxu1 %v3751_v36  ;;  %v3847_v34 = vld [vmem:[%s3991_s9 + $0x2e0] ss:$36 sps:$4 sm:$0xff]   ;;  %v3850_v36 = vld [vmem:[%s3991_s9 + $0x32c] ss:$36 sps:$4 sm:$0xff]  }
  0x75   : > { %1769 = vmatprep.mubr.bf16.mxu0 %v3754_v37  ;;  %1898 = vmatprep.mubr.bf16.mxu1 %v3756_v38  ;;  %v3852_v37 = vld [vmem:[%s3991_s9 + $0xf4] ss:$36 sps:$4 sm:$0xff]   ;;  %v3854_v38 = vld [vmem:[%s3991_s9 + $0x328] ss:$36 sps:$4 sm:$0xff]  }
  0x7c   : > { %1770 = vmatmul.mubr.bf16.gmra.mxu0 %v3758_v39  ;;  %1899 = vmatmul.mubr.bf16.gmra.mxu1 %v3759_v40  ;;  %v3855_v39 = vld [vmem:[%s3991_s9 + $0xf0] ss:$36 sps:$4 sm:$0xff]  }
  0x7d   : > { %1777 = vmatprep.mubr.bf16.mxu0 %v3762_v43  ;;  %1906 = vmatprep.mubr.bf16.mxu1 %v3764_v44  ;;  %v3856_v40 = vld [vmem:[%s3991_s9 + $0x374] ss:$36 sps:$4 sm:$0xff]   ;;  %v3863_v44 = vld [vmem:[%s3991_s9 + $0x3bc] ss:$36 sps:$4 sm:$0xff]  }
  0x7e   : > { %v3861_v43 = vld [vmem:[%s3991_s9 + $0x138] ss:$36 sps:$4 sm:$0xff]  }
  0x84   : > { %1778 = vmatmul.mubr.bf16.gmra.mxu0 %v3766_v45  ;;  %1907 = vmatmul.mubr.bf16.gmra.mxu1 %v3767_v46  ;;  %v3865_v45 = vld [vmem:[%s3991_s9 + $0x184] ss:$36 sps:$4 sm:$0xff]  }
  0x85   : > { %1914 = vmatprep.mubr.bf16.mxu1 %v3770_v49  ;;  %2011 = vmatprep.mubr.bf16.mxu0 %v3774_v50 }
  0x8c   : > { %1915 = vmatmul.mubr.bf16.gmra.mxu1 %v3775_v52  ;;  %2012 = vmatmul.mubr.bf16.vlgmr.msra.gmra.mxu0 %v3772_v51 }
  0x8d   : > { %3570 = vmatpush3.bf16.msra.mxu0 %v3778_v29  ;;  %1922 = vmatprep.mubr.bf16.mxu1 %v3779_v53  ;;  %v3839_v29 = vld [vmem:[%s3991_s9 + $0x64] ss:$36 sps:$4 sm:$0xff]  }
  0x8e   : > { %2019 = vmatprep.mubr.bf16.mxu0 %v3781_v54  ;;  %3571 = vmatprep.subr.bf16.mxu0 %v3793_v55  ;;  %v3867_v54 = vld [vmem:[%s3991_s9 + $0x3b8] ss:$36 sps:$4 sm:$0xff]  }
  0x91   : > { %3572 = vmatpush3.bf16.msra.mxu0 %v3793_v55  ;;  %v3868_v55 = vld [vmem:[%s3991_s9 + $0x180] ss:$36 sps:$4 sm:$0xff]  }
  0x92   : > { %3573 = vmatprep.subr.bf16.mxu0 %v3808_v56 }
  0x94   : > { %1923 = vmatmul.mubr.bf16.gmra.mxu1 %v3783_v57  ;;  %2020 = vmatmul.mubr.bf16.gmra.mxu0 %v3784_v58  ;;  %v3871_v57 = vld [vmem:[%s3991_s9 + $0x1cc] ss:$36 sps:$4 sm:$0xff]  }
  0x95   : > { %1930 = vmatprep.mubr.bf16.mxu1 %v3785_v59  ;;  %2027 = vmatprep.mubr.bf16.mxu0 %v3787_v60 }
  0x96   : > { %3574 = vmatpush3.bf16.msra.mxu0 %v3808_v56  ;;  %v3869_v56 = vld [vmem:[%s3991_s9 + $0x404] ss:$36 sps:$4 sm:$0xff]  }
  0x97   : > { %3575 = vmatprep.subr.bf16.mxu0 %v3823_v61 }
  0x9a   : > { %3576 = vmatpush3.bf16.msra.mxu0 %v3823_v61 }
  0x9b   : > { %3577 = vmatprep.subr.bf16.mxu0 %v3836_v63 }
  0x9c   : > { %1931 = vmatmul.mubr.bf16.gmra.mxu1 %v3789_v62  ;;  %2028 = vmatmul.mubr.bf16.gmra.mxu0 %v3790_v0 }
  0x9d   : > { %1938 = vmatprep.mubr.bf16.mxu1 %v3794_v1  ;;  %2035 = vmatprep.mubr.bf16.mxu0 %v3796_v2 }
  0x9e   : > { %3578 = vmatpush3.bf16.msra.mxu0 %v3836_v63 }
  0x9f   : > { %3579 = vmatprep.subr.bf16.mxu0 %v3849_v3 }
  0xa2   : > { %3580 = vmatpush3.bf16.msra.mxu0 %v3849_v3 }
  0xa3   : > { %3581 = vmatprep.subr.bf16.mxu0 %v3862_v5 }
  0xa4   : > { %1939 = vmatmul.mubr.bf16.gmra.mxu1 %v3798_v4  ;;  %2036 = vmatmul.mubr.bf16.gmra.mxu0 %v3799_v6  ;;  %v3873_v6 = vld [vmem:[%s3991_s9 + $0x400] ss:$36 sps:$4 sm:$0xff]  }
  0xa5   : > { %1946 = vmatprep.mubr.bf16.mxu1 %v3800_v7  ;;  %2043 = vmatprep.mubr.bf16.mxu0 %v3802_v8  ;;  %v3874_v7 = vld [vmem:[%s3991_s9 + $0x1c8] ss:$36 sps:$4 sm:$0xff]  }
  0xa6   : > { %3582 = vmatpush3.bf16.msra.mxu0 %v3862_v5  ;;  %v3876_v8 = vld [vmem:[%s3991_s9 + $0x44c] ss:$36 sps:$4 sm:$0xff]  }
  0xa7   : > { %3583 = vmatprep.subr.bf16.mxu0 %v3875_v9 }
  0xaa   : > { %3584 = vmatpush3.bf16.msra.mxu0 %v3875_v9  ;;  %v3878_v9 = vld [vmem:[%s3991_s9 + $0x214] ss:$36 sps:$4 sm:$0xff]  }
  0xac   : > { %1947 = vmatmul.mubr.bf16.gmra.mxu1 %v3804_v10  ;;  %2044 = vmatmul.mubr.bf16.gmra.mxu0 %v3805_v11 }
  0xad   : > { %1954 = vmatprep.mubr.bf16.mxu1 %v3809_v12  ;;  %2051 = vmatprep.mubr.bf16.mxu0 %v3811_v13 }
  0xb4   : > { %1955 = vmatmul.mubr.bf16.gmra.mxu1 %v3813_v14  ;;  %2052 = vmatmul.mubr.bf16.gmra.mxu0 %v3814_v15 }
  0xb5   : > { %1962 = vmatprep.mubr.bf16.mxu1 %v3815_v16  ;;  %2059 = vmatprep.mubr.bf16.mxu0 %v3817_v17 }
  0xbc   : > { %1963 = vmatmul.mubr.bf16.gmra.mxu1 %v3819_v18  ;;  %2060 = vmatmul.mubr.bf16.gmra.mxu0 %v3820_v19 }
  0xbd   : > { %1970 = vmatprep.mubr.bf16.mxu1 %v3824_v20  ;;  %2067 = vmatprep.mubr.bf16.mxu0 %v3826_v21 }
  0xc4   : > { %1971 = vmatmul.mubr.bf16.gmra.mxu1 %v3828_v22  ;;  %2068 = vmatmul.mubr.bf16.gmra.mxu0 %v3829_v23  ;;  %v3880_v22 = vld [vmem:[%s3991_s9 + $0x448] ss:$36 sps:$4 sm:$0xff]   ;;  %v3881_v23 = vld [vmem:[%s3991_s9 + $0x210] ss:$36 sps:$4 sm:$0xff]  }
  0xc5   : > { %2075 = vmatprep.mubr.bf16.mxu0 %v3830_v24  ;;  %2172 = vmatprep.mubr.bf16.mxu1 %v3834_v25  ;;  %v3884_v24 = vld [vmem:[%s3991_s9 + $0x25c] ss:$36 sps:$4 sm:$0xff]  }
  0xc6   : > { %v3885_v25 = vld [vmem:[%s3991_s9 + $0x20] ss:$36 sps:$4 sm:$0xff]  }
  0xcc   : > { %2076 = vmatmul.mubr.bf16.gmra.mxu0 %v3835_v27  ;;  %2173 = vmatmul.mubr.bf16.vlgmr.msra.gmra.mxu1 %v3832_v26 }
  0xcd   : > { %2083 = vmatprep.mubr.bf16.mxu0 %v3837_v28  ;;  %2180 = vmatprep.mubr.bf16.mxu1 %v3839_v29 }
  0xd4   : > { %2084 = vmatmul.mubr.bf16.gmra.mxu0 %v3841_v30  ;;  %2181 = vmatmul.mubr.bf16.gmra.mxu1 %v3842_v31 }
  0xd5   : > { %2091 = vmatprep.mubr.bf16.mxu0 %v3843_v32  ;;  %2188 = vmatprep.mubr.bf16.mxu1 %v3845_v33 }
  0xdc   : > { %2092 = vmatmul.mubr.bf16.gmra.mxu0 %v3847_v34  ;;  %2189 = vmatmul.mubr.bf16.gmra.mxu1 %v3848_v35 }
  0xdd   : > { %2099 = vmatprep.mubr.bf16.mxu0 %v3850_v36  ;;  %2196 = vmatprep.mubr.bf16.mxu1 %v3852_v37 }
  0xe4   : > { %2100 = vmatmul.mubr.bf16.gmra.mxu0 %v3854_v38  ;;  %2197 = vmatmul.mubr.bf16.gmra.mxu1 %v3855_v39  ;;  %v3882_v38 = vld [vmem:[%s3991_s9 + $0x258] ss:$36 sps:$4 sm:$0xff]   ;;  %v3886_v39 = vld [vmem:[%s3991_s9 + $0x68] ss:$36 sps:$4 sm:$0xff]  }
  0xe5   : > { %2107 = vmatprep.mubr.bf16.mxu0 %v3856_v40  ;;  %2204 = vmatprep.mubr.bf16.mxu1 %v3858_v41  ;;  %v3889_v40 = vld [vmem:[%s3991_s9 + $0x2a4] ss:$36 sps:$4 sm:$0xff]   ;;  %v3890_v41 = vld [vmem:[%s3991_s9 + $0xb0] ss:$36 sps:$4 sm:$0xff]  }
  0xec   : > { %v3113_v46 = vpop.f32.mrf.mxu0  ;;  %v3185_v47 = vpop.f32.mrf.mxu1  ;;  %2108 = vmatmul.mubr.bf16.gmra.mxu0 %v3860_v42  ;;  %2205 = vmatmul.mubr.bf16.gmra.mxu1 %v3861_v43 }
  0xed   : > { %2115 = vmatprep.mubr.bf16.mxu0 %v3863_v44  ;;  %2212 = vmatprep.mubr.bf16.mxu1 %v3865_v45 }
  0xee   : > { %v3114_v48 = vpop.f32.mrf.mxu0  ;;  %v3186_v49 = vpop.f32.mrf.mxu1 }
  0xef   : > { %v4284_v50 = vadd.f32 %v3114_v48, %v3113_v46  ;;  %v4286_v51 = vadd.f32 %v3186_v49, %v3185_v47  ;;  %v4335_v48 = vld [vmem:[%s4801_s2] ss:$0 sm:$0xff] }
  0xf0   : > { %v3116_v52 = vpop.f32.mrf.mxu0  ;;  %v3188_v53 = vpop.f32.mrf.mxu1 }
  0xf2   : > { %v3117_v58 = vpop.f32.mrf.mxu0  ;;  %v3189_v59 = vpop.f32.mrf.mxu1 }
  0xf3   : > { %v4292_v60 = vadd.f32 %v3117_v58, %v3116_v52  ;;  %v4294_v61 = vadd.f32 %v3189_v59, %v3188_v53  ;;  %v1692_v53 = vadd.f32 %v4284_v50, %v4335_v48  ;;  %v3887_v58 = vld [vmem:[%s3991_s9 + $0x2a0] ss:$36 sps:$4 sm:$0xff]   ;;  %v3891_v59 = vld [vmem:[%s3991_s9 + $0xf8] ss:$36 sps:$4 sm:$0xff]  }
  0xf4   : > { %v3119_v62 = vpop.f32.mrf.mxu0  ;;  %v3191_v63 = vpop.f32.mrf.mxu1  ;;  %2116 = vmatmul.mubr.bf16.gmra.mxu0 %v3867_v54  ;;  %2213 = vmatmul.mubr.bf16.gmra.mxu1 %v3868_v55 }
  0xf5   : > { %2123 = vmatprep.mubr.bf16.mxu0 %v3869_v56  ;;  %2220 = vmatprep.mubr.bf16.mxu1 %v3871_v57 }
  0xf6   : > { %v3120_v0 = vpop.f32.mrf.mxu0  ;;  %v3192_v1 = vpop.f32.mrf.mxu1 }
  0xf7   : > { %v4296_v2 = vadd.f32 %v3120_v0, %v3119_v62  ;;  %v4298_v3 = vadd.f32 %v3192_v1, %v3191_v63  ;;  %v3894_v63 = vld [vmem:[%s3991_s9 + $0x2ec] ss:$36 sps:$4 sm:$0xff]   ;;  %v3895_v0 = vld [vmem:[%s3991_s9 + $0x140] ss:$36 sps:$4 sm:$0xff]  }
  0xf8   : > { %v3122_v4 = vpop.f32.mrf.mxu0  ;;  %v3194_v5 = vpop.f32.mrf.mxu1 }
  0xfa   : > { %v3123_v10 = vpop.f32.mrf.mxu0  ;;  %v3195_v11 = vpop.f32.mrf.mxu1 }
  0xfb   : > { %v4304_v12 = vadd.f32 %v3123_v10, %v3122_v4  ;;  %v4306_v13 = vadd.f32 %v3195_v11, %v3194_v5  ;;  %v1695_v5 = vadd.f32 %v4292_v60, %v4335_v48  ;;  %v1700_v60 = vadd.f32 %v4296_v2, %v4335_v48 }
  0xfc   : > { %v3125_v14 = vpop.f32.mrf.mxu0  ;;  %v3197_v15 = vpop.f32.mrf.mxu1  ;;  %2124 = vmatmul.mubr.bf16.gmra.mxu0 %v3873_v6  ;;  %2221 = vmatmul.mubr.bf16.gmra.mxu1 %v3874_v7 }
  0xfd   : > { %2131 = vmatprep.mubr.bf16.mxu0 %v3876_v8  ;;  %2228 = vmatprep.mubr.bf16.mxu1 %v3878_v9 }
  0xfe   : > { %v3126_v16 = vpop.f32.mrf.mxu0  ;;  %v3198_v17 = vpop.f32.mrf.mxu1 }
  0xff   : > { %v4308_v18 = vadd.f32 %v3126_v16, %v3125_v14  ;;  %v4310_v19 = vadd.f32 %v3198_v17, %v3197_v15 }
 0x100   : > { %v3128_v20 = vpop.f32.mrf.mxu0  ;;  %v3200_v21 = vpop.f32.mrf.mxu1 }
 0x102   : > { %v3129_v26 = vpop.f32.mrf.mxu0  ;;  %v3201_v27 = vpop.f32.mrf.mxu1 }
 0x103   : > { %v4316_v28 = vadd.f32 %v3129_v26, %v3128_v20  ;;  %v4318_v29 = vadd.f32 %v3201_v27, %v3200_v21  ;;  %v3892_v20 = vld [vmem:[%s3991_s9 + $0x2e8] ss:$36 sps:$4 sm:$0xff]   ;;  %v1703_v27 = vadd.f32 %v4304_v12, %v4335_v48  ;;  %v1708_v12 = vadd.f32 %v4308_v18, %v4335_v48 }
 0x104   : > { %v3131_v30 = vpop.f32.mrf.mxu0  ;;  %v3203_v31 = vpop.f32.mrf.mxu1  ;;  %2132 = vmatmul.mubr.bf16.gmra.mxu0 %v3880_v22  ;;  %2229 = vmatmul.mubr.bf16.gmra.mxu1 %v3881_v23  ;;  %v3896_v21 = vld [vmem:[%s3991_s9 + $0x188] ss:$36 sps:$4 sm:$0xff]   ;;  %v3899_v23 = vld [vmem:[%s3991_s9 + $0x334] ss:$36 sps:$4 sm:$0xff]  }
 0x105   : > { %2236 = vmatprep.mubr.bf16.mxu1 %v3884_v24  ;;  %3585 = vmatprep.mubr.bf16.mxu0 %v3885_v25  ;;  %v3900_v24 = vld [vmem:[%s3991_s9 + $0x1d0] ss:$36 sps:$4 sm:$0xff]  }
 0x106   : > { %v3132_v32 = vpop.f32.mrf.mxu0  ;;  %v3204_v33 = vpop.f32.mrf.mxu1 }
 0x107   : > { %v4320_v34 = vadd.f32 %v3132_v32, %v3131_v30  ;;  %v4322_v35 = vadd.f32 %v3204_v33, %v3203_v31 }
 0x108   : > { %v3134_v36 = vpop.f32.mrf.mxu0  ;;  %v3206_v37 = vpop.f32.mrf.mxu1 }
 0x10a   : > { %v3135_v42 = vpop.f32.mrf.mxu0  ;;  %v3207_v43 = vpop.f32.mrf.mxu1 }
 0x10b   : > { %v4328_v44 = vadd.f32 %v3135_v42, %v3134_v36  ;;  %v4330_v45 = vadd.f32 %v3207_v43, %v3206_v37  ;;  %v3897_v42 = vld [vmem:[%s3991_s9 + $0x330] ss:$36 sps:$4 sm:$0xff]   ;;  %v3901_v43 = vld [vmem:[%s3991_s9 + $0x218] ss:$36 sps:$4 sm:$0xff]  }
 0x10c   : > { %v3137_v46 = vpop.f32.mrf.mxu0  ;;  %v3225_v47 = vpop.f32.mrf.mxu1  ;;  %2237 = vmatmul.mubr.bf16.gmra.mxu1 %v3882_v38  ;;  %3586 = vmatmul.mubr.bf16.vlgmr.msra.gmra.mxu0 %v3886_v39 }
 0x10d   : > { %2244 = vmatprep.mubr.bf16.mxu1 %v3889_v40  ;;  %3589 = vmatprep.mubr.bf16.mxu0 %v3890_v41 }
 0x10e   : > { %v3138_v49 = vpop.f32.mrf.mxu0  ;;  %v3226_v52 = vpop.f32.mrf.mxu1 }
 0x10f   : > { %v4339_v54 = vadd.f32 %v3138_v49, %v3137_v46  ;;  %v3227_v55 = vadd.f32 %v3226_v52, %v3225_v47  ;;  %v3904_v47 = vld [vmem:[%s3991_s9 + $0x37c] ss:$36 sps:$4 sm:$0xff]  }
 0x110   : > { %v3140_v56 = vpop.f32.mrf.mxu0  ;;  %v3228_v57 = vpop.f32.mrf.mxu1  ;;  %v3905_v49 = vld [vmem:[%s3991_s9 + $0x260] ss:$36 sps:$4 sm:$0xff]  }
 0x111   : > { %v4343_v62 = vadd.f32 %v3227_v55, %v1692_v53  ;;  %v1711_v55 = vadd.f32 %v4316_v28, %v4335_v48  ;;  %v1716_v28 = vadd.f32 %v4320_v34, %v4335_v48 }
 0x112   : > { %v3141_v1 = vpop.f32.mrf.mxu0  ;;  %v3229_v4 = vpop.f32.mrf.mxu1 }
 0x113   : > { %v4349_v6 = vadd.f32 %v3141_v1, %v3140_v56  ;;  %v3230_v50 = vadd.f32 %v3229_v4, %v3228_v57 }
 0x114   : > { %v3143_v7 = vpop.f32.mrf.mxu0  ;;  %v3231_v8 = vpop.f32.mrf.mxu1  ;;  %2245 = vmatmul.mubr.bf16.gmra.mxu1 %v3887_v58  ;;  %3590 = vmatmul.mubr.bf16.gmra.mxu0 %v3891_v59 }
 0x115   : > { %v4351_v9 = vadd.f32 %v3230_v50, %v1695_v5  ;;  %2252 = vmatprep.mubr.bf16.mxu1 %v3894_v63  ;;  %3593 = vmatprep.mubr.bf16.mxu0 %v3895_v0 }
 0x116   : > { %v3144_v10 = vpop.f32.mrf.mxu0  ;;  %v3232_v11 = vpop.f32.mrf.mxu1 }
 0x117   : > { %v4355_v14 = vadd.f32 %v3144_v10, %v3143_v7  ;;  %v3233_v15 = vadd.f32 %v3232_v11, %v3231_v8  ;;  %v3902_v7 = vld [vmem:[%s3991_s9 + $0x378] ss:$36 sps:$4 sm:$0xff]   ;;  %v3906_v8 = vld [vmem:[%s3991_s9 + $0x2a8] ss:$36 sps:$4 sm:$0xff]  }
 0x118   : > { %v3146_v16 = vpop.f32.mrf.mxu0  ;;  %v3234_v17 = vpop.f32.mrf.mxu1  ;;  %v3909_v11 = vld [vmem:[%s3991_s9 + $0x3c4] ss:$36 sps:$4 sm:$0xff]  }
 0x119   : > { %v4359_v22 = vadd.f32 %v3233_v15, %v1700_v60  ;;  %v3910_v60 = vld [vmem:[%s3991_s9 + $0x2f0] ss:$36 sps:$4 sm:$0xff]  }
 0x11a   : > { %v3147_v25 = vpop.f32.mrf.mxu0  ;;  %v3235_v26 = vpop.f32.mrf.mxu1 }
 0x11b   : > { %v4365_v30 = vadd.f32 %v3147_v25, %v3146_v16  ;;  %v3236_v2 = vadd.f32 %v3235_v26, %v3234_v17  ;;  %v1719_v17 = vadd.f32 %v4328_v44, %v4335_v48  ;;  %v1724_v44 = vadd.f32 %v4339_v54, %v4335_v48 }
 0x11c   : > { %v3149_v31 = vpop.f32.mrf.mxu0  ;;  %v3237_v32 = vpop.f32.mrf.mxu1  ;;  %2253 = vmatmul.mubr.bf16.gmra.mxu1 %v3892_v20  ;;  %3594 = vmatmul.mubr.bf16.gmra.mxu0 %v3896_v21 }
 0x11d   : > { %v4367_v33 = vadd.f32 %v3236_v2, %v1703_v27  ;;  %2260 = vmatprep.mubr.bf16.mxu1 %v3899_v23  ;;  %3597 = vmatprep.mubr.bf16.mxu0 %v3900_v24 }
 0x11e   : > { %v3150_v36 = vpop.f32.mrf.mxu0  ;;  %v3238_v37 = vpop.f32.mrf.mxu1 }
 0x11f   : > { %v4371_v38 = vadd.f32 %v3150_v36, %v3149_v31  ;;  %v3239_v39 = vadd.f32 %v3238_v37, %v3237_v32  ;;  %v3907_v36 = vld [vmem:[%s3991_s9 + $0x3c0] ss:$36 sps:$4 sm:$0xff]   ;;  %v3911_v37 = vld [vmem:[%s3991_s9 + $0x338] ss:$36 sps:$4 sm:$0xff]  }
 0x120   : > { %v3152_v40 = vpop.f32.mrf.mxu0  ;;  %v3240_v41 = vpop.f32.mrf.mxu1 }
 0x121   : > { %v4375_v46 = vadd.f32 %v3239_v39, %v1708_v12  ;;  %v3914_v39 = vld [vmem:[%s3991_s9 + $0x40c] ss:$36 sps:$4 sm:$0xff]  }
 0x122   : > { %v3153_v52 = vpop.f32.mrf.mxu0  ;;  %v3241_v53 = vpop.f32.mrf.mxu1 }
 0x123   : > { %v4381_v56 = vadd.f32 %v3153_v52, %v3152_v40  ;;  %v3242_v18 = vadd.f32 %v3241_v53, %v3240_v41  ;;  %v3915_v40 = vld [vmem:[%s3991_s9 + $0x380] ss:$36 sps:$4 sm:$0xff]  }
 0x124   : > { %v3155_v57 = vpop.f32.mrf.mxu0  ;;  %v3243_v58 = vpop.f32.mrf.mxu1  ;;  %2261 = vmatmul.mubr.bf16.gmra.mxu1 %v3897_v42  ;;  %3598 = vmatmul.mubr.bf16.gmra.mxu0 %v3901_v43  ;;  %v1727_v43 = vadd.f32 %v4349_v6, %v4335_v48  ;;  %v1732_v6 = vadd.f32 %v4355_v14, %v4335_v48 }
 0x125   : > { %v4383_v59 = vadd.f32 %v3242_v18, %v1711_v55  ;;  %2268 = vmatprep.mubr.bf16.mxu1 %v3904_v47  ;;  %3601 = vmatprep.mubr.bf16.mxu0 %v3905_v49 }
 0x126   : > { %v3156_v63 = vpop.f32.mrf.mxu0  ;;  %v3244_v0 = vpop.f32.mrf.mxu1 }
 0x127   : > { %v4387_v1 = vadd.f32 %v3156_v63, %v3155_v57  ;;  %v3245_v4 = vadd.f32 %v3244_v0, %v3243_v58 }
 0x128   : > { %v3158_v5 = vpop.f32.mrf.mxu0  ;;  %v3246_v50 = vpop.f32.mrf.mxu1 }
 0x129   : > { %v4391_v10 = vadd.f32 %v3245_v4, %v1716_v28  ;;  %v3912_v28 = vld [vmem:[%s3991_s9 + $0x408] ss:$36 sps:$4 sm:$0xff]  }
 0x12a   : > { %v3159_v15 = vpop.f32.mrf.mxu0  ;;  %v3247_v16 = vpop.f32.mrf.mxu1  ;;  %v3916_v4 = vld [vmem:[%s3991_s9 + $0x3c8] ss:$36 sps:$4 sm:$0xff]  }
 0x12b   : > { %v4397_v20 = vadd.f32 %v3159_v15, %v3158_v5  ;;  %v3248_v34 = vadd.f32 %v3247_v16, %v3246_v50  ;;  %v3919_v50 = vld [vmem:[%s3991_s9 + $0x454] ss:$36 sps:$4 sm:$0xff]  }
 0x12c   : > { %v3161_v21 = vpop.f32.mrf.mxu0  ;;  %v3249_v23 = vpop.f32.mrf.mxu1  ;;  %2269 = vmatmul.mubr.bf16.gmra.mxu1 %v3902_v7  ;;  %3602 = vmatmul.mubr.bf16.gmra.mxu0 %v3906_v8  ;;  %v3920_v7 = vld [vmem:[%s3991_s9 + $0x410] ss:$36 sps:$4 sm:$0xff]  }
 0x12d   : > { %v4399_v24 = vadd.f32 %v3248_v34, %v1719_v17  ;;  %2276 = vmatprep.mubr.bf16.mxu1 %v3909_v11  ;;  %3605 = vmatprep.mubr.bf16.mxu0 %v3910_v60  ;;  %v1735_v60 = vadd.f32 %v4365_v30, %v4335_v48 }
 0x12e   : > { %v3162_v25 = vpop.f32.mrf.mxu0  ;;  %v3250_v26 = vpop.f32.mrf.mxu1 }
 0x12f   : > { %v4403_v27 = vadd.f32 %v3162_v25, %v3161_v21  ;;  %v3251_v2 = vadd.f32 %v3250_v26, %v3249_v23  ;;  %v1740_v25 = vadd.f32 %v4371_v38, %v4335_v48 }
 0x130   : > { %v3164_v31 = vpop.f32.mrf.mxu0  ;;  %v3252_v32 = vpop.f32.mrf.mxu1 }
 0x131   : > { %v4407_v12 = vadd.f32 %v3251_v2, %v1724_v44 }
 0x132   : > { %v3165_v41 = vpop.f32.mrf.mxu0  ;;  %v3253_v42 = vpop.f32.mrf.mxu1 }
 0x133   : > { %v4413_v47 = vadd.f32 %v3165_v41, %v3164_v31  ;;  %v3254_v54 = vadd.f32 %v3253_v42, %v3252_v32  ;;  %v3917_v31 = vld [vmem:[%s3991_s9 + $0x450] ss:$36 sps:$4 sm:$0xff]   ;;  %v3921_v32 = vld [vmem:[%s3991_s9 + $0x458] ss:$36 sps:$4 sm:$0xff]   ;;  %s2718_s9 = sshll.u32 %s4826_s16, 2 }
 0x134   : > { %v3167_v49 = vpop.f32.mrf.mxu0  ;;  %v3255_v52 = vpop.f32.mrf.mxu1  ;;  %2277 = vmatmul.mubr.bf16.gmra.mxu1 %v3907_v36  ;;  %3606 = vmatmul.mubr.bf16.gmra.mxu0 %v3911_v37  ;;  %s4712_s21 = scalar_lea.vmem %s4802_s3, %s2718_s9 }
 0x135   : > { %v4415_v53 = vadd.f32 %v3254_v54, %v1727_v43  ;;  %2284 = vmatprep.mubr.bf16.mxu1 %v3914_v39  ;;  %3609 = vmatprep.mubr.bf16.mxu0 %v3915_v40  ;;  %v1743_v40 = vadd.f32 %v4381_v56, %v4335_v48 }
 0x136   : > { %v3168_v55 = vpop.f32.mrf.mxu0  ;;  %v3256_v18 = vpop.f32.mrf.mxu1 }
 0x137   : > { %v4419_v57 = vadd.f32 %v3168_v55, %v3167_v49  ;;  %v3257_v58 = vadd.f32 %v3256_v18, %v3255_v52  ;;  %v1748_v55 = vadd.f32 %v4387_v1, %v4335_v48 }
 0x138   : > { %v3170_v63 = vpop.f32.mrf.mxu0  ;;  %v3258_v0 = vpop.f32.mrf.mxu1 }
 0x139   : > { %v4423_v5 = vadd.f32 %v3257_v58, %v1732_v6 }
 0x13a   : > { %v3171_v8 = vpop.f32.mrf.mxu0  ;;  %v3259_v11 = vpop.f32.mrf.mxu1 }
 0x13b   : > { %v4429_v15 = vadd.f32 %v3171_v8, %v3170_v63  ;;  %v3260_v14 = vadd.f32 %v3259_v11, %v3258_v0 }
 0x13c   : > { %v3173_v16 = vpop.f32.mrf.mxu0  ;;  %v3261_v17 = vpop.f32.mrf.mxu1  ;;  %2285 = vmatmul.mubr.bf16.gmra.mxu1 %v3912_v28  ;;  %3610 = vmatmul.mubr.bf16.gmra.mxu0 %v3916_v4  ;;  %v1751_v4 = vadd.f32 %v4397_v20, %v4335_v48 }
 0x13d   : > { %v4431_v34 = vadd.f32 %v3260_v14, %v1735_v60  ;;  %2292 = vmatprep.mubr.bf16.mxu1 %v3919_v50  ;;  %3613 = vmatprep.mubr.bf16.mxu0 %v3920_v7 }
 0x13e   : > { %v3174_v21 = vpop.f32.mrf.mxu0  ;;  %v3262_v23 = vpop.f32.mrf.mxu1 }
 0x13f   : > { %v4435_v26 = vadd.f32 %v3174_v21, %v3173_v16  ;;  %v3263_v30 = vadd.f32 %v3262_v23, %v3261_v17  ;;  %v1756_v16 = vadd.f32 %v4403_v27, %v4335_v48 }
 0x140   : > { %v3176_v44 = vpop.f32.mrf.mxu0  ;;  %v3264_v2 = vpop.f32.mrf.mxu1 }
 0x141   : > { %v4439_v36 = vadd.f32 %v3263_v30, %v1740_v25 }
 0x142   : > { %v3177_v37 = vpop.f32.mrf.mxu0  ;;  %v3265_v39 = vpop.f32.mrf.mxu1 }
 0x143   : > { %v4443_v41 = vadd.f32 %v3177_v37, %v3176_v44  ;;  %v3266_v42 = vadd.f32 %v3265_v39, %v3264_v2 }
 0x144   : > { %v3179_v43 = vpop.f32.mrf.mxu0  ;;  %v3267_v54 = vpop.f32.mrf.mxu1  ;;  %2293 = vmatmul.mubr.bf16.gmra.mxu1 %v3917_v31  ;;  %3614 = vmatmul.mubr.bf16.gmra.mxu0 %v3921_v32  ;;  %v1759_v31 = vadd.f32 %v4413_v47, %v4335_v48 }
 0x145   : > { %v4445_v38 = vadd.f32 %v3266_v42, %v1743_v40 }
 0x146   : > { %v3180_v49 = vpop.f32.mrf.mxu0  ;;  %v3268_v52 = vpop.f32.mrf.mxu1 }
 0x147   : > { %v4449_v18 = vadd.f32 %v3180_v49, %v3179_v43  ;;  %v3269_v6 = vadd.f32 %v3268_v52, %v3267_v54 }
 0x148   : > { %v3182_v58 = vpop.f32.mrf.mxu0  ;;  %v3270_v63 = vpop.f32.mrf.mxu1 }
 0x149   : > { %v4451_v56 = vadd.f32 %v3269_v6, %v1748_v55 }
 0x14a   : > { %v3183_v0 = vpop.f32.mrf.mxu0  ;;  %v3271_v28 = vpop.f32.mrf.mxu1 }
 0x14b   : > { %v4455_v50 = vadd.f32 %v3183_v0, %v3182_v58  ;;  %v3272_v7 = vadd.f32 %v3271_v28, %v3270_v63 }
 0x14c   : > { %v3273_v8 = vpop.f32.mrf.mxu1  ;;  %v3337_v11 = vpop.f32.mrf.mxu0 }
 0x14d   : > { %v4457_v60 = vadd.f32 %v3272_v7, %v1751_v4 }
 0x14e   : > { %v3274_v1 = vpop.f32.mrf.mxu1  ;;  %v3338_v14 = vpop.f32.mrf.mxu0 }
 0x14f   : > { %v3275_v17 = vadd.f32 %v3274_v1, %v3273_v8  ;;  %v3339_v21 = vadd.f32 %v3338_v14, %v3337_v11 }
 0x150   : > { %v3276_v23 = vpop.f32.mrf.mxu1  ;;  %v3340_v25 = vpop.f32.mrf.mxu0 }
 0x151   : > { %v4461_v30 = vadd.f32 %v3275_v17, %v1756_v16  ;;  %v4464_v20 = vadd.f32 %v3339_v21, %v4343_v62  ;;  %v1764_v62 = vadd.f32 %v4419_v57, %v4335_v48 }
 0x152   : > { %v3277_v44 = vpop.f32.mrf.mxu1  ;;  %v3341_v2 = vpop.f32.mrf.mxu0 }
 0x153   : > { %v3278_v32 = vadd.f32 %v3277_v44, %v3276_v23  ;;  %v3342_v37 = vadd.f32 %v3341_v2, %v3340_v25 }
 0x154   : > { %v3279_v39 = vpop.f32.mrf.mxu1  ;;  %v3343_v40 = vpop.f32.mrf.mxu0 }
 0x155   : > { %v4468_v42 = vadd.f32 %v3278_v32, %v1759_v31  ;;  %v4471_v27 = vadd.f32 %v3342_v37, %v4351_v9  ;;  %v1767_v9 = vadd.f32 %v4429_v15, %v4335_v48 }
 0x156   : > { %v3280_v43 = vpop.f32.mrf.mxu1  ;;  %v3344_v54 = vpop.f32.mrf.mxu0 }
 0x157   : > { %v3281_v49 = vadd.f32 %v3280_v43, %v3279_v39  ;;  %v3345_v52 = vadd.f32 %v3344_v54, %v3343_v40 }
 0x158   : > { %v3282_v55 = vpop.f32.mrf.mxu1  ;;  %v3346_v6 = vpop.f32.mrf.mxu0 }
 0x159   : > { %v4475_v58 = vadd.f32 %v3281_v49, %v1764_v62  ;;  %v4478_v47 = vadd.f32 %v3345_v52, %v4359_v22  ;;  %v1772_v22 = vadd.f32 %v4435_v26, %v4335_v48 }
 0x15a   : > { %v3283_v63 = vpop.f32.mrf.mxu1  ;;  %v3347_v0 = vpop.f32.mrf.mxu0 }
 0x15b   : > { %v3284_v28 = vadd.f32 %v3283_v63, %v3282_v55  ;;  %v3348_v4 = vadd.f32 %v3347_v0, %v3346_v6 }
 0x15c   : > { %v3285_v7 = vpop.f32.mrf.mxu1  ;;  %v3349_v8 = vpop.f32.mrf.mxu0 }
 0x15d   : > { %v4482_v11 = vadd.f32 %v3284_v28, %v1767_v9  ;;  %v4485_v57 = vadd.f32 %v3348_v4, %v4367_v33  ;;  %v1775_v33 = vadd.f32 %v4443_v41, %v4335_v48 }
 0x15e   : > { %v3286_v1 = vpop.f32.mrf.mxu1  ;;  %v3350_v14 = vpop.f32.mrf.mxu0 }
 0x15f   : > { %v3287_v16 = vadd.f32 %v3286_v1, %v3285_v7  ;;  %v3351_v17 = vadd.f32 %v3350_v14, %v3349_v8 }
 0x160   : > { %v3288_v21 = vpop.f32.mrf.mxu1  ;;  %v3352_v23 = vpop.f32.mrf.mxu0 }
 0x161   : > { %v4489_v25 = vadd.f32 %v3287_v16, %v1772_v22  ;;  %v4492_v15 = vadd.f32 %v3351_v17, %v4375_v46  ;;  %v1780_v46 = vadd.f32 %v4449_v18, %v4335_v48 }
 0x162   : > { %v3289_v44 = vpop.f32.mrf.mxu1  ;;  %v3353_v2 = vpop.f32.mrf.mxu0 }
 0x163   : > { %v3290_v31 = vadd.f32 %v3289_v44, %v3288_v21  ;;  %v3354_v32 = vadd.f32 %v3353_v2, %v3352_v23 }
 0x164   : > { %v3291_v37 = vpop.f32.mrf.mxu1  ;;  %v3355_v39 = vpop.f32.mrf.mxu0 }
 0x165   : > { %v4496_v40 = vadd.f32 %v3290_v31, %v1775_v33  ;;  %v4499_v26 = vadd.f32 %v3354_v32, %v4383_v59  ;;  %v1783_v59 = vadd.f32 %v4455_v50, %v4335_v48 }
 0x166   : > { %v3292_v43 = vpop.f32.mrf.mxu1  ;;  %v3356_v54 = vpop.f32.mrf.mxu0 }
 0x167   : > { %v3293_v62 = vadd.f32 %v3292_v43, %v3291_v37  ;;  %v3357_v49 = vadd.f32 %v3356_v54, %v3355_v39 }
 0x168   : > { %v3294_v52 = vpop.f32.mrf.mxu1  ;;  %v3358_v55 = vpop.f32.mrf.mxu0 }
 0x169   : > { %v4503_v6 = vadd.f32 %v3293_v62, %v1780_v46  ;;  %v4506_v41 = vadd.f32 %v3357_v49, %v4391_v10  ;;  %v1788_v10 = vadd.f32 %v4286_v51, %v4335_v48 }
 0x16a   : > { %v3295_v63 = vpop.f32.mrf.mxu1  ;;  %v3359_v0 = vpop.f32.mrf.mxu0 }
 0x16b   : > { %v3296_v9 = vadd.f32 %v3295_v63, %v3294_v52  ;;  %v3360_v28 = vadd.f32 %v3359_v0, %v3358_v55 }
 0x16c   : > { %v3297_v4 = vpop.f32.mrf.mxu1  ;;  %v3361_v7 = vpop.f32.mrf.mxu0 }
 0x16d   : > { %v4510_v8 = vadd.f32 %v3296_v9, %v1783_v59  ;;  %v4513_v18 = vadd.f32 %v3360_v28, %v4399_v24  ;;  %v1791_v24 = vadd.f32 %v4294_v61, %v4335_v48 }
 0x16e   : > { %v3298_v1 = vpop.f32.mrf.mxu1  ;;  %v3362_v14 = vpop.f32.mrf.mxu0 }
 0x16f   : > { %v3299_v22 = vadd.f32 %v3298_v1, %v3297_v4  ;;  %v3363_v16 = vadd.f32 %v3362_v14, %v3361_v7 }
 0x170   : > { %v3300_v17 = vpop.f32.mrf.mxu1  ;;  %v3364_v21 = vpop.f32.mrf.mxu0 }
 0x171   : > { %v4517_v23 = vadd.f32 %v3299_v22, %v1788_v10  ;;  %v4520_v50 = vadd.f32 %v3363_v16, %v4407_v12  ;;  %v1796_v12 = vadd.f32 %v4298_v3, %v4335_v48 }
 0x172   : > { %v3301_v44 = vpop.f32.mrf.mxu1  ;;  %v3365_v2 = vpop.f32.mrf.mxu0 }
 0x173   : > { %v3302_v33 = vadd.f32 %v3301_v44, %v3300_v17  ;;  %v3366_v31 = vadd.f32 %v3365_v2, %v3364_v21 }
 0x174   : > { %v3303_v32 = vpop.f32.mrf.mxu1  ;;  %v3367_v37 = vpop.f32.mrf.mxu0 }
 0x175   : > { %v4524_v39 = vadd.f32 %v3302_v33, %v1791_v24  ;;  %v4527_v51 = vadd.f32 %v3366_v31, %v4415_v53  ;;  %v1799_v53 = vadd.f32 %v4306_v13, %v4335_v48 }
 0x176   : > { %v3304_v43 = vpop.f32.mrf.mxu1  ;;  %v3368_v54 = vpop.f32.mrf.mxu0 }
 0x177   : > { %v3305_v46 = vadd.f32 %v3304_v43, %v3303_v32  ;;  %v3369_v62 = vadd.f32 %v3368_v54, %v3367_v37 }
 0x178   : > { %v3306_v49 = vpop.f32.mrf.mxu1  ;;  %v3370_v52 = vpop.f32.mrf.mxu0 }
 0x179   : > { %v4531_v55 = vadd.f32 %v3305_v46, %v1796_v12  ;;  %v4534_v61 = vadd.f32 %v3369_v62, %v4423_v5  ;;  %v1804_v5 = vadd.f32 %v4310_v19, %v4335_v48 }
 0x17a   : > { %v3307_v63 = vpop.f32.mrf.mxu1  ;;  %v3371_v0 = vpop.f32.mrf.mxu0 }
 0x17b   : > { %v3308_v59 = vadd.f32 %v3307_v63, %v3306_v49  ;;  %v3372_v9 = vadd.f32 %v3371_v0, %v3370_v52 }
 0x17c   : > { %v3309_v28 = vpop.f32.mrf.mxu1  ;;  %v3373_v4 = vpop.f32.mrf.mxu0 }
 0x17d   : > { %v4538_v7 = vadd.f32 %v3308_v59, %v1799_v53  ;;  %v4541_v3 = vadd.f32 %v3372_v9, %v4431_v34  ;;  %v1807_v34 = vadd.f32 %v4318_v29, %v4335_v48 }
 0x17e   : > { %v3310_v1 = vpop.f32.mrf.mxu1  ;;  %v3374_v14 = vpop.f32.mrf.mxu0 }
 0x17f   : > { %v3311_v10 = vadd.f32 %v3310_v1, %v3309_v28  ;;  %v3375_v22 = vadd.f32 %v3374_v14, %v3373_v4 }
 0x180   : > { %v3312_v16 = vpop.f32.mrf.mxu1  ;;  %v3376_v17 = vpop.f32.mrf.mxu0 }
 0x181   : > { %v4545_v21 = vadd.f32 %v3311_v10, %v1804_v5  ;;  %v4548_v13 = vadd.f32 %v3375_v22, %v4439_v36  ;;  %v1812_v36 = vadd.f32 %v4322_v35, %v4335_v48 }
 0x182   : > { %v3313_v44 = vpop.f32.mrf.mxu1  ;;  %v3377_v2 = vpop.f32.mrf.mxu0 }
 0x183   : > { %v3314_v24 = vadd.f32 %v3313_v44, %v3312_v16  ;;  %v3378_v33 = vadd.f32 %v3377_v2, %v3376_v17 }
 0x184   : > { %v3315_v31 = vpop.f32.mrf.mxu1  ;;  %v3379_v32 = vpop.f32.mrf.mxu0 }
 0x185   : > { %v4552_v37 = vadd.f32 %v3314_v24, %v1807_v34  ;;  %v4555_v19 = vadd.f32 %v3378_v33, %v4445_v38  ;;  %v1815_v38 = vadd.f32 %v4330_v45, %v4335_v48 }
 0x186   : > { %v3316_v43 = vpop.f32.mrf.mxu1  ;;  %v3380_v54 = vpop.f32.mrf.mxu0 }
 0x187   : > { %v3317_v12 = vadd.f32 %v3316_v43, %v3315_v31  ;;  %v3381_v46 = vadd.f32 %v3380_v54, %v3379_v32 }
 0x188   : > { %v3318_v62 = vpop.f32.mrf.mxu1  ;;  %v3382_v49 = vpop.f32.mrf.mxu0 }
 0x189   : > { %v4559_v52 = vadd.f32 %v3317_v12, %v1812_v36  ;;  %v4562_v29 = vadd.f32 %v3381_v46, %v4451_v56 }
 0x18a   : > { %v3319_v63 = vpop.f32.mrf.mxu1  ;;  %v3383_v0 = vpop.f32.mrf.mxu0 }
 0x18b   : > { %v3320_v53 = vadd.f32 %v3319_v63, %v3318_v62  ;;  %v3384_v59 = vadd.f32 %v3383_v0, %v3382_v49 }
 0x18c   : > { %v3385_v9 = vpop.f32.mrf.mxu0  ;;  %v3449_v28 = vpop.f32.mrf.mxu1 }
 0x18d   : > { %v4566_v4 = vadd.f32 %v3320_v53, %v1815_v38  ;;  %v4569_v35 = vadd.f32 %v3384_v59, %v4457_v60 }
 0x18e   : > { %v3386_v1 = vpop.f32.mrf.mxu0  ;;  %v3450_v14 = vpop.f32.mrf.mxu1 }
 0x18f   : > { %v3387_v5 = vadd.f32 %v3386_v1, %v3385_v9  ;;  %v3451_v10 = vadd.f32 %v3450_v14, %v3449_v28 }
 0x190   : > { %v3388_v56 = vpop.f32.mrf.mxu0  ;;  %v4571_v22 = vpop.f32.mrf.mxu1 }
 0x191   : > { %v4574_v16 = vadd.f32 %v3387_v5, %v4461_v30  ;;  %v4577_v45 = vadd.f32 %v3451_v10, %v4464_v20 }
 0x192   : > { %v3389_v48 = vpop.f32.mrf.mxu0  ;;  %v4579_v17 = vpop.f32.mrf.mxu1 }
 0x193   : > { %v3390_v44 = vadd.f32 %v3389_v48, %v3388_v56 }
 0x194   : > { %v3391_v2 = vpop.f32.mrf.mxu0  ;;  %v4581_v60 = vpop.f32.mrf.mxu1 }
 0x195   : > { %v4584_v34 = vadd.f32 %v3390_v44, %v4468_v42 }
 0x196   : > { %v3392_v24 = vpop.f32.mrf.mxu0  ;;  %v4586_v33 = vpop.f32.mrf.mxu1 }
 0x197   : > { %v3393_v31 = vadd.f32 %v3392_v24, %v3391_v2 }
 0x198   : > { %v3394_v32 = vpop.f32.mrf.mxu0  ;;  %v4588_v30 = vpop.f32.mrf.mxu1 }
 0x199   : > { %v4591_v20 = vadd.f32 %v3393_v31, %v4475_v58 }
 0x19a   : > { %v3395_v43 = vpop.f32.mrf.mxu0  ;;  %v4593_v54 = vpop.f32.mrf.mxu1 }
 0x19b   : > { %v3396_v36 = vadd.f32 %v3395_v43, %v3394_v32 }
 0x19c   : > { %v3397_v12 = vpop.f32.mrf.mxu0  ;;  %v4595_v46 = vpop.f32.mrf.mxu1 }
 0x19d   : > { %v4598_v42 = vadd.f32 %v3396_v36, %v4482_v11 }
 0x19e   : > { %v3398_v62 = vpop.f32.mrf.mxu0  ;;  %v4600_v49 = vpop.f32.mrf.mxu1 }
 0x19f   : > { %v3399_v63 = vadd.f32 %v3398_v62, %v3397_v12 }
 0x1a0   : > { %v3400_v0 = vpop.f32.mrf.mxu0  ;;  %v4602_v38 = vpop.f32.mrf.mxu1 }
 0x1a1   : > { %v4605_v58 = vadd.f32 %v3399_v63, %v4489_v25 }
 0x1a2   : > { %v3401_v53 = vpop.f32.mrf.mxu0  ;;  %v4607_v59 = vpop.f32.mrf.mxu1 }
 0x1a3   : > { %4803 = vst [vmem:[#allocation2_spill] sm:$0xff] %v4605_v58  ;;  %v3402_v9 = vadd.f32 %v3401_v53, %v3400_v0 }
 0x1a4   : > { %v3403_v28 = vpop.f32.mrf.mxu0  ;;  %v4609_v1 = vpop.f32.mrf.mxu1 }
 0x1a5   : > { %v4612_v11 = vadd.f32 %v3402_v9, %v4496_v40 }
 0x1a6   : > { %v3404_v14 = vpop.f32.mrf.mxu0  ;;  %v4614_v5 = vpop.f32.mrf.mxu1 }
 0x1a7   : > { %4804 = vst [vmem:[#allocation3_spill] sm:$0xff] %v4612_v11  ;;  %v3405_v10 = vadd.f32 %v3404_v14, %v3403_v28 }
 0x1a8   : > { %v3406_v56 = vpop.f32.mrf.mxu0  ;;  %v4616_v48 = vpop.f32.mrf.mxu1 }
 0x1a9   : > { %v4619_v25 = vadd.f32 %v3405_v10, %v4503_v6 }
 0x1aa   : > { %v3407_v44 = vpop.f32.mrf.mxu0  ;;  %v4621_v2 = vpop.f32.mrf.mxu1 }
 0x1ab   : > { %4805 = vst [vmem:[#allocation4_spill] sm:$0xff] %v4619_v25  ;;  %v3408_v24 = vadd.f32 %v3407_v44, %v3406_v56 }
 0x1ac   : > { %v3409_v31 = vpop.f32.mrf.mxu0  ;;  %v4623_v32 = vpop.f32.mrf.mxu1 }
 0x1ad   : > { %v4626_v40 = vadd.f32 %v3408_v24, %v4510_v8 }
 0x1ae   : > { %v3410_v43 = vpop.f32.mrf.mxu0  ;;  %v4628_v36 = vpop.f32.mrf.mxu1 }
 0x1af   : > { %4806 = vst [vmem:[#allocation5_spill] sm:$0xff] %v4626_v40  ;;  %v3411_v12 = vadd.f32 %v3410_v43, %v3409_v31 }
 0x1b0   : > { %v3412_v62 = vpop.f32.mrf.mxu0  ;;  %v4630_v63 = vpop.f32.mrf.mxu1 }
 0x1b1   : > { %v4633_v6 = vadd.f32 %v3411_v12, %v4517_v23 }
 0x1b2   : > { %v3413_v0 = vpop.f32.mrf.mxu0  ;;  %v4635_v53 = vpop.f32.mrf.mxu1 }
 0x1b3   : > { %4807 = vst [vmem:[#allocation6_spill] sm:$0xff] %v4633_v6  ;;  %v3414_v9 = vadd.f32 %v3413_v0, %v3412_v62 }
 0x1b4   : > { %v3415_v28 = vpop.f32.mrf.mxu0  ;;  %v4637_v14 = vpop.f32.mrf.mxu1 }
 0x1b5   : > { %v4640_v8 = vadd.f32 %v3414_v9, %v4524_v39 }
 0x1b6   : > { %v3416_v10 = vpop.f32.mrf.mxu0  ;;  %v4642_v56 = vpop.f32.mrf.mxu1 }
 0x1b7   : > { %4808 = vst [vmem:[#allocation7_spill] sm:$0xff] %v4640_v8  ;;  %v3417_v44 = vadd.f32 %v3416_v10, %v3415_v28 }
 0x1b8   : > { %v3418_v24 = vpop.f32.mrf.mxu0  ;;  %v4644_v31 = vpop.f32.mrf.mxu1 }
 0x1b9   : > { %v4647_v23 = vadd.f32 %v3417_v44, %v4531_v55 }
 0x1ba   : > { %v3419_v43 = vpop.f32.mrf.mxu0  ;;  %v4649_v12 = vpop.f32.mrf.mxu1 }
 0x1bb   : > { %4809 = vst [vmem:[#allocation8_spill] sm:$0xff] %v4647_v23  ;;  %v3420_v62 = vadd.f32 %v3419_v43, %v3418_v24 }
 0x1bc   : > { %v3421_v0 = vpop.f32.mrf.mxu0  ;;  %v4651_v6 = vpop.f32.mrf.mxu1 }
 0x1bd   : > { %v4654_v39 = vadd.f32 %v3420_v62, %v4538_v7 }
 0x1be   : > { %v3422_v9 = vpop.f32.mrf.mxu0  ;;  %v4656_v8 = vpop.f32.mrf.mxu1 }
 0x1bf   : > { %4810 = vst [vmem:[#allocation9_spill] sm:$0xff] %v4654_v39  ;;  %v3423_v28 = vadd.f32 %v3422_v9, %v3421_v0 }
 0x1c0   : > { %v3424_v10 = vpop.f32.mrf.mxu0  ;;  %v4658_v11 = vpop.f32.mrf.mxu1 }
 0x1c1   : > { %v4661_v55 = vadd.f32 %v3423_v28, %v4545_v21  ;;  %v3457_v21 = vadd.f32 %v4586_v33, %v4581_v60 }
 0x1c2   : > { %v3425_v44 = vpop.f32.mrf.mxu0  ;;  %v4663_v23 = vpop.f32.mrf.mxu1 }
 0x1c3   : > { %4811 = vst [vmem:[#allocation10_spill] sm:$0xff] %v4661_v55  ;;  %v3426_v24 = vadd.f32 %v3425_v44, %v3424_v10 }
 0x1c4   : > { %v3427_v43 = vpop.f32.mrf.mxu0  ;;  %v4665_v40 = vpop.f32.mrf.mxu1 }
 0x1c5   : > { %v4668_v7 = vadd.f32 %v3426_v24, %v4552_v37  ;;  %v3460_v37 = vadd.f32 %v4593_v54, %v4588_v30  ;;  %v3469_v54 = vadd.f32 %v4614_v5, %v4609_v1  ;;  %v3466_v1 = vadd.f32 %v4607_v59, %v4602_v38 }
 0x1c6   : > { %v3428_v62 = vpop.f32.mrf.mxu0  ;;  %v4670_v39 = vpop.f32.mrf.mxu1 }
 0x1c7   : > { %4812 = vst [vmem:[#allocation11_spill] sm:$0xff] %v4668_v7  ;;  %v3429_v0 = vadd.f32 %v3428_v62, %v3427_v43  ;;  %v3454_v62 = vadd.f32 %v4579_v17, %v4571_v22 }
 0x1c8   : > { %v3430_v9 = vpop.f32.mrf.mxu0  ;;  %v4672_v58 = vpop.f32.mrf.mxu1 }
 0x1c9   : > { %v4677_v28 = vadd.f32 %v3429_v0, %v4559_v52  ;;  %v2183_v52 = vadd.f32 %v3457_v21, %v4478_v47  ;;  %v3463_v47 = vadd.f32 %v4600_v49, %v4595_v46 }
 0x1ca   : > { %v3431_v10 = vpop.f32.mrf.mxu0  ;;  %v4679_v44 = vpop.f32.mrf.mxu1 }
 0x1cb   : > { %4813 = vst [vmem:[#allocation12_spill] sm:$0xff] %v4677_v28  ;;  %v3432_v24 = vadd.f32 %v3431_v10, %v3430_v9  ;;  %v2186_v28 = vadd.f32 %v3460_v37, %v4485_v57  ;;  %v3472_v57 = vadd.f32 %v4621_v2, %v4616_v48  ;;  %v2199_v48 = vadd.f32 %v3469_v54, %v4506_v41 }
 0x1cc   : > { %v4683_v7 = vpop.f32.mrf.mxu1  ;;  %v3587_v43 = vpop.f32.mrf.mxu0  ;;  %v2194_v41 = vadd.f32 %v3466_v1, %v4499_v26  ;;  %v3475_v54 = vadd.f32 %v4628_v36, %v4623_v32 }
 0x1cd   : > { %v4688_v55 = vadd.f32 %v3432_v24, %v4566_v4  ;;  %v2344_v0 = vadd.f32 %v3587_v43, %v2183_v52  ;;  %v2178_v4 = vadd.f32 %v3454_v62, %v4471_v27  ;;  %v2191_v43 = vadd.f32 %v3463_v47, %v4492_v15 }
 0x1ce   : > { %v4691_v60 = vpop.f32.mrf.mxu1  ;;  %v2335_v33 = vpop.f32.mrf.mxu0  ;;  %v2202_v62 = vadd.f32 %v3472_v57, %v4513_v18  ;;  %v3484_v15 = vadd.f32 %v4649_v12, %v4644_v31  ;;  %v2207_v1 = vadd.f32 %v3475_v54, %v4520_v50  ;;  %v3496_v50 = vadd.f32 %v4679_v44, %v4672_v58 }
 0x1cf   : > { %v2336_v9 = vadd.f32 %v2335_v33, %v4577_v45  ;;  %v2464_v10 = vmax.f32 %v2344_v0, 0.0  ;;  %v3481_v0 = vadd.f32 %v4642_v56, %v4637_v14  ;;  %v3478_v14 = vadd.f32 %v4635_v53, %v4630_v63 }
 0x1d0   : > { %v4694_v25 = vpop.f32.mrf.mxu1  ;;  %v3588_v30 = vpop.f32.mrf.mxu0  ;;  %v2234_v44 = vadd.f32 %v3496_v50, %v4569_v35 }
 0x1d1   : > { %v2347_v22 = vadd.f32 %v3588_v30, %v2186_v28  ;;  %v2462_v46 = vmax.f32 %v2336_v9, 0.0  ;;  %v2215_v32 = vadd.f32 %v3481_v0, %v4534_v61  ;;  %v2210_v61 = vadd.f32 %v3478_v14, %v4527_v51 }
 0x1d2   : > { %v4703_v17 = vpop.f32.mrf.mxu1  ;;  %v2338_v21 = vpop.f32.mrf.mxu0 }
 0x1d3   : > { %v2465_v37 = vmax.f32 %v2347_v22, 0.0  ;;  %v2339_v24 = vadd.f32 %v2338_v21, %v2178_v4 }
 0x1d4   : > { %v4714_v27 = vpop.f32.mrf.mxu1  ;;  %v3591_v45 = vpop.f32.mrf.mxu0 }
 0x1d5   : > { %v3010_v49 = vpack.c.bf16 %v2465_v37, %v2464_v10  ;;  %v2463_v5 = vmax.f32 %v2339_v24, 0.0  ;;  %v2360_v59 = vadd.f32 %v3591_v45, %v2199_v48  ;;  %v2218_v45 = vadd.f32 %v3484_v15, %v4541_v3 }
 0x1d6   : > { %v4717_v2 = vpop.f32.mrf.mxu1  ;;  %v2351_v28 = vpop.f32.mrf.mxu0  ;;  %v3487_v48 = vadd.f32 %v4656_v8, %v4651_v6 }
 0x1d7   : > { %3082 = vst [vmem:[%s4712_s21 + $0x8] sm:$0xff] %v3010_v49   ;;  %v3005_v38 = vpack.c.bf16 %v2463_v5, %v2462_v46  ;;  %v2352_v30 = vadd.f32 %v2351_v28, %v2191_v43  ;;  %v2468_v18 = vmax.f32 %v2360_v59, 0.0  ;;  %v3493_v46 = vadd.f32 %v4670_v39, %v4665_v40 }
 0x1d8   : > { %v4722_v52 = vpop.f32.mrf.mxu1  ;;  %v3592_v33 = vpop.f32.mrf.mxu0  ;;  %v3490_v40 = vadd.f32 %v4663_v23, %v4658_v11  ;;  %v2223_v58 = vadd.f32 %v3487_v48, %v4548_v13  ;;  %v3505_v11 = vadd.f32 %v4717_v2, %v4714_v27 }
 0x1d9   : > { %3006 = vst [vmem:[%s4712_s21] sm:$0xff] %v3005_v38   ;;  %v2363_v9 = vadd.f32 %v3592_v33, %v2202_v62  ;;  %v2466_v26 = vmax.f32 %v2352_v30, 0.0  ;;  %v2231_v6 = vadd.f32 %v3493_v46, %v4562_v29  ;;  %v3499_v29 = vadd.f32 %v4691_v60, %v4683_v7 }
 0x1da   : > { %v3507_v22 = vpop.f32.mrf.mxu1  ;;  %v2354_v4 = vpop.f32.mrf.mxu0 }
 0x1db   : > { %v2469_v47 = vmax.f32 %v2363_v9, 0.0  ;;  %v2355_v21 = vadd.f32 %v2354_v4, %v2194_v41  ;;  %v3508_v13 = vadd.f32 %v3507_v22, %v4722_v52  ;;  %v2239_v52 = vadd.f32 %v3499_v29, %v4574_v16 }
 0x1dc   : > { %v4734_v56 = vpop.f32.mrf.mxu1  ;;  %v3595_v57 = vpop.f32.mrf.mxu0 }
 0x1dd   : > { %v3020_v10 = vpack.c.bf16 %v2469_v47, %v2468_v18  ;;  %v2467_v37 = vmax.f32 %v2355_v21, 0.0  ;;  %v2376_v12 = vadd.f32 %v3595_v57, %v2215_v32  ;;  %v2226_v18 = vadd.f32 %v3490_v40, %v4555_v19  ;;  %v4814_v40 = vld [vmem:[#allocation4_spill] sm:$0xff] }
 0x1de   : > { %v4737_v36 = vpop.f32.mrf.mxu1  ;;  %v2367_v24 = vpop.f32.mrf.mxu0  ;;  %v2247_v32 = vadd.f32 %v3505_v11, %v4591_v20  ;;  %v2250_v22 = vadd.f32 %v3508_v13, %v4598_v42 }
 0x1df   : > { %3084 = vst [vmem:[%s4712_s21 + $0x18] sm:$0xff] %v3020_v10   ;;  %v3015_v31 = vpack.c.bf16 %v2467_v37, %v2466_v26  ;;  %v2368_v49 = vadd.f32 %v2367_v24, %v2207_v1  ;;  %v2472_v3 = vmax.f32 %v2376_v12, 0.0  ;;  %v3502_v26 = vadd.f32 %v4703_v17, %v4694_v25 }
 0x1e0   : > { %v4742_v63 = vpop.f32.mrf.mxu1  ;;  %v3596_v53 = vpop.f32.mrf.mxu0  ;;  %v3511_v20 = vadd.f32 %v4737_v36, %v4734_v56 }
 0x1e1   : > { %3083 = vst [vmem:[%s4712_s21 + $0x10] sm:$0xff] %v3015_v31   ;;  %v2379_v5 = vadd.f32 %v3596_v53, %v2218_v45  ;;  %v2470_v33 = vmax.f32 %v2368_v49, 0.0  ;;  %v2242_v53 = vadd.f32 %v3502_v26, %v4584_v34 }
 0x1e2   : > { %v3513_v28 = vpop.f32.mrf.mxu1  ;;  %v2370_v38 = vpop.f32.mrf.mxu0 }
 0x1e3   : > { %v2473_v59 = vmax.f32 %v2379_v5, 0.0  ;;  %v2371_v43 = vadd.f32 %v2370_v38, %v2210_v61  ;;  %v3514_v42 = vadd.f32 %v3513_v28, %v4742_v63 }
 0x1e4   : > { %v3515_v39 = vpop.f32.mrf.mxu1  ;;  %v3599_v62 = vpop.f32.mrf.mxu0 }
 0x1e5   : > { %v3030_v51 = vpack.c.bf16 %v2473_v59, %v2472_v3  ;;  %v2471_v0 = vmax.f32 %v2371_v43, 0.0  ;;  %v2392_v41 = vadd.f32 %v3599_v62, %v2231_v6 }
 0x1e6   : > { %v3516_v8 = vpop.f32.mrf.mxu1  ;;  %v2383_v30 = vpop.f32.mrf.mxu0 }
 0x1e7   : > { %3086 = vst [vmem:[%s4712_s21 + $0x28] sm:$0xff] %v3030_v51   ;;  %v3025_v9 = vpack.c.bf16 %v2471_v0, %v2470_v33  ;;  %v2384_v23 = vadd.f32 %v2383_v30, %v2223_v58  ;;  %v2476_v14 = vmax.f32 %v2392_v41, 0.0  ;;  %v3517_v25 = vadd.f32 %v3516_v8, %v3515_v39  ;;  %v4815_v33 = vld [vmem:[#allocation2_spill] sm:$0xff]  ;;  %v4816_v0 = vld [vmem:[#allocation5_spill] sm:$0xff]  ;;  %v4817_v41 = vld [vmem:[#allocation3_spill] sm:$0xff] }
 0x1e8   : > { %v3518_v54 = vpop.f32.mrf.mxu1  ;;  %v3600_v4 = vpop.f32.mrf.mxu0  ;;  %v2255_v51 = vadd.f32 %v3511_v20, %v4815_v33  ;;  %v2258_v58 = vadd.f32 %v3514_v42, %v4817_v41  ;;  %v4824_v33 = vld [vmem:[#allocation11_spill] sm:$0xff] }
 0x1e9   : > { %3085 = vst [vmem:[%s4712_s21 + $0x20] sm:$0xff] %v3025_v9   ;;  %v2395_v15 = vadd.f32 %v3600_v4, %v2234_v44  ;;  %v2474_v10 = vmax.f32 %v2384_v23, 0.0  ;;  %v2263_v34 = vadd.f32 %v3517_v25, %v4814_v40 }
 0x1ea   : > { %v3519_v47 = vpop.f32.mrf.mxu1  ;;  %v2386_v21 = vpop.f32.mrf.mxu0 }
 0x1eb   : > { %v2477_v35 = vmax.f32 %v2395_v15, 0.0  ;;  %v2387_v57 = vadd.f32 %v2386_v21, %v2226_v18  ;;  %v3520_v5 = vadd.f32 %v3519_v47, %v3518_v54 }
 0x1ec   : > { %v3521_v27 = vpop.f32.mrf.mxu1  ;;  %v3603_v2 = vpop.f32.mrf.mxu0 }
 0x1ed   : > { %v3040_v37 = vpack.c.bf16 %v2477_v35, %v2476_v14  ;;  %v2475_v19 = vmax.f32 %v2387_v57, 0.0  ;;  %v2408_v31 = vadd.f32 %v3603_v2, %v2247_v32  ;;  %v2266_v6 = vadd.f32 %v3520_v5, %v4816_v0  ;;  %v4818_v57 = vld [vmem:[#allocation8_spill] sm:$0xff] }
 0x1ee   : > { %v3522_v7 = vpop.f32.mrf.mxu1  ;;  %v2399_v60 = vpop.f32.mrf.mxu0 }
 0x1ef   : > { %3088 = vst [vmem:[%s4712_s21 + $0x38] sm:$0xff] %v3040_v37   ;;  %v3035_v24 = vpack.c.bf16 %v2475_v19, %v2474_v10  ;;  %v2400_v17 = vadd.f32 %v2399_v60, %v2239_v52  ;;  %v2480_v61 = vmax.f32 %v2408_v31, 0.0  ;;  %v3523_v44 = vadd.f32 %v3522_v7, %v3521_v27  ;;  %v4819_v19 = vld [vmem:[#allocation6_spill] sm:$0xff]  ;;  %v4820_v7 = vld [vmem:[#allocation9_spill] sm:$0xff] }
 0x1f0   : > { %v3524_v12 = vpop.f32.mrf.mxu1  ;;  %v3604_v1 = vpop.f32.mrf.mxu0 }
 0x1f1   : > { %3087 = vst [vmem:[%s4712_s21 + $0x30] sm:$0xff] %v3035_v24   ;;  %v2411_v45 = vadd.f32 %v3604_v1, %v2250_v22  ;;  %v2478_v3 = vmax.f32 %v2400_v17, 0.0  ;;  %v2271_v32 = vadd.f32 %v3523_v44, %v4819_v19 }
 0x1f2   : > { %v3525_v46 = vpop.f32.mrf.mxu1  ;;  %v2402_v49 = vpop.f32.mrf.mxu0 }
 0x1f3   : > { %v2481_v48 = vmax.f32 %v2411_v45, 0.0  ;;  %v2403_v16 = vadd.f32 %v2402_v49, %v2242_v53  ;;  %v3526_v29 = vadd.f32 %v3525_v46, %v3524_v12  ;;  %v4821_v12 = vld [vmem:[#allocation7_spill] sm:$0xff] }
 0x1f4   : > { %v3527_v38 = vpop.f32.mrf.mxu1  ;;  %v3607_v50 = vpop.f32.mrf.mxu0 }
 0x1f5   : > { %v3050_v59 = vpack.c.bf16 %v2481_v48, %v2480_v61  ;;  %v2479_v43 = vmax.f32 %v2403_v16, 0.0  ;;  %v2424_v36 = vadd.f32 %v3607_v50, %v2263_v34  ;;  %v2274_v1 = vadd.f32 %v3526_v29, %v4821_v12 }
 0x1f6   : > { %v3528_v39 = vpop.f32.mrf.mxu1  ;;  %v2415_v62 = vpop.f32.mrf.mxu0 }
 0x1f7   : > { %3090 = vst [vmem:[%s4712_s21 + $0x48] sm:$0xff] %v3050_v59   ;;  %v3045_v56 = vpack.c.bf16 %v2479_v43, %v2478_v3  ;;  %v3529_v63 = vadd.f32 %v3528_v39, %v3527_v38  ;;  %v2416_v28 = vadd.f32 %v2415_v62, %v2255_v51  ;;  %v2484_v11 = vmax.f32 %v2424_v36, 0.0  ;;  %v4822_v43 = vld [vmem:[#allocation10_spill] sm:$0xff]  ;;  %v4823_v62 = vld [vmem:[#allocation12_spill] sm:$0xff] }
 0x1f8   : > { %v3530_v8 = vpop.f32.mrf.mxu1  ;;  %v3608_v30 = vpop.f32.mrf.mxu0 }
 0x1f9   : > { %3089 = vst [vmem:[%s4712_s21 + $0x40] sm:$0xff] %v3045_v56   ;;  %v2427_v9 = vadd.f32 %v3608_v30, %v2266_v6  ;;  %v2482_v13 = vmax.f32 %v2416_v28, 0.0  ;;  %v2279_v26 = vadd.f32 %v3529_v63, %v4818_v57 }
 0x1fa   : > { %v3531_v54 = vpop.f32.mrf.mxu1  ;;  %v2418_v4 = vpop.f32.mrf.mxu0 }
 0x1fb   : > { %v2485_v23 = vmax.f32 %v2427_v9, 0.0  ;;  %v3532_v15 = vadd.f32 %v3531_v54, %v3530_v8  ;;  %v2419_v18 = vadd.f32 %v2418_v4, %v2258_v58 }
 0x1fc   : > { %v3533_v47 = vpop.f32.mrf.mxu1  ;;  %v3611_v21 = vpop.f32.mrf.mxu0 }
 0x1fd   : > { %v3060_v14 = vpack.c.bf16 %v2485_v23, %v2484_v11  ;;  %v2483_v35 = vmax.f32 %v2419_v18, 0.0  ;;  %v2440_v37 = vadd.f32 %v3611_v21, %v2279_v26  ;;  %v2282_v60 = vadd.f32 %v3532_v15, %v4820_v7 }
 0x1fe   : > { %v3534_v2 = vpop.f32.mrf.mxu1  ;;  %v2431_v10 = vpop.f32.mrf.mxu0 }
 0x1ff   : > { %3092 = vst [vmem:[%s4712_s21 + $0x58] sm:$0xff] %v3060_v14   ;;  %v3055_v27 = vpack.c.bf16 %v2483_v35, %v2482_v13  ;;  %v2432_v52 = vadd.f32 %v2431_v10, %v2271_v32  ;;  %v2488_v45 = vmax.f32 %v2440_v37, 0.0  ;;  %v3535_v53 = vadd.f32 %v3534_v2, %v3533_v47 }
 0x200   : > { %v3536_v24 = vpop.f32.mrf.mxu1  ;;  %v3612_v31 = vpop.f32.mrf.mxu0 }
 0x201   : > { %3091 = vst [vmem:[%s4712_s21 + $0x50] sm:$0xff] %v3055_v27   ;;  %v2443_v22 = vadd.f32 %v3612_v31, %v2282_v60  ;;  %v2486_v61 = vmax.f32 %v2432_v52, 0.0  ;;  %v2287_v40 = vadd.f32 %v3535_v53, %v4822_v43 }
 0x202   : > { %v3537_v25 = vpop.f32.mrf.mxu1  ;;  %v2434_v17 = vpop.f32.mrf.mxu0 }
 0x203   : > { %v2489_v20 = vmax.f32 %v2443_v22, 0.0  ;;  %v2435_v46 = vadd.f32 %v2434_v17, %v2274_v1  ;;  %v3538_v16 = vadd.f32 %v3537_v25, %v3536_v24 }
 0x204   : > { %v3539_v49 = vpop.f32.mrf.mxu1  ;;  %v3615_v5 = vpop.f32.mrf.mxu0 }
 0x205   : > { %v3070_v48 = vpack.c.bf16 %v2489_v20, %v2488_v45  ;;  %v2487_v42 = vmax.f32 %v2435_v46, 0.0  ;;  %v2290_v51 = vadd.f32 %v3538_v16, %v4824_v33 }
 0x206   : > { %v3540_v38 = vpop.f32.mrf.mxu1  ;;  %v2447_v50 = vpop.f32.mrf.mxu0 }
 0x207   : > { %3094 = vst [vmem:[%s4712_s21 + $0x68] sm:$0xff] %v3070_v48   ;;  %v3065_v3 = vpack.c.bf16 %v2487_v42, %v2486_v61  ;;  %v3541_v59 = vadd.f32 %v3540_v38, %v3539_v49  ;;  %v2448_v36 = vadd.f32 %v2447_v50, %v2287_v40 }
 0x208   : > { %v3542_v34 = vpop.f32.mrf.mxu1  ;;  %v3616_v39 = vpop.f32.mrf.mxu0 }
 0x209   : > { %3093 = vst [vmem:[%s4712_s21 + $0x60] sm:$0xff] %v3065_v3   ;;  %v2295_v56 = vadd.f32 %v3541_v59, %v4823_v62  ;;  %v2490_v28 = vmax.f32 %v2448_v36, 0.0 }
 0x20a   : > { %v3543_v0 = vpop.f32.mrf.mxu1  ;;  %v2450_v6 = vpop.f32.mrf.mxu0 }
 0x20b   : > { %v3544_v8 = vadd.f32 %v3543_v0, %v3542_v34  ;;  %v2451_v30 = vadd.f32 %v2450_v6, %v2290_v51  ;;  %v2456_v63 = vadd.f32 %v3615_v5, %v2295_v56 }
 0x20d   : > { %v2298_v9 = vadd.f32 %v3544_v8, %v4688_v55  ;;  %v2491_v41 = vmax.f32 %v2451_v30, 0.0  ;;  %v2492_v54 = vmax.f32 %v2456_v63, 0.0 }
 0x20f   : > { %v2459_v58 = vadd.f32 %v3616_v39, %v2298_v9  ;;  %v3075_v44 = vpack.c.bf16 %v2491_v41, %v2490_v28 }
 0x211   : > { %v2493_v4 = vmax.f32 %v2459_v58, 0.0  ;;  %3095 = vst [vmem:[%s4712_s21 + $0x70] sm:$0xff] %v3075_v44  }
 0x213   : > { %v3080_v11 = vpack.c.bf16 %v2493_v4, %v2492_v54 }
 0x215   : > { %3096 = vst [vmem:[%s4712_s21 + $0x78] sm:$0xff] %v3080_v11  }
 0x216 PF: > { %s13_s12 = sadd.s32 1, %s3928_s12  }
 0x217   : > { %p10_p4 = scmp.ge.s32.totalorder %s13_s12, 4  }
 0x219   :  { %12 = sbr.rel (!%p10_p4) target bundleno = 1 (0x1), region = 62 }

// kernel: feature_net_forward.15
= control target key start
LH: loop header
LB: loop body
LE: loop exit
PB: predicated region body
PF: predicated region fallthrough
CT: control target
= control target key end

     0   :  { %s1435_s12 = smov 0   ;;  %s1688_s0 = inlined_call_operand.vmem [shape: bf16[32,1152], index: 0, kind: input, shape index: {}]   ;;  %s1689_s1 = inlined_call_operand.vmem [shape: bf16[1152,128], index: 1, kind: input, shape index: {}]   ;;  %s1690_s2 = inlined_call_operand.vmem [shape: f32[1,128], index: 2, kind: input, shape index: {}]   ;;  %s1691_s3 = inlined_call_operand.vmem [shape: bf16[32,128], index: 3, kind: output, shape index: {}]  }
   0x1 LB: > { %s1090_s13 = sadd.s32 4294967295, %s1411_s12   ;;  %p1094_p0 = scmp.ge.s32.totalorder %s1411_s12, 1  ;;  %s1411_s12 = sphi %s1435_s12, %s13_s12  }
   0x2   : > { %p139_p1 = scmp.lt.s32.totalorder %s1411_s12, 3 }
   0x4   : > { %p140_p2 = pnand %p1094_p0, %p139_p1 }
   0x5   : > { %s1095_s17 = sshll.u32 (!%p140_p2), %s1090_s13, 1 }
   0x6   : > { %143 = sbr.rel (%p140_p2) target bundleno = 312 (0x138), region = 32  ;;  %p165_p3 = scmp.lt.s32.totalorder (!%p140_p2), %s1095_s17, 3 }
   0xb   : > { %v1320_v0 = vld [vmem:[%s1689_s1 + $0x78] sm:$0xff]   ;;  %v1324_v4 = vld [vmem:[%s1689_s1 + $0x70] sm:$0xff]   ;;  %v1328_v8 = vld [vmem:[%s1689_s1 + $0x68] sm:$0xff]   ;;  %s1693_s17 = smov (!%p165_p3, %s1095_s17), 3  ;;  %vm1414_vm0 = vmmov 0  }
   0xc   : > { %v1321_v1 = vld [vmem:[%s1689_s1 + $0x38] sm:$0xff]   ;;  %1192 = vmatprep.subr.bf16.mxu0 %v1320_v0  ;;  %v1325_v5 = vld [vmem:[%s1689_s1 + $0x30] sm:$0xff]   ;;  %v1329_v9 = vld [vmem:[%s1689_s1 + $0x28] sm:$0xff]   ;;  %s1309_s14 = smul.u32 36, %s1693_s17 }
   0xd   : > { %v1322_v2 = vld [vmem:[%s1689_s1 + $0xf8] sm:$0xff]   ;;  %1193 = vmatpush3.bf16.msra.mxu0 %v1321_v1  ;;  %v1326_v6 = vld [vmem:[%s1689_s1 + $0xf0] sm:$0xff]   ;;  %v1330_v10 = vld [vmem:[%s1689_s1 + $0xe8] sm:$0xff]  }
   0xe   : > { %v1323_v3 = vld [vmem:[%s1689_s1 + $0xb8] sm:$0xff]   ;;  %1214 = vmatprep.subr.bf16.mxu1 %v1322_v2  ;;  %1194 = vmatprep.subr.bf16.mxu0 %v1324_v4  ;;  %v1327_v7 = vld [vmem:[%s1689_s1 + $0xb0] sm:$0xff]   ;;  %v1331_v11 = vld [vmem:[%s1689_s1 + $0xa8] sm:$0xff]   ;;  %s1538_s13 = scalar_lea.vmem %s1688_s0, %s1309_s14 }
   0xf   : > { %1215 = vmatpush3.bf16.msra.mxu1 %v1323_v3  ;;  %v1332_v12 = vld [vmem:[%s1689_s1 + $0x60] sm:$0xff]   ;;  %v1336_v16 = vld [vmem:[%s1689_s1 + $0x58] sm:$0xff]   ;;  %v1340_v20 = vld [vmem:[%s1689_s1 + $0x50] sm:$0xff]  }
  0x10   : > { %1216 = vmatprep.subr.bf16.mxu1 %v1326_v6  ;;  %v1333_v13 = vld [vmem:[%s1689_s1 + $0x20] sm:$0xff]   ;;  %v1337_v17 = vld [vmem:[%s1689_s1 + $0x18] sm:$0xff]   ;;  %v1341_v21 = vld [vmem:[%s1689_s1 + $0x10] sm:$0xff]   ;;  %v1413_v6 = vmov 0.0  }
  0x11   : > { %1195 = vmatpush3.bf16.msra.mxu0 %v1325_v5  ;;  %v1334_v14 = vld [vmem:[%s1689_s1 + $0xe0] sm:$0xff]   ;;  %v1338_v18 = vld [vmem:[%s1689_s1 + $0xd8] sm:$0xff]   ;;  %v1342_v22 = vld [vmem:[%s1689_s1 + $0xd0] sm:$0xff]  }
  0x12   : > { %1196 = vmatprep.subr.bf16.mxu0 %v1328_v8  ;;  %v1335_v15 = vld [vmem:[%s1689_s1 + $0xa0] sm:$0xff]   ;;  %v1339_v19 = vld [vmem:[%s1689_s1 + $0x98] sm:$0xff]   ;;  %v1343_v23 = vld [vmem:[%s1689_s1 + $0x90] sm:$0xff]  }
  0x13   : > { %1217 = vmatpush3.bf16.msra.mxu1 %v1327_v7  ;;  %v1344_v24 = vld [vmem:[%s1689_s1 + $0x48] sm:$0xff]   ;;  %v1348_v28 = vld [vmem:[%s1689_s1 + $0x40] sm:$0xff]   ;;  %v1355_v34 = vld [vmem:[%s1689_s1 + $0x178] sm:$0xff]  }
  0x14   : > { %1218 = vmatprep.subr.bf16.mxu1 %v1330_v10  ;;  %v1345_v25 = vld [vmem:[%s1689_s1 + $0x8] sm:$0xff]   ;;  %v1349_v29 = vld [vmem:[%s1689_s1] sm:$0xff]   ;;  %v1359_v37 = vld [vmem:[%s1689_s1 + $0x138] sm:$0xff]  }
  0x15   : > { %1197 = vmatpush3.bf16.msra.mxu0 %v1329_v9  ;;  %v1346_v26 = vld [vmem:[%s1689_s1 + $0xc8] sm:$0xff]   ;;  %v1350_v30 = vld [vmem:[%s1689_s1 + $0xc0] sm:$0xff]   ;;  %v1360_v38 = vld [vmem:[%s1689_s1 + $0x1f8] sm:$0xff]  }
  0x16   : > { %1198 = vmatprep.subr.bf16.mxu0 %v1332_v12  ;;  %v1347_v27 = vld [vmem:[%s1689_s1 + $0x88] sm:$0xff]   ;;  %v1351_v31 = vld [vmem:[%s1538_s13] ss:$36 sps:$4 sm:$0xff]   ;;  %v1361_v39 = vld [vmem:[%s1689_s1 + $0x1b8] sm:$0xff]  }
  0x17   : > { %1219 = vmatpush3.bf16.msra.mxu1 %v1331_v11  ;;  %v1353_v32 = vld [vmem:[%s1538_s13 + $0x4] ss:$36 sps:$4 sm:$0xff]   ;;  %v1358_v36 = vld [vmem:[%s1538_s13 + $0xc] ss:$36 sps:$4 sm:$0xff]   ;;  %v1374_v52 = vld [vmem:[%s1689_s1 + $0x158] sm:$0xff]  }
  0x18   : > { %1220 = vmatprep.subr.bf16.mxu1 %v1334_v14  ;;  %v1354_v33 = vld [vmem:[%s1689_s1 + $0x80] sm:$0xff]   ;;  %849 = vmatprep.mubr.bf16.mxu0 %v1353_v32  ;;  %v1356_v35 = vld [vmem:[%s1538_s13 + $0x8] ss:$36 sps:$4 sm:$0xff]   ;;  %v1362_v40 = vld [vmem:[%s1689_s1 + $0x170] sm:$0xff]  }
  0x19   : > { %1199 = vmatpush3.bf16.msra.mxu0 %v1333_v13  ;;  %890 = vmatprep.mubr.bf16.mxu1 %v1358_v36  ;;  %v1363_v41 = vld [vmem:[%s1689_s1 + $0x130] sm:$0xff]   ;;  %v1366_v44 = vld [vmem:[%s1689_s1 + $0x168] sm:$0xff]   ;;  %v1370_v48 = vld [vmem:[%s1689_s1 + $0x160] sm:$0xff]  }
  0x1a   : > { %1200 = vmatprep.subr.bf16.mxu0 %v1336_v16  ;;  %v1364_v42 = vld [vmem:[%s1689_s1 + $0x1f0] sm:$0xff]   ;;  %v1367_v45 = vld [vmem:[%s1689_s1 + $0x128] sm:$0xff]   ;;  %v1371_v49 = vld [vmem:[%s1689_s1 + $0x120] sm:$0xff]  }
  0x1b   : > { %1221 = vmatpush3.bf16.msra.mxu1 %v1335_v15  ;;  %v1365_v43 = vld [vmem:[%s1689_s1 + $0x1b0] sm:$0xff]   ;;  %v1368_v46 = vld [vmem:[%s1689_s1 + $0x1e8] sm:$0xff]   ;;  %v1372_v50 = vld [vmem:[%s1689_s1 + $0x1e0] sm:$0xff]  }
  0x1c   : > { %1222 = vmatprep.subr.bf16.mxu1 %v1338_v18  ;;  %v1369_v47 = vld [vmem:[%s1689_s1 + $0x1a8] sm:$0xff]   ;;  %v1373_v51 = vld [vmem:[%s1689_s1 + $0x1a0] sm:$0xff]   ;;  %v1375_v53 = vld [vmem:[%s1689_s1 + $0x118] sm:$0xff]  }
  0x1d   : > { %1201 = vmatpush3.bf16.msra.mxu0 %v1337_v17  ;;  %v1376_v54 = vld [vmem:[%s1689_s1 + $0x1d8] sm:$0xff]   ;;  %v1378_v56 = vld [vmem:[%s1689_s1 + $0x150] sm:$0xff]   ;;  %v1382_v60 = vld [vmem:[%s1689_s1 + $0x148] sm:$0xff]  }
  0x1e   : > { %1202 = vmatprep.subr.bf16.mxu0 %v1340_v20  ;;  %v1377_v55 = vld [vmem:[%s1689_s1 + $0x198] sm:$0xff]   ;;  %v1379_v57 = vld [vmem:[%s1689_s1 + $0x110] sm:$0xff]   ;;  %v1383_v61 = vld [vmem:[%s1689_s1 + $0x108] sm:$0xff]  }
  0x1f   : > { %1223 = vmatpush3.bf16.msra.mxu1 %v1339_v19  ;;  %v1380_v58 = vld [vmem:[%s1689_s1 + $0x1d0] sm:$0xff]   ;;  %v1384_v62 = vld [vmem:[%s1689_s1 + $0x1c8] sm:$0xff]   ;;  %v1386_v0 = vld [vmem:[%s1689_s1 + $0x140] sm:$0xff]  }
  0x20   : > { %1224 = vmatprep.subr.bf16.mxu1 %v1342_v22  ;;  %v1381_v59 = vld [vmem:[%s1689_s1 + $0x190] sm:$0xff]   ;;  %v1385_v63 = vld [vmem:[%s1689_s1 + $0x188] sm:$0xff]   ;;  %v1387_v1 = vld [vmem:[%s1689_s1 + $0x100] sm:$0xff]  }
  0x21   : > { %1203 = vmatpush3.bf16.msra.mxu0 %v1341_v21  ;;  %v1388_v2 = vld [vmem:[%s1689_s1 + $0x1c0] sm:$0xff]   ;;  %v1389_v3 = vld [vmem:[%s1538_s13 + $0x10] ss:$36 sps:$4 sm:$0xff]   ;;  %v1393_v7 = vld [vmem:[%s1538_s13 + $0x18] ss:$36 sps:$4 sm:$0xff]  }
  0x22   : > { %1204 = vmatprep.subr.bf16.mxu0 %v1344_v24  ;;  %v1391_v4 = vld [vmem:[%s1538_s13 + $0x14] ss:$36 sps:$4 sm:$0xff]   ;;  %v1392_v5 = vld [vmem:[%s1689_s1 + $0x180] sm:$0xff]   ;;  %v1398_v11 = vld [vmem:[%s1689_s1 + $0x228] sm:$0xff]  }
  0x23   : > { %1225 = vmatpush3.bf16.msra.mxu1 %v1343_v23  ;;  %v1395_v8 = vld [vmem:[%s1538_s13 + $0x1c] ss:$36 sps:$4 sm:$0xff]   ;;  %v1397_v10 = vld [vmem:[%s1689_s1 + $0x230] sm:$0xff]   ;;  %v1402_v15 = vld [vmem:[%s1689_s1 + $0x208] sm:$0xff]  }
  0x24   : > { %1226 = vmatprep.subr.bf16.mxu1 %v1346_v26  ;;  %v1396_v9 = vld [vmem:[%s1689_s1 + $0x238] sm:$0xff]   ;;  %v1399_v12 = vld [vmem:[%s1689_s1 + $0x220] sm:$0xff]   ;;  %v1401_v14 = vld [vmem:[%s1689_s1 + $0x210] sm:$0xff]  }
  0x25   : > { %1205 = vmatpush3.bf16.msra.mxu0 %v1345_v25  ;;  %v1400_v13 = vld [vmem:[%s1689_s1 + $0x218] sm:$0xff]   ;;  %v1403_v16 = vld [vmem:[%s1689_s1 + $0x200] sm:$0xff]  }
  0x26   : > { %1206 = vmatprep.subr.bf16.mxu0 %v1348_v28  ;;  %v1404_v17 = vld [vmem:[%s1538_s13 + $0x20] ss:$36 sps:$4 sm:$0xff]   ;;  %s1098_s13 = sshll.u32 %s1693_s17, 2 }
  0x27   : > { %1227 = vmatpush3.bf16.msra.mxu1 %v1347_v27  ;;  %s175_s20 = scalar_lea.vmem %s1691_s3, %s1098_s13 }
  0x28   : > { %1228 = vmatprep.subr.bf16.mxu1 %v1350_v30  ;;  %v1099_v30 = vld [vmem:[%s1690_s2] ss:$0 sm:$0xff] }
  0x29   : > { %1207 = vmatpush3.bf16.msra.mxu0 %v1349_v29 }
  0x2a   : > { %1236 = vmatprep.subr.bf16.mxu0 %v1355_v34 }
  0x2b   : > { %1229 = vmatpush3.bf16.msra.mxu1 %v1354_v33 }
  0x2c   : > { %850 = vmatmul.mubr.bf16.vlgmr.msra.gmra.mxu0 %v1351_v31  ;;  %1258 = vmatprep.subr.bf16.mxu1 %v1360_v38 }
  0x2d   : > { %1237 = vmatpush3.bf16.msra.mxu0 %v1359_v37  ;;  %931 = vmatprep.mubr.bf16.mxu0 %v1391_v4 }
  0x2e   : > { %891 = vmatmul.mubr.bf16.vlgmr.msra.gmra.mxu1 %v1356_v35  ;;  %1238 = vmatprep.subr.bf16.mxu0 %v1362_v40 }
  0x2f   : > { %1259 = vmatpush3.bf16.msra.mxu1 %v1361_v39  ;;  %972 = vmatprep.mubr.bf16.mxu1 %v1395_v8 }
  0x30   : > { %1260 = vmatprep.subr.bf16.mxu1 %v1364_v42 }
  0x31   : > { %1239 = vmatpush3.bf16.msra.mxu0 %v1363_v41 }
  0x32   : > { %1240 = vmatprep.subr.bf16.mxu0 %v1366_v44 }
  0x33   : > { %1261 = vmatpush3.bf16.msra.mxu1 %v1365_v43 }
  0x34   : > { %1262 = vmatprep.subr.bf16.mxu1 %v1368_v46 }
  0x35   : > { %1241 = vmatpush3.bf16.msra.mxu0 %v1367_v45 }
  0x36   : > { %1242 = vmatprep.subr.bf16.mxu0 %v1370_v48 }
  0x37   : > { %1263 = vmatpush3.bf16.msra.mxu1 %v1369_v47 }
  0x38   : > { %1264 = vmatprep.subr.bf16.mxu1 %v1372_v50 }
  0x39   : > { %1243 = vmatpush3.bf16.msra.mxu0 %v1371_v49 }
  0x3a   : > { %1244 = vmatprep.subr.bf16.mxu0 %v1374_v52 }
  0x3b   : > { %1265 = vmatpush3.bf16.msra.mxu1 %v1373_v51 }
  0x3c   : > { %1266 = vmatprep.subr.bf16.mxu1 %v1376_v54 }
  0x3d   : > { %1245 = vmatpush3.bf16.msra.mxu0 %v1375_v53 }
  0x3e   : > { %1246 = vmatprep.subr.bf16.mxu0 %v1378_v56 }
  0x3f   : > { %1267 = vmatpush3.bf16.msra.mxu1 %v1377_v55 }
  0x40   : > { %1268 = vmatprep.subr.bf16.mxu1 %v1380_v58 }
  0x41   : > { %1247 = vmatpush3.bf16.msra.mxu0 %v1379_v57 }
  0x42   : > { %1248 = vmatprep.subr.bf16.mxu0 %v1382_v60 }
  0x43   : > { %1269 = vmatpush3.bf16.msra.mxu1 %v1381_v59 }
  0x44   : > { %1270 = vmatprep.subr.bf16.mxu1 %v1384_v62 }
  0x45   : > { %1249 = vmatpush3.bf16.msra.mxu0 %v1383_v61 }
  0x46   : > { %1250 = vmatprep.subr.bf16.mxu0 %v1386_v0 }
  0x47   : > { %1271 = vmatpush3.bf16.msra.mxu1 %v1385_v63 }
  0x48   : > { %1272 = vmatprep.subr.bf16.mxu1 %v1388_v2 }
  0x49   : > { %1251 = vmatpush3.bf16.msra.mxu0 %v1387_v1 }
  0x4a   : > { %1289 = vmatprep.subr.bf16.mxu0 %v1413_v6 }
  0x4b   : > { %1273 = vmatpush3.bf16.msra.mxu1 %v1392_v5 }
  0x4c   : > { %932 = vmatmul.mubr.bf16.vlgmr.msra.gmra.mxu0 %v1389_v3 }
  0x4d   : > { %1305 = vmatprep.mubr.msk.bf16.mxu0 %vm1414_vm0, %v1413_v6  ;;  %1290 = vmatpush3.bf16.msra.mxu0 %v1396_v9 }
  0x4e   : > { %973 = vmatmul.mubr.bf16.vlgmr.msra.gmra.mxu1 %v1393_v7  ;;  %1291 = vmatprep.subr.bf16.mxu0 %v1413_v6 }
  0x51   : > { %1292 = vmatpush3.bf16.msra.mxu0 %v1397_v10 }
  0x52   : > { %1293 = vmatprep.subr.bf16.mxu0 %v1413_v6 }
  0x55   : > { %1294 = vmatpush3.bf16.msra.mxu0 %v1398_v11 }
  0x56   : > { %1295 = vmatprep.subr.bf16.mxu0 %v1413_v6 }
  0x59   : > { %1296 = vmatpush3.bf16.msra.mxu0 %v1399_v12 }
  0x5a   : > { %1297 = vmatprep.subr.bf16.mxu0 %v1413_v6 }
  0x5d   : > { %1298 = vmatpush3.bf16.msra.mxu0 %v1400_v13 }
  0x5e   : > { %1299 = vmatprep.subr.bf16.mxu0 %v1413_v6 }
  0x61   : > { %1300 = vmatpush3.bf16.msra.mxu0 %v1401_v14 }
  0x62   : > { %1301 = vmatprep.subr.bf16.mxu0 %v1413_v6 }
  0x65   : > { %1302 = vmatpush3.bf16.msra.mxu0 %v1402_v15 }
  0x66   : > { %1303 = vmatprep.subr.bf16.mxu0 %v1413_v6 }
  0x69   : > { %1304 = vmatpush3.bf16.msra.mxu0 %v1403_v16 }
  0x6c   : > { %1306 = vmatmul.mubr.bf16.vlgmr.msra.gmra.mxu0 %v1404_v17 }
  0xec   : > { %v1208_v18 = vpop.f32.mrf.mxu0 }
  0xee   : > { %v1209_v19 = vpop.f32.mrf.mxu0  ;;  %v1230_v20 = vpop.f32.mrf.mxu1 }
  0xef   : > { %v1210_v29 = vadd.f32 %v1209_v19, %v1208_v18 }
  0xf0   : > { %v1211_v21 = vpop.f32.mrf.mxu0  ;;  %v1231_v22 = vpop.f32.mrf.mxu1 }
  0xf1   : > { %v852_v34 = vadd.f32 %v1210_v29, %v1099_v30  ;;  %v1232_v35 = vadd.f32 %v1231_v22, %v1230_v20 }
  0xf2   : > { %v1212_v23 = vpop.f32.mrf.mxu0  ;;  %v1233_v24 = vpop.f32.mrf.mxu1 }
  0xf3   : > { %v1213_v33 = vadd.f32 %v1212_v23, %v1211_v21  ;;  %v893_v41 = vadd.f32 %v1232_v35, %v852_v34 }
  0xf4   : > { %v1234_v26 = vpop.f32.mrf.mxu1 }
  0xf5   : > { %v855_v38 = vadd.f32 %v1213_v33, %v1099_v30  ;;  %v1235_v39 = vadd.f32 %v1234_v26, %v1233_v24 }
  0xf7   : > { %v896_v44 = vadd.f32 %v1235_v39, %v855_v38 }
 0x10c   : > { %v1252_v25 = vpop.f32.mrf.mxu0 }
 0x10e   : > { %v1253_v27 = vpop.f32.mrf.mxu0  ;;  %v1274_v28 = vpop.f32.mrf.mxu1 }
 0x10f   : > { %v1254_v40 = vadd.f32 %v1253_v27, %v1252_v25 }
 0x110   : > { %v1255_v31 = vpop.f32.mrf.mxu0  ;;  %v1275_v32 = vpop.f32.mrf.mxu1 }
 0x111   : > { %v934_v45 = vadd.f32 %v1254_v40, %v893_v41  ;;  %v1276_v46 = vadd.f32 %v1275_v32, %v1274_v28 }
 0x112   : > { %v1256_v36 = vpop.f32.mrf.mxu0  ;;  %v1277_v37 = vpop.f32.mrf.mxu1 }
 0x113   : > { %v1257_v42 = vadd.f32 %v1256_v36, %v1255_v31  ;;  %v975_v50 = vadd.f32 %v1276_v46, %v934_v45 }
 0x114   : > { %v1278_v43 = vpop.f32.mrf.mxu1 }
 0x115   : > { %v937_v47 = vadd.f32 %v1257_v42, %v896_v44  ;;  %v1279_v48 = vadd.f32 %v1278_v43, %v1277_v37 }
 0x117   : > { %v978_v53 = vadd.f32 %v1279_v48, %v937_v47 }
 0x12c   : > { %v1015_v49 = vpop.f32.mrf.mxu0 }
 0x12d   : > { %v1016_v52 = vadd.f32 %v1015_v49, %v975_v50 }
 0x12e   : > { %v1307_v51 = vpop.f32.mrf.mxu0 }
 0x12f   : > { %v1022_v57 = vmax.f32 %v1016_v52, 0.0 }
 0x130   : > { %v1018_v54 = vpop.f32.mrf.mxu0 }
 0x131   : > { %v1019_v55 = vadd.f32 %v1018_v54, %v978_v53 }
 0x132   : > { %v1308_v56 = vpop.f32.mrf.mxu0 }
 0x133   : > { %v1023_v58 = vmax.f32 %v1019_v55, 0.0 }
 0x135   : > { %v1190_v59 = vpack.c.bf16 %v1023_v58, %v1022_v57 }
 0x137   : > { %1191 = vst [vmem:[%s175_s20] sm:$0xff] %v1190_v59  }
 0x138 PF: > { %s13_s12 = sadd.s32 1, %s1411_s12  }
 0x139   : > { %p10_p4 = scmp.ge.s32.totalorder %s13_s12, 4  }
 0x13b   :  { %12 = sbr.rel (!%p10_p4) target bundleno = 1 (0x1), region = 62 }

// kernel: feature_net_forward.19
= control target key start
LH: loop header
LB: loop body
LE: loop exit
PB: predicated region body
PF: predicated region fallthrough
CT: control target
= control target key end

     0   :  { %v182_v0 = vmov 0.0   ;;  %vm183_vm0 = vmmov 0   ;;  %s237_s1 = inlined_call_operand.vmem [shape: bf16[128,128], index: 1, kind: input, shape index: {}]   ;;  %s238_s0 = inlined_call_operand.vmem [shape: bf16[8,128], index: 0, kind: input, shape index: {}]   ;;  %s239_s2 = inlined_call_operand.vmem [shape: f32[1,128], index: 2, kind: input, shape index: {}]   ;;  %s240_s3 = inlined_call_operand.vmem [shape: bf16[8,128], index: 3, kind: output, shape index: {}]  }
   0x1   :  { %152 = vmatprep.subr.bf16.mxu0 %v182_v0  ;;  %v174_v1 = vld [vmem:[%s237_s1 + $0x38] sm:$0xff]   ;;  %168 = vmatprep.mubr.msk.bf16.mxu0 %vm183_vm0, %v182_v0  ;;  %v175_v2 = vld [vmem:[%s237_s1 + $0x30] sm:$0xff]   ;;  %v176_v3 = vld [vmem:[%s237_s1 + $0x28] sm:$0xff]  }
   0x2   :  { %153 = vmatpush3.bf16.msra.mxu0 %v174_v1  ;;  %v177_v4 = vld [vmem:[%s237_s1 + $0x20] sm:$0xff]   ;;  %v178_v5 = vld [vmem:[%s237_s1 + $0x18] sm:$0xff]   ;;  %v179_v6 = vld [vmem:[%s237_s1 + $0x10] sm:$0xff]  }
   0x3   :  { %154 = vmatprep.subr.bf16.mxu0 %v182_v0  ;;  %v180_v7 = vld [vmem:[%s237_s1 + $0x8] sm:$0xff]   ;;  %v181_v8 = vld [vmem:[%s237_s1] sm:$0xff]  }
   0x4   :  { %v15_v9 = vld [vmem:[%s238_s0] sm:$0xf] }
   0x5   :  { %v134_v10 = vld [vmem:[%s239_s2] ss:$0 sm:$0xff] }
   0x6   :  { %155 = vmatpush3.bf16.msra.mxu0 %v175_v2 }
   0x7   :  { %156 = vmatprep.subr.bf16.mxu0 %v182_v0 }
   0xa   :  { %157 = vmatpush3.bf16.msra.mxu0 %v176_v3 }
   0xb   :  { %158 = vmatprep.subr.bf16.mxu0 %v182_v0 }
   0xe   :  { %159 = vmatpush3.bf16.msra.mxu0 %v177_v4 }
   0xf   :  { %160 = vmatprep.subr.bf16.mxu0 %v182_v0 }
  0x12   :  { %161 = vmatpush3.bf16.msra.mxu0 %v178_v5 }
  0x13   :  { %162 = vmatprep.subr.bf16.mxu0 %v182_v0 }
  0x16   :  { %163 = vmatpush3.bf16.msra.mxu0 %v179_v6 }
  0x17   :  { %164 = vmatprep.subr.bf16.mxu0 %v182_v0 }
  0x1a   :  { %165 = vmatpush3.bf16.msra.mxu0 %v180_v7 }
  0x1b   :  { %166 = vmatprep.subr.bf16.mxu0 %v182_v0 }
  0x1e   :  { %167 = vmatpush3.bf16.msra.mxu0 %v181_v8 }
  0x21   :  { %169 = vmatmul.mubr.bf16.vlgmr.msra.gmra.mxu0 %v15_v9 }
  0xe1   :  { %v121_v11 = vpop.f32.mrf.mxu0 }
  0xe2   :  { %v122_v12 = vadd.f32 %v134_v10, %v121_v11 }
  0xe3   :  { %v170_v13 = vpop.f32.mrf.mxu0 }
  0xe4   :  { %v127_v14 = vmax.f32 %v122_v12, 0.0 }
  0xe5   :  { %v124_v15 = vpop.f32.mrf.mxu0 }
  0xe6   :  { %v128_v16 = vpack.c.bf16 %v127_v14, %v127_v14 }
  0xe7   :  { %v171_v17 = vpop.f32.mrf.mxu0 }
  0xe8   :  { %129 = vst [vmem:[%s240_s3] sm:$0xf] %v128_v16 }

// kernel: feature_net_forward.16
= control target key start
LH: loop header
LB: loop body
LE: loop exit
PB: predicated region body
PF: predicated region fallthrough
CT: control target
= control target key end

     0   :  { %s1513_s15 = smov 0   ;;  %s1769_s0 = inlined_call_operand.vmem [shape: bf16[32,1152], index: 0, kind: input, shape index: {}]   ;;  %s1770_s1 = inlined_call_operand.vmem [shape: bf16[1152,128], index: 1, kind: input, shape index: {}]   ;;  %s1771_s2 = inlined_call_operand.vmem [shape: f32[1,128], index: 2, kind: input, shape index: {}]   ;;  %s1772_s3 = inlined_call_operand.vmem [shape: bf16[32,128], index: 3, kind: input, shape index: {}]   ;;  %s1773_s4 = inlined_call_operand.vmem [shape: bf16[32,128], index: 4, kind: output, shape index: {}]  }
   0x1 LB: > { %s1157_s16 = sadd.s32 4294967295, %s1484_s15   ;;  %p1161_p0 = scmp.ge.s32.totalorder %s1484_s15, 1  ;;  %s1484_s15 = sphi %s1513_s15, %s14_s15  }
   0x2   : > { %p175_p1 = scmp.lt.s32.totalorder %s1484_s15, 3 }
   0x4   : > { %p176_p2 = pnand %p1161_p0, %p175_p1 }
   0x5   : > { %s1162_s21 = sshll.u32 (!%p176_p2), %s1157_s16, 1 }
   0x6   : > { %179 = sbr.rel (%p176_p2) target bundleno = 314 (0x13a), region = 36  ;;  %p208_p3 = scmp.lt.s32.totalorder (!%p176_p2), %s1162_s21, 3 }
   0xb   : > { %v1393_v0 = vld [vmem:[%s1770_s1 + $0x78] sm:$0xff]   ;;  %v1397_v4 = vld [vmem:[%s1770_s1 + $0x70] sm:$0xff]   ;;  %v1401_v8 = vld [vmem:[%s1770_s1 + $0x68] sm:$0xff]   ;;  %s1775_s21 = smov (!%p208_p3, %s1162_s21), 3  ;;  %vm1487_vm0 = vmmov 0  }
   0xc   : > { %v1394_v1 = vld [vmem:[%s1770_s1 + $0x38] sm:$0xff]   ;;  %1265 = vmatprep.subr.bf16.mxu0 %v1393_v0  ;;  %v1398_v5 = vld [vmem:[%s1770_s1 + $0x30] sm:$0xff]   ;;  %v1402_v9 = vld [vmem:[%s1770_s1 + $0x28] sm:$0xff]   ;;  %s1382_s19 = smul.u32 36, %s1775_s21 }
   0xd   : > { %v1395_v2 = vld [vmem:[%s1770_s1 + $0xf8] sm:$0xff]   ;;  %1266 = vmatpush3.bf16.msra.mxu0 %v1394_v1  ;;  %v1399_v6 = vld [vmem:[%s1770_s1 + $0xf0] sm:$0xff]   ;;  %v1403_v10 = vld [vmem:[%s1770_s1 + $0xe8] sm:$0xff]  }
   0xe   : > { %v1396_v3 = vld [vmem:[%s1770_s1 + $0xb8] sm:$0xff]   ;;  %1287 = vmatprep.subr.bf16.mxu1 %v1395_v2  ;;  %1267 = vmatprep.subr.bf16.mxu0 %v1397_v4  ;;  %v1400_v7 = vld [vmem:[%s1770_s1 + $0xb0] sm:$0xff]   ;;  %v1404_v11 = vld [vmem:[%s1770_s1 + $0xa8] sm:$0xff]   ;;  %s1616_s30 = scalar_lea.vmem %s1769_s0, %s1382_s19 }
   0xf   : > { %1288 = vmatpush3.bf16.msra.mxu1 %v1396_v3  ;;  %v1405_v12 = vld [vmem:[%s1770_s1 + $0x60] sm:$0xff]   ;;  %v1409_v16 = vld [vmem:[%s1770_s1 + $0x58] sm:$0xff]   ;;  %v1413_v20 = vld [vmem:[%s1770_s1 + $0x50] sm:$0xff]  }
  0x10   : > { %1289 = vmatprep.subr.bf16.mxu1 %v1399_v6  ;;  %v1406_v13 = vld [vmem:[%s1770_s1 + $0x20] sm:$0xff]   ;;  %v1410_v17 = vld [vmem:[%s1770_s1 + $0x18] sm:$0xff]   ;;  %v1414_v21 = vld [vmem:[%s1770_s1 + $0x10] sm:$0xff]   ;;  %v1486_v6 = vmov 0.0  }
  0x11   : > { %1268 = vmatpush3.bf16.msra.mxu0 %v1398_v5  ;;  %v1407_v14 = vld [vmem:[%s1770_s1 + $0xe0] sm:$0xff]   ;;  %v1411_v18 = vld [vmem:[%s1770_s1 + $0xd8] sm:$0xff]   ;;  %v1415_v22 = vld [vmem:[%s1770_s1 + $0xd0] sm:$0xff]  }
  0x12   : > { %1269 = vmatprep.subr.bf16.mxu0 %v1401_v8  ;;  %v1408_v15 = vld [vmem:[%s1770_s1 + $0xa0] sm:$0xff]   ;;  %v1412_v19 = vld [vmem:[%s1770_s1 + $0x98] sm:$0xff]   ;;  %v1416_v23 = vld [vmem:[%s1770_s1 + $0x90] sm:$0xff]  }
  0x13   : > { %1290 = vmatpush3.bf16.msra.mxu1 %v1400_v7  ;;  %v1417_v24 = vld [vmem:[%s1770_s1 + $0x48] sm:$0xff]   ;;  %v1421_v28 = vld [vmem:[%s1770_s1 + $0x40] sm:$0xff]   ;;  %v1428_v34 = vld [vmem:[%s1770_s1 + $0x178] sm:$0xff]  }
  0x14   : > { %1291 = vmatprep.subr.bf16.mxu1 %v1403_v10  ;;  %v1418_v25 = vld [vmem:[%s1770_s1 + $0x8] sm:$0xff]   ;;  %v1422_v29 = vld [vmem:[%s1770_s1] sm:$0xff]   ;;  %v1432_v37 = vld [vmem:[%s1770_s1 + $0x138] sm:$0xff]  }
  0x15   : > { %1270 = vmatpush3.bf16.msra.mxu0 %v1402_v9  ;;  %v1419_v26 = vld [vmem:[%s1770_s1 + $0xc8] sm:$0xff]   ;;  %v1423_v30 = vld [vmem:[%s1770_s1 + $0xc0] sm:$0xff]   ;;  %v1433_v38 = vld [vmem:[%s1770_s1 + $0x1f8] sm:$0xff]  }
  0x16   : > { %1271 = vmatprep.subr.bf16.mxu0 %v1405_v12  ;;  %v1420_v27 = vld [vmem:[%s1770_s1 + $0x88] sm:$0xff]   ;;  %v1424_v31 = vld [vmem:[%s1616_s30] ss:$36 sps:$4 sm:$0xff]   ;;  %v1434_v39 = vld [vmem:[%s1770_s1 + $0x1b8] sm:$0xff]  }
  0x17   : > { %1292 = vmatpush3.bf16.msra.mxu1 %v1404_v11  ;;  %v1426_v32 = vld [vmem:[%s1616_s30 + $0x4] ss:$36 sps:$4 sm:$0xff]   ;;  %v1431_v36 = vld [vmem:[%s1616_s30 + $0xc] ss:$36 sps:$4 sm:$0xff]   ;;  %v1447_v52 = vld [vmem:[%s1770_s1 + $0x158] sm:$0xff]  }
  0x18   : > { %1293 = vmatprep.subr.bf16.mxu1 %v1407_v14  ;;  %v1427_v33 = vld [vmem:[%s1770_s1 + $0x80] sm:$0xff]   ;;  %898 = vmatprep.mubr.bf16.mxu0 %v1426_v32  ;;  %v1429_v35 = vld [vmem:[%s1616_s30 + $0x8] ss:$36 sps:$4 sm:$0xff]   ;;  %v1435_v40 = vld [vmem:[%s1770_s1 + $0x170] sm:$0xff]  }
  0x19   : > { %1272 = vmatpush3.bf16.msra.mxu0 %v1406_v13  ;;  %939 = vmatprep.mubr.bf16.mxu1 %v1431_v36  ;;  %v1436_v41 = vld [vmem:[%s1770_s1 + $0x130] sm:$0xff]   ;;  %v1439_v44 = vld [vmem:[%s1770_s1 + $0x168] sm:$0xff]   ;;  %v1443_v48 = vld [vmem:[%s1770_s1 + $0x160] sm:$0xff]  }
  0x1a   : > { %1273 = vmatprep.subr.bf16.mxu0 %v1409_v16  ;;  %v1437_v42 = vld [vmem:[%s1770_s1 + $0x1f0] sm:$0xff]   ;;  %v1440_v45 = vld [vmem:[%s1770_s1 + $0x128] sm:$0xff]   ;;  %v1444_v49 = vld [vmem:[%s1770_s1 + $0x120] sm:$0xff]  }
  0x1b   : > { %1294 = vmatpush3.bf16.msra.mxu1 %v1408_v15  ;;  %v1438_v43 = vld [vmem:[%s1770_s1 + $0x1b0] sm:$0xff]   ;;  %v1441_v46 = vld [vmem:[%s1770_s1 + $0x1e8] sm:$0xff]   ;;  %v1445_v50 = vld [vmem:[%s1770_s1 + $0x1e0] sm:$0xff]  }
  0x1c   : > { %1295 = vmatprep.subr.bf16.mxu1 %v1411_v18  ;;  %v1442_v47 = vld [vmem:[%s1770_s1 + $0x1a8] sm:$0xff]   ;;  %v1446_v51 = vld [vmem:[%s1770_s1 + $0x1a0] sm:$0xff]   ;;  %v1448_v53 = vld [vmem:[%s1770_s1 + $0x118] sm:$0xff]  }
  0x1d   : > { %1274 = vmatpush3.bf16.msra.mxu0 %v1410_v17  ;;  %v1449_v54 = vld [vmem:[%s1770_s1 + $0x1d8] sm:$0xff]   ;;  %v1451_v56 = vld [vmem:[%s1770_s1 + $0x150] sm:$0xff]   ;;  %v1455_v60 = vld [vmem:[%s1770_s1 + $0x148] sm:$0xff]  }
  0x1e   : > { %1275 = vmatprep.subr.bf16.mxu0 %v1413_v20  ;;  %v1450_v55 = vld [vmem:[%s1770_s1 + $0x198] sm:$0xff]   ;;  %v1452_v57 = vld [vmem:[%s1770_s1 + $0x110] sm:$0xff]   ;;  %v1456_v61 = vld [vmem:[%s1770_s1 + $0x108] sm:$0xff]  }
  0x1f   : > { %1296 = vmatpush3.bf16.msra.mxu1 %v1412_v19  ;;  %v1453_v58 = vld [vmem:[%s1770_s1 + $0x1d0] sm:$0xff]   ;;  %v1457_v62 = vld [vmem:[%s1770_s1 + $0x1c8] sm:$0xff]   ;;  %v1459_v0 = vld [vmem:[%s1770_s1 + $0x140] sm:$0xff]  }
  0x20   : > { %1297 = vmatprep.subr.bf16.mxu1 %v1415_v22  ;;  %v1454_v59 = vld [vmem:[%s1770_s1 + $0x190] sm:$0xff]   ;;  %v1458_v63 = vld [vmem:[%s1770_s1 + $0x188] sm:$0xff]   ;;  %v1460_v1 = vld [vmem:[%s1770_s1 + $0x100] sm:$0xff]  }
  0x21   : > { %1276 = vmatpush3.bf16.msra.mxu0 %v1414_v21  ;;  %v1461_v2 = vld [vmem:[%s1770_s1 + $0x1c0] sm:$0xff]   ;;  %v1462_v3 = vld [vmem:[%s1616_s30 + $0x10] ss:$36 sps:$4 sm:$0xff]   ;;  %v1466_v7 = vld [vmem:[%s1616_s30 + $0x18] ss:$36 sps:$4 sm:$0xff]  }
  0x22   : > { %1277 = vmatprep.subr.bf16.mxu0 %v1417_v24  ;;  %v1464_v4 = vld [vmem:[%s1616_s30 + $0x14] ss:$36 sps:$4 sm:$0xff]   ;;  %v1465_v5 = vld [vmem:[%s1770_s1 + $0x180] sm:$0xff]   ;;  %v1471_v11 = vld [vmem:[%s1770_s1 + $0x228] sm:$0xff]  }
  0x23   : > { %1298 = vmatpush3.bf16.msra.mxu1 %v1416_v23  ;;  %v1468_v8 = vld [vmem:[%s1616_s30 + $0x1c] ss:$36 sps:$4 sm:$0xff]   ;;  %v1470_v10 = vld [vmem:[%s1770_s1 + $0x230] sm:$0xff]   ;;  %v1475_v15 = vld [vmem:[%s1770_s1 + $0x208] sm:$0xff]  }
  0x24   : > { %1299 = vmatprep.subr.bf16.mxu1 %v1419_v26  ;;  %v1469_v9 = vld [vmem:[%s1770_s1 + $0x238] sm:$0xff]   ;;  %v1472_v12 = vld [vmem:[%s1770_s1 + $0x220] sm:$0xff]   ;;  %v1474_v14 = vld [vmem:[%s1770_s1 + $0x210] sm:$0xff]  }
  0x25   : > { %1278 = vmatpush3.bf16.msra.mxu0 %v1418_v25  ;;  %v1473_v13 = vld [vmem:[%s1770_s1 + $0x218] sm:$0xff]   ;;  %v1476_v16 = vld [vmem:[%s1770_s1 + $0x200] sm:$0xff]  }
  0x26   : > { %1279 = vmatprep.subr.bf16.mxu0 %v1421_v28  ;;  %v1477_v17 = vld [vmem:[%s1616_s30 + $0x20] ss:$36 sps:$4 sm:$0xff]   ;;  %s1165_s30 = sshll.u32 %s1775_s21, 2 }
  0x27   : > { %1300 = vmatpush3.bf16.msra.mxu1 %v1420_v27  ;;  %s218_s29 = scalar_lea.vmem %s1772_s3, %s1165_s30  ;;  %s224_s5 = scalar_lea.vmem %s1773_s4, %s1165_s30 }
  0x28   : > { %1301 = vmatprep.subr.bf16.mxu1 %v1423_v30  ;;  %v1168_v30 = vld [vmem:[%s1771_s2] ss:$0 sm:$0xff] }
  0x29   : > { %1280 = vmatpush3.bf16.msra.mxu0 %v1422_v29 }
  0x2a   : > { %1309 = vmatprep.subr.bf16.mxu0 %v1428_v34 }
  0x2b   : > { %1302 = vmatpush3.bf16.msra.mxu1 %v1427_v33 }
  0x2c   : > { %899 = vmatmul.mubr.bf16.vlgmr.msra.gmra.mxu0 %v1424_v31  ;;  %1331 = vmatprep.subr.bf16.mxu1 %v1433_v38 }
  0x2d   : > { %1310 = vmatpush3.bf16.msra.mxu0 %v1432_v37  ;;  %980 = vmatprep.mubr.bf16.mxu0 %v1464_v4 }
  0x2e   : > { %940 = vmatmul.mubr.bf16.vlgmr.msra.gmra.mxu1 %v1429_v35  ;;  %1311 = vmatprep.subr.bf16.mxu0 %v1435_v40 }
  0x2f   : > { %1332 = vmatpush3.bf16.msra.mxu1 %v1434_v39  ;;  %1021 = vmatprep.mubr.bf16.mxu1 %v1468_v8 }
  0x30   : > { %1333 = vmatprep.subr.bf16.mxu1 %v1437_v42 }
  0x31   : > { %1312 = vmatpush3.bf16.msra.mxu0 %v1436_v41 }
  0x32   : > { %1313 = vmatprep.subr.bf16.mxu0 %v1439_v44 }
  0x33   : > { %1334 = vmatpush3.bf16.msra.mxu1 %v1438_v43 }
  0x34   : > { %1335 = vmatprep.subr.bf16.mxu1 %v1441_v46 }
  0x35   : > { %1314 = vmatpush3.bf16.msra.mxu0 %v1440_v45 }
  0x36   : > { %1315 = vmatprep.subr.bf16.mxu0 %v1443_v48 }
  0x37   : > { %1336 = vmatpush3.bf16.msra.mxu1 %v1442_v47 }
  0x38   : > { %1337 = vmatprep.subr.bf16.mxu1 %v1445_v50 }
  0x39   : > { %1316 = vmatpush3.bf16.msra.mxu0 %v1444_v49 }
  0x3a   : > { %1317 = vmatprep.subr.bf16.mxu0 %v1447_v52  ;;  %v1257_v52 = vld [vmem:[%s218_s29] sm:$0xff]  }
  0x3b   : > { %1338 = vmatpush3.bf16.msra.mxu1 %v1446_v51 }
  0x3c   : > { %1339 = vmatprep.subr.bf16.mxu1 %v1449_v54 }
  0x3d   : > { %1318 = vmatpush3.bf16.msra.mxu0 %v1448_v53 }
  0x3e   : > { %1319 = vmatprep.subr.bf16.mxu0 %v1451_v56 }
  0x3f   : > { %1340 = vmatpush3.bf16.msra.mxu1 %v1450_v55 }
  0x40   : > { %1341 = vmatprep.subr.bf16.mxu1 %v1453_v58 }
  0x41   : > { %1320 = vmatpush3.bf16.msra.mxu0 %v1452_v57  ;;  %v1258_v57 = vunpack.c.l.bf16 %v1257_v52 }
  0x42   : > { %1321 = vmatprep.subr.bf16.mxu0 %v1455_v60 }
  0x43   : > { %1342 = vmatpush3.bf16.msra.mxu1 %v1454_v59  ;;  %v1259_v59 = vunpack.c.h.bf16 %v1257_v52 }
  0x44   : > { %1343 = vmatprep.subr.bf16.mxu1 %v1457_v62 }
  0x45   : > { %1322 = vmatpush3.bf16.msra.mxu0 %v1456_v61 }
  0x46   : > { %1323 = vmatprep.subr.bf16.mxu0 %v1459_v0 }
  0x47   : > { %1344 = vmatpush3.bf16.msra.mxu1 %v1458_v63 }
  0x48   : > { %1345 = vmatprep.subr.bf16.mxu1 %v1461_v2 }
  0x49   : > { %1324 = vmatpush3.bf16.msra.mxu0 %v1460_v1 }
  0x4a   : > { %1362 = vmatprep.subr.bf16.mxu0 %v1486_v6 }
  0x4b   : > { %1346 = vmatpush3.bf16.msra.mxu1 %v1465_v5 }
  0x4c   : > { %981 = vmatmul.mubr.bf16.vlgmr.msra.gmra.mxu0 %v1462_v3 }
  0x4d   : > { %1378 = vmatprep.mubr.msk.bf16.mxu0 %vm1487_vm0, %v1486_v6  ;;  %1363 = vmatpush3.bf16.msra.mxu0 %v1469_v9 }
  0x4e   : > { %1022 = vmatmul.mubr.bf16.vlgmr.msra.gmra.mxu1 %v1466_v7  ;;  %1364 = vmatprep.subr.bf16.mxu0 %v1486_v6 }
  0x51   : > { %1365 = vmatpush3.bf16.msra.mxu0 %v1470_v10 }
  0x52   : > { %1366 = vmatprep.subr.bf16.mxu0 %v1486_v6 }
  0x55   : > { %1367 = vmatpush3.bf16.msra.mxu0 %v1471_v11 }
  0x56   : > { %1368 = vmatprep.subr.bf16.mxu0 %v1486_v6 }
  0x59   : > { %1369 = vmatpush3.bf16.msra.mxu0 %v1472_v12 }
  0x5a   : > { %1370 = vmatprep.subr.bf16.mxu0 %v1486_v6 }
  0x5d   : > { %1371 = vmatpush3.bf16.msra.mxu0 %v1473_v13 }
  0x5e   : > { %1372 = vmatprep.subr.bf16.mxu0 %v1486_v6 }
  0x61   : > { %1373 = vmatpush3.bf16.msra.mxu0 %v1474_v14 }
  0x62   : > { %1374 = vmatprep.subr.bf16.mxu0 %v1486_v6 }
  0x65   : > { %1375 = vmatpush3.bf16.msra.mxu0 %v1475_v15 }
  0x66   : > { %1376 = vmatprep.subr.bf16.mxu0 %v1486_v6 }
  0x69   : > { %1377 = vmatpush3.bf16.msra.mxu0 %v1476_v16 }
  0x6c   : > { %1379 = vmatmul.mubr.bf16.vlgmr.msra.gmra.mxu0 %v1477_v17 }
  0xec   : > { %v1281_v18 = vpop.f32.mrf.mxu0 }
  0xee   : > { %v1282_v19 = vpop.f32.mrf.mxu0  ;;  %v1303_v20 = vpop.f32.mrf.mxu1 }
  0xef   : > { %v1283_v29 = vadd.f32 %v1282_v19, %v1281_v18 }
  0xf0   : > { %v1284_v21 = vpop.f32.mrf.mxu0  ;;  %v1304_v22 = vpop.f32.mrf.mxu1 }
  0xf1   : > { %v901_v33 = vadd.f32 %v1283_v29, %v1168_v30  ;;  %v1305_v34 = vadd.f32 %v1304_v22, %v1303_v20 }
  0xf2   : > { %v1285_v23 = vpop.f32.mrf.mxu0  ;;  %v1306_v24 = vpop.f32.mrf.mxu1 }
  0xf3   : > { %v1286_v35 = vadd.f32 %v1285_v23, %v1284_v21  ;;  %v942_v39 = vadd.f32 %v1305_v34, %v901_v33 }
  0xf4   : > { %v1307_v26 = vpop.f32.mrf.mxu1 }
  0xf5   : > { %v904_v40 = vadd.f32 %v1286_v35, %v1168_v30  ;;  %v1308_v41 = vadd.f32 %v1307_v26, %v1306_v24 }
  0xf7   : > { %v945_v46 = vadd.f32 %v1308_v41, %v904_v40 }
 0x10c   : > { %v1325_v25 = vpop.f32.mrf.mxu0 }
 0x10e   : > { %v1326_v27 = vpop.f32.mrf.mxu0  ;;  %v1347_v28 = vpop.f32.mrf.mxu1 }
 0x10f   : > { %v1327_v36 = vadd.f32 %v1326_v27, %v1325_v25 }
 0x110   : > { %v1328_v31 = vpop.f32.mrf.mxu0  ;;  %v1348_v32 = vpop.f32.mrf.mxu1 }
 0x111   : > { %v983_v42 = vadd.f32 %v1327_v36, %v942_v39  ;;  %v1349_v43 = vadd.f32 %v1348_v32, %v1347_v28 }
 0x112   : > { %v1329_v37 = vpop.f32.mrf.mxu0  ;;  %v1350_v38 = vpop.f32.mrf.mxu1 }
 0x113   : > { %v1330_v44 = vadd.f32 %v1329_v37, %v1328_v31  ;;  %v1024_v49 = vadd.f32 %v1349_v43, %v983_v42 }
 0x114   : > { %v1351_v45 = vpop.f32.mrf.mxu1 }
 0x115   : > { %v986_v47 = vadd.f32 %v1330_v44, %v945_v46  ;;  %v1352_v48 = vadd.f32 %v1351_v45, %v1350_v38 }
 0x117   : > { %v1027_v54 = vadd.f32 %v1352_v48, %v986_v47 }
 0x12c   : > { %v1064_v50 = vpop.f32.mrf.mxu0 }
 0x12d   : > { %v1065_v51 = vadd.f32 %v1064_v50, %v1024_v49 }
 0x12e   : > { %v1380_v53 = vpop.f32.mrf.mxu0 }
 0x12f   : > { %v1071_v56 = vmax.f32 %v1065_v51, 0.0 }
 0x130   : > { %v1067_v55 = vpop.f32.mrf.mxu0 }
 0x131   : > { %v1068_v58 = vadd.f32 %v1067_v55, %v1027_v54  ;;  %v1077_v62 = vadd.f32 %v1258_v57, %v1071_v56 }
 0x132   : > { %v1381_v60 = vpop.f32.mrf.mxu0 }
 0x133   : > { %v1072_v61 = vmax.f32 %v1068_v58, 0.0 }
 0x135   : > { %v1078_v63 = vadd.f32 %v1259_v59, %v1072_v61 }
 0x137   : > { %v1263_v0 = vpack.c.bf16 %v1078_v63, %v1077_v62 }
 0x139   : > { %1264 = vst [vmem:[%s224_s5] sm:$0xff] %v1263_v0  }
 0x13a PF: > { %s14_s15 = sadd.s32 1, %s1484_s15  }
 0x13b   : > { %p11_p4 = scmp.ge.s32.totalorder %s14_s15, 4  }
 0x13d   :  { %13 = sbr.rel (!%p11_p4) target bundleno = 1 (0x1), region = 69 }

// kernel: feature_net_forward.22
= control target key start
LH: loop header
LB: loop body
LE: loop exit
PB: predicated region body
PF: predicated region fallthrough
CT: control target
= control target key end

     0   :  { %v176_v27 = vlaneseq  ;;  %v1188_v35 = vmov 1966171168   ;;  %vm1190_vm0 = vmmov 0   ;;  %s1458_s0 = inlined_call_operand.vmem [shape: bf16[2,1,1,9,128], index: 0, kind: input, shape index: {}, may-alias: {0,4}]   ;;  %s1459_s1 = inlined_call_operand.vmem [shape: bf16[2,1152], index: 1, kind: input, shape index: {}]   ;;  %s1460_s2 = inlined_call_operand.vmem [shape: bf16[1152,128], index: 2, kind: input, shape index: {}]   ;;  %s1461_s3 = inlined_call_operand.vmem [shape: f32[1,128], index: 3, kind: input, shape index: {}]   ;;  %s1462_s4 = inlined_call_operand.vmem [shape: bf16[2,1,1,9,128], index: 4, kind: output, shape index: {}, may-alias: {0,4}]  }
   0x1   :  { %v1115_v0 = vld [vmem:[%s1460_s2 + $0x78] sm:$0xff]   ;;  %v1119_v4 = vld [vmem:[%s1460_s2 + $0x70] sm:$0xff]   ;;  %v1123_v8 = vld [vmem:[%s1460_s2 + $0x68] sm:$0xff]   ;;  %v174_v36 = vunpack.c.l.s4 %v1188_v35 }
   0x2   :  { %v1116_v1 = vld [vmem:[%s1460_s2 + $0x38] sm:$0xff]   ;;  %995 = vmatprep.subr.bf16.mxu0 %v1115_v0  ;;  %v1120_v5 = vld [vmem:[%s1460_s2 + $0x30] sm:$0xff]   ;;  %v1124_v9 = vld [vmem:[%s1460_s2 + $0x28] sm:$0xff]   ;;  %v177_v32 = vshrl.u32 %v176_v27, 7 }
   0x3   :  { %v1117_v2 = vld [vmem:[%s1460_s2 + $0xf8] sm:$0xff]   ;;  %996 = vmatpush3.bf16.msra.mxu0 %v1116_v1  ;;  %v1121_v6 = vld [vmem:[%s1460_s2 + $0xf0] sm:$0xff]   ;;  %v1125_v10 = vld [vmem:[%s1460_s2 + $0xe8] sm:$0xff]   ;;  %v175_v39 = vunpack.c.0.s8 %v174_v36 }
   0x4   :  { %v1118_v3 = vld [vmem:[%s1460_s2 + $0xb8] sm:$0xff]   ;;  %1017 = vmatprep.subr.bf16.mxu1 %v1117_v2  ;;  %997 = vmatprep.subr.bf16.mxu0 %v1119_v4  ;;  %v1122_v7 = vld [vmem:[%s1460_s2 + $0xb0] sm:$0xff]   ;;  %v1126_v11 = vld [vmem:[%s1460_s2 + $0xa8] sm:$0xff]  }
   0x5   :  { %1018 = vmatpush3.bf16.msra.mxu1 %v1118_v3  ;;  %v1127_v12 = vld [vmem:[%s1460_s2 + $0x60] sm:$0xff]   ;;  %v1131_v16 = vld [vmem:[%s1460_s2 + $0x58] sm:$0xff]   ;;  %v1135_v20 = vld [vmem:[%s1460_s2 + $0x50] sm:$0xff]   ;;  %v1321_v41 = vsub.s32 %v175_v39, %v177_v32 }
   0x6   :  { %1019 = vmatprep.subr.bf16.mxu1 %v1121_v6  ;;  %v1128_v13 = vld [vmem:[%s1460_s2 + $0x20] sm:$0xff]   ;;  %v1132_v17 = vld [vmem:[%s1460_s2 + $0x18] sm:$0xff]   ;;  %v1136_v21 = vld [vmem:[%s1460_s2 + $0x10] sm:$0xff]  }
   0x7   :  { %998 = vmatpush3.bf16.msra.mxu0 %v1120_v5  ;;  %v1129_v14 = vld [vmem:[%s1460_s2 + $0xe0] sm:$0xff]   ;;  %v1133_v18 = vld [vmem:[%s1460_s2 + $0xd8] sm:$0xff]   ;;  %v1137_v22 = vld [vmem:[%s1460_s2 + $0xd0] sm:$0xff]  }
   0x8   :  { %999 = vmatprep.subr.bf16.mxu0 %v1123_v8  ;;  %v1130_v15 = vld [vmem:[%s1460_s2 + $0xa0] sm:$0xff]   ;;  %v1134_v19 = vld [vmem:[%s1460_s2 + $0x98] sm:$0xff]   ;;  %v1138_v23 = vld [vmem:[%s1460_s2 + $0x90] sm:$0xff]  }
   0x9   :  { %1020 = vmatpush3.bf16.msra.mxu1 %v1122_v7  ;;  %v1139_v24 = vld [vmem:[%s1460_s2 + $0x48] sm:$0xff]   ;;  %v1143_v29 = vld [vmem:[%s1460_s2 + $0x40] sm:$0xff]   ;;  %v1148_v37 = vld [vmem:[%s1460_s2 + $0x178] sm:$0xff]  }
   0xa   :  { %1021 = vmatprep.subr.bf16.mxu1 %v1125_v10  ;;  %v1140_v25 = vld [vmem:[%s1460_s2 + $0x8] sm:$0xff]   ;;  %v1144_v30 = vld [vmem:[%s1460_s2] sm:$0xff]   ;;  %v1150_v40 = vld [vmem:[%s1460_s2 + $0x1f8] sm:$0xff]  }
   0xb   :  { %1000 = vmatpush3.bf16.msra.mxu0 %v1124_v9  ;;  %v1141_v26 = vld [vmem:[%s1460_s2 + $0xc8] sm:$0xff]   ;;  %v1145_v31 = vld [vmem:[%s1460_s2 + $0xc0] sm:$0xff]   ;;  %v1149_v48 = vld [vmem:[%s1460_s2 + $0x138] sm:$0xff]  }
   0xc   :  { %1001 = vmatprep.subr.bf16.mxu0 %v1127_v12  ;;  %v1142_v28 = vld [vmem:[%s1460_s2 + $0x88] sm:$0xff]   ;;  %v17_v33 = vld [vmem:[%s1459_s1] sm:$0xff]  ;;  %v1152_v51 = vld [vmem:[%s1460_s2 + $0x170] sm:$0xff]  }
   0xd   :  { %1022 = vmatpush3.bf16.msra.mxu1 %v1126_v11  ;;  %v1147_v34 = vld [vmem:[%s1460_s2 + $0x80] sm:$0xff]   ;;  %v172_v38 = vcombine.high %v17_v33, %v17_v33  ;;  %v179_v42 = vrot.slane %v17_v33, %v1321_v41  ;;  %v1151_v53 = vld [vmem:[%s1460_s2 + $0x1b8] sm:$0xff]   ;;  %v1154_v54 = vld [vmem:[%s1460_s2 + $0x1f0] sm:$0xff]  }
   0xe   :  { %1023 = vmatprep.subr.bf16.mxu1 %v1129_v14  ;;  %v1153_v56 = vld [vmem:[%s1460_s2 + $0x130] sm:$0xff]   ;;  %v1156_v57 = vld [vmem:[%s1460_s2 + $0x168] sm:$0xff]   ;;  %v1160_v61 = vld [vmem:[%s1460_s2 + $0x160] sm:$0xff]  }
   0xf   :  { %1002 = vmatpush3.bf16.msra.mxu0 %v1128_v13  ;;  %v1325_v43 = vrot.slane %v172_v38, %v1321_v41  ;;  %v187_v44 = vcombine.high %v179_v42, %v179_v42  ;;  %v195_v45 = vrot.slane %v179_v42, %v1321_v41  ;;  %v1155_v58 = vld [vmem:[%s1460_s2 + $0x1b0] sm:$0xff]   ;;  %v1158_v59 = vld [vmem:[%s1460_s2 + $0x1e8] sm:$0xff]   ;;  %v1162_v63 = vld [vmem:[%s1460_s2 + $0x1e0] sm:$0xff]  }
  0x10   :  { %1003 = vmatprep.subr.bf16.mxu0 %v1131_v16  ;;  %v1157_v60 = vld [vmem:[%s1460_s2 + $0x128] sm:$0xff]   ;;  %v1161_v0 = vld [vmem:[%s1460_s2 + $0x120] sm:$0xff]   ;;  %v1164_v1 = vld [vmem:[%s1460_s2 + $0x158] sm:$0xff]  }
  0x11   :  { %1024 = vmatpush3.bf16.msra.mxu1 %v1130_v15  ;;  %v188_v46 = vcombine.high %v1325_v43, %v1325_v43  ;;  %v209_v47 = vrot.slane %v187_v44, %v1321_v41  ;;  %v217_v50 = vcombine.high %v195_v45, %v195_v45  ;;  %v1159_v62 = vld [vmem:[%s1460_s2 + $0x1a8] sm:$0xff]   ;;  %v1163_v2 = vld [vmem:[%s1460_s2 + $0x1a0] sm:$0xff]   ;;  %v1166_v3 = vld [vmem:[%s1460_s2 + $0x1d8] sm:$0xff]  }
  0x12   :  { %1025 = vmatprep.subr.bf16.mxu1 %v1133_v18  ;;  %v1165_v4 = vld [vmem:[%s1460_s2 + $0x118] sm:$0xff]   ;;  %v1168_v5 = vld [vmem:[%s1460_s2 + $0x150] sm:$0xff]   ;;  %v1172_v9 = vld [vmem:[%s1460_s2 + $0x148] sm:$0xff]  }
  0x13   :  { %1004 = vmatpush3.bf16.msra.mxu0 %v1132_v17  ;;  %v216_v49 = vrot.slane %v188_v46, %v1321_v41  ;;  %708 = vmatprep.mubr.bf16.mxu0 %v209_v47  ;;  %v219_v52 = vcombine.high %v209_v47, %v209_v47  ;;  %v1167_v6 = vld [vmem:[%s1460_s2 + $0x198] sm:$0xff]   ;;  %v1170_v7 = vld [vmem:[%s1460_s2 + $0x1d0] sm:$0xff]   ;;  %v1174_v11 = vld [vmem:[%s1460_s2 + $0x1c8] sm:$0xff]   ;;  %v202_v17 = vrot.slane %v1325_v43, %v1321_v41 }
  0x14   :  { %1005 = vmatprep.subr.bf16.mxu0 %v1135_v20  ;;  %v1169_v8 = vld [vmem:[%s1460_s2 + $0x110] sm:$0xff]   ;;  %v1173_v12 = vld [vmem:[%s1460_s2 + $0x108] sm:$0xff]   ;;  %v1176_v13 = vld [vmem:[%s1460_s2 + $0x140] sm:$0xff]   ;;  %v1189_v20 = vmov 0.0  }
  0x15   :  { %1026 = vmatpush3.bf16.msra.mxu1 %v1134_v19  ;;  %v220_v55 = vcombine.high %v216_v49, %v216_v49  ;;  %748 = vmatprep.mubr.bf16.mxu1 %v219_v52  ;;  %v1171_v10 = vld [vmem:[%s1460_s2 + $0x190] sm:$0xff]   ;;  %v1175_v14 = vld [vmem:[%s1460_s2 + $0x188] sm:$0xff]   ;;  %v1178_v15 = vld [vmem:[%s1460_s2 + $0x1c0] sm:$0xff]  }
  0x16   :  { %1027 = vmatprep.subr.bf16.mxu1 %v1137_v22  ;;  %v1177_v16 = vld [vmem:[%s1460_s2 + $0x100] sm:$0xff]   ;;  %v1180_v19 = vld [vmem:[%s1460_s2 + $0x238] sm:$0xff]   ;;  %v1181_v22 = vld [vmem:[%s1460_s2 + $0x230] sm:$0xff]  }
  0x17   :  { %1006 = vmatpush3.bf16.msra.mxu0 %v1136_v21  ;;  %v1179_v18 = vld [vmem:[%s1460_s2 + $0x180] sm:$0xff]   ;;  %v218_v21 = vcombine.high %v202_v17, %v202_v17  ;;  %v1186_v27 = vld [vmem:[%s1460_s2 + $0x208] sm:$0xff]  }
  0x18   :  { %1007 = vmatprep.subr.bf16.mxu0 %v1139_v24  ;;  %v1183_v24 = vld [vmem:[%s1460_s2 + $0x220] sm:$0xff]  }
  0x19   :  { %1028 = vmatpush3.bf16.msra.mxu1 %v1138_v23  ;;  %v1182_v23 = vld [vmem:[%s1460_s2 + $0x228] sm:$0xff]  }
  0x1a   :  { %1029 = vmatprep.subr.bf16.mxu1 %v1141_v26  ;;  %v1185_v26 = vld [vmem:[%s1460_s2 + $0x210] sm:$0xff]  }
  0x1b   :  { %1008 = vmatpush3.bf16.msra.mxu0 %v1140_v25  ;;  %v1184_v25 = vld [vmem:[%s1460_s2 + $0x218] sm:$0xff]  }
  0x1c   :  { %1009 = vmatprep.subr.bf16.mxu0 %v1143_v29  ;;  %v921_v29 = vld.sshfl [vmem:[%s1459_s1 + $0x8] sm:$0x1 pattern:$0x75316420] }
  0x1d   :  { %1030 = vmatpush3.bf16.msra.mxu1 %v1142_v28  ;;  %v1187_v28 = vld [vmem:[%s1460_s2 + $0x200] sm:$0xff]  }
  0x1e   :  { %1031 = vmatprep.subr.bf16.mxu1 %v1145_v31 }
  0x1f   :  { %1010 = vmatpush3.bf16.msra.mxu0 %v1144_v30  ;;  %v234_v30 = vrot.slane %v921_v29, %v1321_v41  ;;  %v920_v41 = vld [vmem:[%s1461_s3] ss:$0 sm:$0xff] }
  0x20   :  { %1039 = vmatprep.subr.bf16.mxu0 %v1148_v37 }
  0x21   :  { %1032 = vmatpush3.bf16.msra.mxu1 %v1147_v34 }
  0x22   :  { %1061 = vmatprep.subr.bf16.mxu1 %v1150_v40  ;;  %709 = vmatmul.mubr.bf16.vlgmr.msra.gmra.mxu0 %v195_v45 }
  0x23   :  { %1040 = vmatpush3.bf16.msra.mxu0 %v1149_v48  ;;  %788 = vmatprep.mubr.bf16.mxu0 %v216_v49 }
  0x24   :  { %749 = vmatmul.mubr.bf16.vlgmr.msra.gmra.mxu1 %v217_v50  ;;  %1041 = vmatprep.subr.bf16.mxu0 %v1152_v51 }
  0x25   :  { %1062 = vmatpush3.bf16.msra.mxu1 %v1151_v53  ;;  %828 = vmatprep.mubr.bf16.mxu1 %v220_v55 }
  0x26   :  { %1063 = vmatprep.subr.bf16.mxu1 %v1154_v54 }
  0x27   :  { %1042 = vmatpush3.bf16.msra.mxu0 %v1153_v56 }
  0x28   :  { %1043 = vmatprep.subr.bf16.mxu0 %v1156_v57 }
  0x29   :  { %1064 = vmatpush3.bf16.msra.mxu1 %v1155_v58 }
  0x2a   :  { %1065 = vmatprep.subr.bf16.mxu1 %v1158_v59 }
  0x2b   :  { %1044 = vmatpush3.bf16.msra.mxu0 %v1157_v60 }
  0x2c   :  { %1045 = vmatprep.subr.bf16.mxu0 %v1160_v61 }
  0x2d   :  { %1066 = vmatpush3.bf16.msra.mxu1 %v1159_v62 }
  0x2e   :  { %1067 = vmatprep.subr.bf16.mxu1 %v1162_v63 }
  0x2f   :  { %1046 = vmatpush3.bf16.msra.mxu0 %v1161_v0 }
  0x30   :  { %1047 = vmatprep.subr.bf16.mxu0 %v1164_v1 }
  0x31   :  { %1068 = vmatpush3.bf16.msra.mxu1 %v1163_v2 }
  0x32   :  { %1069 = vmatprep.subr.bf16.mxu1 %v1166_v3 }
  0x33   :  { %1048 = vmatpush3.bf16.msra.mxu0 %v1165_v4 }
  0x34   :  { %1049 = vmatprep.subr.bf16.mxu0 %v1168_v5 }
  0x35   :  { %1070 = vmatpush3.bf16.msra.mxu1 %v1167_v6 }
  0x36   :  { %1071 = vmatprep.subr.bf16.mxu1 %v1170_v7 }
  0x37   :  { %1050 = vmatpush3.bf16.msra.mxu0 %v1169_v8 }
  0x38   :  { %1051 = vmatprep.subr.bf16.mxu0 %v1172_v9 }
  0x39   :  { %1072 = vmatpush3.bf16.msra.mxu1 %v1171_v10 }
  0x3a   :  { %1073 = vmatprep.subr.bf16.mxu1 %v1174_v11 }
  0x3b   :  { %1052 = vmatpush3.bf16.msra.mxu0 %v1173_v12 }
  0x3c   :  { %1053 = vmatprep.subr.bf16.mxu0 %v1176_v13 }
  0x3d   :  { %1074 = vmatpush3.bf16.msra.mxu1 %v1175_v14 }
  0x3e   :  { %1075 = vmatprep.subr.bf16.mxu1 %v1178_v15 }
  0x3f   :  { %1054 = vmatpush3.bf16.msra.mxu0 %v1177_v16 }
  0x40   :  { %1092 = vmatprep.subr.bf16.mxu0 %v1189_v20 }
  0x41   :  { %1076 = vmatpush3.bf16.msra.mxu1 %v1179_v18 }
  0x42   :  { %789 = vmatmul.mubr.bf16.vlgmr.msra.gmra.mxu0 %v202_v17 }
  0x43   :  { %1093 = vmatpush3.bf16.msra.mxu0 %v1180_v19  ;;  %1108 = vmatprep.mubr.msk.bf16.mxu0 %vm1190_vm0, %v1189_v20 }
  0x44   :  { %829 = vmatmul.mubr.bf16.vlgmr.msra.gmra.mxu1 %v218_v21  ;;  %1094 = vmatprep.subr.bf16.mxu0 %v1189_v20 }
  0x47   :  { %1095 = vmatpush3.bf16.msra.mxu0 %v1181_v22 }
  0x48   :  { %1096 = vmatprep.subr.bf16.mxu0 %v1189_v20 }
  0x4b   :  { %1097 = vmatpush3.bf16.msra.mxu0 %v1182_v23 }
  0x4c   :  { %1098 = vmatprep.subr.bf16.mxu0 %v1189_v20 }
  0x4f   :  { %1099 = vmatpush3.bf16.msra.mxu0 %v1183_v24 }
  0x50   :  { %1100 = vmatprep.subr.bf16.mxu0 %v1189_v20 }
  0x53   :  { %1101 = vmatpush3.bf16.msra.mxu0 %v1184_v25 }
  0x54   :  { %1102 = vmatprep.subr.bf16.mxu0 %v1189_v20 }
  0x57   :  { %1103 = vmatpush3.bf16.msra.mxu0 %v1185_v26 }
  0x58   :  { %1104 = vmatprep.subr.bf16.mxu0 %v1189_v20 }
  0x5b   :  { %1105 = vmatpush3.bf16.msra.mxu0 %v1186_v27 }
  0x5c   :  { %1106 = vmatprep.subr.bf16.mxu0 %v1189_v20 }
  0x5f   :  { %1107 = vmatpush3.bf16.msra.mxu0 %v1187_v28 }
  0x62   :  { %1109 = vmatmul.mubr.bf16.vlgmr.msra.gmra.mxu0 %v234_v30 }
  0xe2   :  { %v1011_v31 = vpop.f32.mrf.mxu0 }
  0xe4   :  { %v1012_v32 = vpop.f32.mrf.mxu0  ;;  %v1033_v33 = vpop.f32.mrf.mxu1 }
  0xe5   :  { %v1013_v48 = vadd.f32 %v1012_v32, %v1011_v31 }
  0xe6   :  { %v1014_v34 = vpop.f32.mrf.mxu0  ;;  %v1034_v35 = vpop.f32.mrf.mxu1 }
  0xe7   :  { %v711_v49 = vadd.f32 %v1013_v48, %v920_v41  ;;  %v1035_v50 = vadd.f32 %v1034_v35, %v1033_v33 }
  0xe8   :  { %v1015_v36 = vpop.f32.mrf.mxu0  ;;  %v1036_v37 = vpop.f32.mrf.mxu1 }
  0xe9   :  { %v751_v52 = vadd.f32 %v1035_v50, %v711_v49 }
  0xea   :  { %v1037_v38 = vpop.f32.mrf.mxu1 }
 0x102   :  { %v1055_v39 = vpop.f32.mrf.mxu0 }
 0x104   :  { %v1056_v40 = vpop.f32.mrf.mxu0  ;;  %v1077_v42 = vpop.f32.mrf.mxu1 }
 0x105   :  { %v1057_v51 = vadd.f32 %v1056_v40, %v1055_v39 }
 0x106   :  { %v1058_v43 = vpop.f32.mrf.mxu0  ;;  %v1078_v44 = vpop.f32.mrf.mxu1 }
 0x107   :  { %v791_v53 = vadd.f32 %v1057_v51, %v751_v52  ;;  %v1079_v54 = vadd.f32 %v1078_v44, %v1077_v42 }
 0x108   :  { %v1059_v45 = vpop.f32.mrf.mxu0  ;;  %v1080_v46 = vpop.f32.mrf.mxu1 }
 0x109   :  { %v831_v55 = vadd.f32 %v1079_v54, %v791_v53 }
 0x10a   :  { %v1081_v47 = vpop.f32.mrf.mxu1 }
 0x122   :  { %v870_v56 = vpop.f32.mrf.mxu0 }
 0x123   :  { %v871_v57 = vadd.f32 %v870_v56, %v831_v55 }
 0x124   :  { %v1110_v58 = vpop.f32.mrf.mxu0 }
 0x125   :  { %v876_v59 = vmax.f32 %v871_v57, 0.0 }
 0x126   :  { %v873_v60 = vpop.f32.mrf.mxu0 }
 0x127   :  { %v877_v61 = vpack.c.bf16 %v876_v59, %v876_v59 }
 0x128   :  { %v1111_v62 = vpop.f32.mrf.mxu0 }
 0x129   :  { %878 = vst [vmem:[#allocation2] sm:$0x1] %v877_v61 }
 0x130   :  { %v897_v63 = vld [vmem:[#allocation2] sm:$0x1] }
 0x131   :  { %994 = vst [vmem:[%s1462_s4 + $0x4] sm:$0x1] %v897_v63 }

// kernel: feature_net_forward.20
= control target key start
LH: loop header
LB: loop body
LE: loop exit
PB: predicated region body
PF: predicated region fallthrough
CT: control target
= control target key end

     0   :  { %v1154_v21 = vmov 1966171168   ;;  %v177_v23 = vlaneseq  ;;  %vm1156_vm0 = vmmov 0   ;;  %s1427_s1 = inlined_call_operand.vmem [shape: bf16[1152,128], index: 1, kind: input, shape index: {}]   ;;  %s1428_s0 = inlined_call_operand.vmem [shape: bf16[2,1152], index: 0, kind: input, shape index: {}]   ;;  %s1429_s2 = inlined_call_operand.vmem [shape: f32[1,128], index: 2, kind: input, shape index: {}]   ;;  %s1430_s3 = inlined_call_operand.vmem [shape: bf16[2,128], index: 3, kind: input, shape index: {}]   ;;  %s1431_s4 = inlined_call_operand.vmem [shape: bf16[2,128], index: 4, kind: output, shape index: {}]  }
   0x1   :  { %v1081_v0 = vld [vmem:[%s1427_s1 + $0x78] sm:$0xff]   ;;  %v1085_v4 = vld [vmem:[%s1427_s1 + $0x70] sm:$0xff]   ;;  %v1089_v8 = vld [vmem:[%s1427_s1 + $0x68] sm:$0xff]   ;;  %v175_v22 = vunpack.c.l.s4 %v1154_v21 }
   0x2   :  { %v1082_v1 = vld [vmem:[%s1427_s1 + $0x38] sm:$0xff]   ;;  %961 = vmatprep.subr.bf16.mxu0 %v1081_v0  ;;  %v1086_v5 = vld [vmem:[%s1427_s1 + $0x30] sm:$0xff]   ;;  %v1090_v9 = vld [vmem:[%s1427_s1 + $0x28] sm:$0xff]   ;;  %v178_v29 = vshrl.u32 %v177_v23, 7 }
   0x3   :  { %v1083_v2 = vld [vmem:[%s1427_s1 + $0xf8] sm:$0xff]   ;;  %962 = vmatpush3.bf16.msra.mxu0 %v1082_v1  ;;  %v1087_v6 = vld [vmem:[%s1427_s1 + $0xf0] sm:$0xff]   ;;  %v1091_v10 = vld [vmem:[%s1427_s1 + $0xe8] sm:$0xff]   ;;  %v176_v28 = vunpack.c.0.s8 %v175_v22 }
   0x4   :  { %v1084_v3 = vld [vmem:[%s1427_s1 + $0xb8] sm:$0xff]   ;;  %983 = vmatprep.subr.bf16.mxu1 %v1083_v2  ;;  %963 = vmatprep.subr.bf16.mxu0 %v1085_v4  ;;  %v1088_v7 = vld [vmem:[%s1427_s1 + $0xb0] sm:$0xff]   ;;  %v1092_v11 = vld [vmem:[%s1427_s1 + $0xa8] sm:$0xff]  }
   0x5   :  { %984 = vmatpush3.bf16.msra.mxu1 %v1084_v3  ;;  %v1093_v12 = vld [vmem:[%s1427_s1 + $0x60] sm:$0xff]   ;;  %v1097_v16 = vld [vmem:[%s1427_s1 + $0x58] sm:$0xff]   ;;  %v1101_v20 = vld [vmem:[%s1427_s1 + $0x50] sm:$0xff]   ;;  %v1269_v34 = vsub.s32 %v176_v28, %v178_v29 }
   0x6   :  { %985 = vmatprep.subr.bf16.mxu1 %v1087_v6  ;;  %v1094_v13 = vld [vmem:[%s1427_s1 + $0x20] sm:$0xff]   ;;  %v1098_v17 = vld [vmem:[%s1427_s1 + $0x18] sm:$0xff]   ;;  %v1102_v24 = vld [vmem:[%s1427_s1 + $0x10] sm:$0xff]  }
   0x7   :  { %964 = vmatpush3.bf16.msra.mxu0 %v1086_v5  ;;  %v1095_v14 = vld [vmem:[%s1427_s1 + $0xe0] sm:$0xff]   ;;  %v1099_v18 = vld [vmem:[%s1427_s1 + $0xd8] sm:$0xff]   ;;  %v1103_v25 = vld [vmem:[%s1427_s1 + $0xd0] sm:$0xff]  }
   0x8   :  { %965 = vmatprep.subr.bf16.mxu0 %v1089_v8  ;;  %v1096_v15 = vld [vmem:[%s1427_s1 + $0xa0] sm:$0xff]   ;;  %v1100_v19 = vld [vmem:[%s1427_s1 + $0x98] sm:$0xff]   ;;  %v1104_v26 = vld [vmem:[%s1427_s1 + $0x90] sm:$0xff]  }
   0x9   :  { %986 = vmatpush3.bf16.msra.mxu1 %v1088_v7  ;;  %v1105_v27 = vld [vmem:[%s1427_s1 + $0x48] sm:$0xff]   ;;  %v1109_v33 = vld [vmem:[%s1427_s1 + $0x40] sm:$0xff]   ;;  %v1114_v41 = vld [vmem:[%s1427_s1 + $0x178] sm:$0xff]  }
   0xa   :  { %987 = vmatprep.subr.bf16.mxu1 %v1091_v10  ;;  %v1106_v30 = vld [vmem:[%s1427_s1 + $0x8] sm:$0xff]   ;;  %v1110_v35 = vld [vmem:[%s1427_s1] sm:$0xff]   ;;  %v1116_v45 = vld [vmem:[%s1427_s1 + $0x1f8] sm:$0xff]  }
   0xb   :  { %966 = vmatpush3.bf16.msra.mxu0 %v1090_v9  ;;  %v1107_v31 = vld [vmem:[%s1427_s1 + $0xc8] sm:$0xff]   ;;  %v1111_v36 = vld [vmem:[%s1427_s1 + $0xc0] sm:$0xff]   ;;  %v1115_v47 = vld [vmem:[%s1427_s1 + $0x138] sm:$0xff]  }
   0xc   :  { %967 = vmatprep.subr.bf16.mxu0 %v1093_v12  ;;  %v1108_v32 = vld [vmem:[%s1427_s1 + $0x88] sm:$0xff]   ;;  %v18_v37 = vld [vmem:[%s1428_s0] sm:$0xff]  ;;  %v1118_v50 = vld [vmem:[%s1427_s1 + $0x170] sm:$0xff]  }
   0xd   :  { %988 = vmatpush3.bf16.msra.mxu1 %v1092_v11  ;;  %v173_v38 = vcombine.high %v18_v37, %v18_v37  ;;  %v180_v39 = vrot.slane %v18_v37, %v1269_v34  ;;  %v1113_v40 = vld [vmem:[%s1427_s1 + $0x80] sm:$0xff]   ;;  %v1117_v52 = vld [vmem:[%s1427_s1 + $0x1b8] sm:$0xff]   ;;  %v1120_v54 = vld [vmem:[%s1427_s1 + $0x1f0] sm:$0xff]  }
   0xe   :  { %989 = vmatprep.subr.bf16.mxu1 %v1095_v14  ;;  %v1119_v55 = vld [vmem:[%s1427_s1 + $0x130] sm:$0xff]   ;;  %v1122_v57 = vld [vmem:[%s1427_s1 + $0x168] sm:$0xff]   ;;  %v1126_v61 = vld [vmem:[%s1427_s1 + $0x160] sm:$0xff]  }
   0xf   :  { %968 = vmatpush3.bf16.msra.mxu0 %v1094_v13  ;;  %v188_v42 = vcombine.high %v180_v39, %v180_v39  ;;  %v196_v43 = vrot.slane %v180_v39, %v1269_v34  ;;  %v1289_v44 = vrot.slane %v173_v38, %v1269_v34  ;;  %v1121_v58 = vld [vmem:[%s1427_s1 + $0x1b0] sm:$0xff]   ;;  %v1124_v59 = vld [vmem:[%s1427_s1 + $0x1e8] sm:$0xff]   ;;  %v1128_v63 = vld [vmem:[%s1427_s1 + $0x1e0] sm:$0xff]  }
  0x10   :  { %969 = vmatprep.subr.bf16.mxu0 %v1097_v16  ;;  %v1123_v60 = vld [vmem:[%s1427_s1 + $0x128] sm:$0xff]   ;;  %v1127_v0 = vld [vmem:[%s1427_s1 + $0x120] sm:$0xff]   ;;  %v1130_v1 = vld [vmem:[%s1427_s1 + $0x158] sm:$0xff]  }
  0x11   :  { %990 = vmatpush3.bf16.msra.mxu1 %v1096_v15  ;;  %v210_v46 = vrot.slane %v188_v42, %v1269_v34  ;;  %v189_v48 = vcombine.high %v1289_v44, %v1289_v44  ;;  %v218_v49 = vcombine.high %v196_v43, %v196_v43  ;;  %v1125_v62 = vld [vmem:[%s1427_s1 + $0x1a8] sm:$0xff]   ;;  %v1129_v2 = vld [vmem:[%s1427_s1 + $0x1a0] sm:$0xff]   ;;  %v1132_v3 = vld [vmem:[%s1427_s1 + $0x1d8] sm:$0xff]  }
  0x12   :  { %991 = vmatprep.subr.bf16.mxu1 %v1099_v18  ;;  %v1131_v4 = vld [vmem:[%s1427_s1 + $0x118] sm:$0xff]   ;;  %v1134_v5 = vld [vmem:[%s1427_s1 + $0x150] sm:$0xff]   ;;  %v1138_v9 = vld [vmem:[%s1427_s1 + $0x148] sm:$0xff]  }
  0x13   :  { %970 = vmatpush3.bf16.msra.mxu0 %v1098_v17  ;;  %709 = vmatprep.mubr.bf16.mxu0 %v210_v46  ;;  %v220_v51 = vcombine.high %v210_v46, %v210_v46  ;;  %v217_v53 = vrot.slane %v189_v48, %v1269_v34  ;;  %v1133_v6 = vld [vmem:[%s1427_s1 + $0x198] sm:$0xff]   ;;  %v1136_v7 = vld [vmem:[%s1427_s1 + $0x1d0] sm:$0xff]   ;;  %v1140_v11 = vld [vmem:[%s1427_s1 + $0x1c8] sm:$0xff]   ;;  %v203_v17 = vrot.slane %v1289_v44, %v1269_v34 }
  0x14   :  { %971 = vmatprep.subr.bf16.mxu0 %v1101_v20  ;;  %v1135_v8 = vld [vmem:[%s1427_s1 + $0x110] sm:$0xff]   ;;  %v1139_v12 = vld [vmem:[%s1427_s1 + $0x108] sm:$0xff]   ;;  %v1142_v13 = vld [vmem:[%s1427_s1 + $0x140] sm:$0xff]   ;;  %v1155_v20 = vmov 0.0  }
  0x15   :  { %992 = vmatpush3.bf16.msra.mxu1 %v1100_v19  ;;  %749 = vmatprep.mubr.bf16.mxu1 %v220_v51  ;;  %v221_v56 = vcombine.high %v217_v53, %v217_v53  ;;  %v1137_v10 = vld [vmem:[%s1427_s1 + $0x190] sm:$0xff]   ;;  %v1141_v14 = vld [vmem:[%s1427_s1 + $0x188] sm:$0xff]   ;;  %v1144_v15 = vld [vmem:[%s1427_s1 + $0x1c0] sm:$0xff]   ;;  %v219_v21 = vcombine.high %v203_v17, %v203_v17 }
  0x16   :  { %993 = vmatprep.subr.bf16.mxu1 %v1103_v25  ;;  %v1143_v16 = vld [vmem:[%s1427_s1 + $0x100] sm:$0xff]   ;;  %v1146_v19 = vld [vmem:[%s1427_s1 + $0x238] sm:$0xff]   ;;  %v1147_v22 = vld [vmem:[%s1427_s1 + $0x230] sm:$0xff]  }
  0x17   :  { %972 = vmatpush3.bf16.msra.mxu0 %v1102_v24  ;;  %v1145_v18 = vld [vmem:[%s1427_s1 + $0x180] sm:$0xff]   ;;  %v888_v23 = vld.sshfl [vmem:[%s1428_s0 + $0x8] sm:$0x1 pattern:$0x75316420]  ;;  %v1151_v28 = vld [vmem:[%s1427_s1 + $0x210] sm:$0xff]  }
  0x18   :  { %973 = vmatprep.subr.bf16.mxu0 %v1105_v27  ;;  %v235_v24 = vrot.slane %v888_v23, %v1269_v34  ;;  %v1148_v25 = vld [vmem:[%s1427_s1 + $0x228] sm:$0xff]   ;;  %v1150_v27 = vld [vmem:[%s1427_s1 + $0x218] sm:$0xff]   ;;  %v887_v48 = vld [vmem:[%s1429_s2] ss:$0 sm:$0xff] }
  0x19   :  { %994 = vmatpush3.bf16.msra.mxu1 %v1104_v26  ;;  %v1149_v26 = vld [vmem:[%s1427_s1 + $0x220] sm:$0xff]   ;;  %v1152_v29 = vld [vmem:[%s1427_s1 + $0x208] sm:$0xff]  }
  0x1a   :  { %995 = vmatprep.subr.bf16.mxu1 %v1107_v31 }
  0x1b   :  { %974 = vmatpush3.bf16.msra.mxu0 %v1106_v30  ;;  %v1153_v30 = vld [vmem:[%s1427_s1 + $0x200] sm:$0xff]  }
  0x1c   :  { %975 = vmatprep.subr.bf16.mxu0 %v1109_v33 }
  0x1d   :  { %996 = vmatpush3.bf16.msra.mxu1 %v1108_v32 }
  0x1e   :  { %997 = vmatprep.subr.bf16.mxu1 %v1111_v36 }
  0x1f   :  { %976 = vmatpush3.bf16.msra.mxu0 %v1110_v35 }
  0x20   :  { %1005 = vmatprep.subr.bf16.mxu0 %v1114_v41 }
  0x21   :  { %998 = vmatpush3.bf16.msra.mxu1 %v1113_v40 }
  0x22   :  { %1027 = vmatprep.subr.bf16.mxu1 %v1116_v45  ;;  %710 = vmatmul.mubr.bf16.vlgmr.msra.gmra.mxu0 %v196_v43 }
  0x23   :  { %1006 = vmatpush3.bf16.msra.mxu0 %v1115_v47  ;;  %789 = vmatprep.mubr.bf16.mxu0 %v217_v53 }
  0x24   :  { %750 = vmatmul.mubr.bf16.vlgmr.msra.gmra.mxu1 %v218_v49  ;;  %1007 = vmatprep.subr.bf16.mxu0 %v1118_v50 }
  0x25   :  { %1028 = vmatpush3.bf16.msra.mxu1 %v1117_v52  ;;  %829 = vmatprep.mubr.bf16.mxu1 %v221_v56 }
  0x26   :  { %1029 = vmatprep.subr.bf16.mxu1 %v1120_v54 }
  0x27   :  { %1008 = vmatpush3.bf16.msra.mxu0 %v1119_v55  ;;  %v878_v55 = vld [vmem:[%s1430_s3] sm:$0x1] }
  0x28   :  { %1009 = vmatprep.subr.bf16.mxu0 %v1122_v57 }
  0x29   :  { %1030 = vmatpush3.bf16.msra.mxu1 %v1121_v58 }
  0x2a   :  { %1031 = vmatprep.subr.bf16.mxu1 %v1124_v59  ;;  %v879_v59 = vunpack.c.l.bf16 %v878_v55 }
  0x2b   :  { %1010 = vmatpush3.bf16.msra.mxu0 %v1123_v60 }
  0x2c   :  { %1011 = vmatprep.subr.bf16.mxu0 %v1126_v61 }
  0x2d   :  { %1032 = vmatpush3.bf16.msra.mxu1 %v1125_v62 }
  0x2e   :  { %1033 = vmatprep.subr.bf16.mxu1 %v1128_v63 }
  0x2f   :  { %1012 = vmatpush3.bf16.msra.mxu0 %v1127_v0 }
  0x30   :  { %1013 = vmatprep.subr.bf16.mxu0 %v1130_v1 }
  0x31   :  { %1034 = vmatpush3.bf16.msra.mxu1 %v1129_v2 }
  0x32   :  { %1035 = vmatprep.subr.bf16.mxu1 %v1132_v3 }
  0x33   :  { %1014 = vmatpush3.bf16.msra.mxu0 %v1131_v4 }
  0x34   :  { %1015 = vmatprep.subr.bf16.mxu0 %v1134_v5 }
  0x35   :  { %1036 = vmatpush3.bf16.msra.mxu1 %v1133_v6 }
  0x36   :  { %1037 = vmatprep.subr.bf16.mxu1 %v1136_v7 }
  0x37   :  { %1016 = vmatpush3.bf16.msra.mxu0 %v1135_v8 }
  0x38   :  { %1017 = vmatprep.subr.bf16.mxu0 %v1138_v9 }
  0x39   :  { %1038 = vmatpush3.bf16.msra.mxu1 %v1137_v10 }
  0x3a   :  { %1039 = vmatprep.subr.bf16.mxu1 %v1140_v11 }
  0x3b   :  { %1018 = vmatpush3.bf16.msra.mxu0 %v1139_v12 }
  0x3c   :  { %1019 = vmatprep.subr.bf16.mxu0 %v1142_v13 }
  0x3d   :  { %1040 = vmatpush3.bf16.msra.mxu1 %v1141_v14 }
  0x3e   :  { %1041 = vmatprep.subr.bf16.mxu1 %v1144_v15 }
  0x3f   :  { %1020 = vmatpush3.bf16.msra.mxu0 %v1143_v16 }
  0x40   :  { %1058 = vmatprep.subr.bf16.mxu0 %v1155_v20 }
  0x41   :  { %1042 = vmatpush3.bf16.msra.mxu1 %v1145_v18 }
  0x42   :  { %790 = vmatmul.mubr.bf16.vlgmr.msra.gmra.mxu0 %v203_v17 }
  0x43   :  { %1059 = vmatpush3.bf16.msra.mxu0 %v1146_v19  ;;  %1074 = vmatprep.mubr.msk.bf16.mxu0 %vm1156_vm0, %v1155_v20 }
  0x44   :  { %830 = vmatmul.mubr.bf16.vlgmr.msra.gmra.mxu1 %v219_v21  ;;  %1060 = vmatprep.subr.bf16.mxu0 %v1155_v20 }
  0x47   :  { %1061 = vmatpush3.bf16.msra.mxu0 %v1147_v22 }
  0x48   :  { %1062 = vmatprep.subr.bf16.mxu0 %v1155_v20 }
  0x4b   :  { %1063 = vmatpush3.bf16.msra.mxu0 %v1148_v25 }
  0x4c   :  { %1064 = vmatprep.subr.bf16.mxu0 %v1155_v20 }
  0x4f   :  { %1065 = vmatpush3.bf16.msra.mxu0 %v1149_v26 }
  0x50   :  { %1066 = vmatprep.subr.bf16.mxu0 %v1155_v20 }
  0x53   :  { %1067 = vmatpush3.bf16.msra.mxu0 %v1150_v27 }
  0x54   :  { %1068 = vmatprep.subr.bf16.mxu0 %v1155_v20 }
  0x57   :  { %1069 = vmatpush3.bf16.msra.mxu0 %v1151_v28 }
  0x58   :  { %1070 = vmatprep.subr.bf16.mxu0 %v1155_v20 }
  0x5b   :  { %1071 = vmatpush3.bf16.msra.mxu0 %v1152_v29 }
  0x5c   :  { %1072 = vmatprep.subr.bf16.mxu0 %v1155_v20 }
  0x5f   :  { %1073 = vmatpush3.bf16.msra.mxu0 %v1153_v30 }
  0x62   :  { %1075 = vmatmul.mubr.bf16.vlgmr.msra.gmra.mxu0 %v235_v24 }
  0xe2   :  { %v977_v31 = vpop.f32.mrf.mxu0 }
  0xe4   :  { %v978_v32 = vpop.f32.mrf.mxu0  ;;  %v999_v33 = vpop.f32.mrf.mxu1 }
  0xe5   :  { %v979_v47 = vadd.f32 %v978_v32, %v977_v31 }
  0xe6   :  { %v980_v34 = vpop.f32.mrf.mxu0  ;;  %v1000_v35 = vpop.f32.mrf.mxu1 }
  0xe7   :  { %v712_v49 = vadd.f32 %v979_v47, %v887_v48  ;;  %v1001_v50 = vadd.f32 %v1000_v35, %v999_v33 }
  0xe8   :  { %v981_v36 = vpop.f32.mrf.mxu0  ;;  %v1002_v37 = vpop.f32.mrf.mxu1 }
  0xe9   :  { %v752_v52 = vadd.f32 %v1001_v50, %v712_v49 }
  0xea   :  { %v1003_v38 = vpop.f32.mrf.mxu1 }
 0x102   :  { %v1021_v39 = vpop.f32.mrf.mxu0 }
 0x104   :  { %v1022_v40 = vpop.f32.mrf.mxu0  ;;  %v1043_v41 = vpop.f32.mrf.mxu1 }
 0x105   :  { %v1023_v51 = vadd.f32 %v1022_v40, %v1021_v39 }
 0x106   :  { %v1024_v42 = vpop.f32.mrf.mxu0  ;;  %v1044_v43 = vpop.f32.mrf.mxu1 }
 0x107   :  { %v792_v53 = vadd.f32 %v1023_v51, %v752_v52  ;;  %v1045_v54 = vadd.f32 %v1044_v43, %v1043_v41 }
 0x108   :  { %v1025_v44 = vpop.f32.mrf.mxu0  ;;  %v1046_v45 = vpop.f32.mrf.mxu1 }
 0x109   :  { %v832_v56 = vadd.f32 %v1045_v54, %v792_v53 }
 0x10a   :  { %v1047_v46 = vpop.f32.mrf.mxu1 }
 0x122   :  { %v871_v57 = vpop.f32.mrf.mxu0 }
 0x123   :  { %v872_v58 = vadd.f32 %v871_v57, %v832_v56 }
 0x124   :  { %v1076_v60 = vpop.f32.mrf.mxu0 }
 0x125   :  { %v877_v61 = vmax.f32 %v872_v58, 0.0 }
 0x126   :  { %v874_v62 = vpop.f32.mrf.mxu0 }
 0x127   :  { %v880_v63 = vadd.f32 %v879_v59, %v877_v61 }
 0x128   :  { %v1077_v0 = vpop.f32.mrf.mxu0 }
 0x129   :  { %v881_v1 = vpack.c.bf16 %v880_v63, %v880_v63 }
 0x12b   :  { %882 = vst [vmem:[%s1431_s4] sm:$0x1] %v881_v1 }

</bundles_post_ra>
